<compile_context>
chip_gen: v6e
topology: v6e:2x2x1
jax: 0.10.0
libtpu: 0.0.40
codegen_flags: <defaults>
</compile_context>

<pallas_src>
from functools import partial
import math

import numpy as np
import jax
import jax.numpy as jnp
from jax.experimental import pallas as pl
from jax.experimental.pallas import tpu as pltpu


# ----------------------------------------------------------------------------
# The fully fused NASTR forward kernel
#   grid = (batch_blocks, num_layers)   -- batch "parallel", layers "arbitrary"
# ----------------------------------------------------------------------------
def _nastr_kernel(patch_ref, pw_ref, pb_ref, pes_ref, pet_ref,
                  w8_ref, w1_ref, w2_ref, vec_ref, b1_ref, fw_ref, fb_ref,
                  logit_ref, glob_ref,
                  x_scr, mem_scr,
                  *, heads, nb, t_real, eps):
    l = pl.program_id(1)
    n_layers = pl.num_programs(1)

    S, E = pes_ref.shape
    Tp = pet_ref.shape[0]          # padded target length (multiple of 8)
    Kin = patch_ref.shape[-1]
    Np = fw_ref.shape[-1]
    Dh = E // heads
    M = nb * Tp

    # ---------------- encode (runs once per batch block, at layer 0) -----------
    @pl.when(l == 0)
    def _encode():
        pat = patch_ref[...].reshape(nb * S, Kin).astype(jnp.bfloat16)
        enc = jnp.dot(pat, pw_ref[...],
                      preferred_element_type=jnp.float32) + pb_ref[...]      # (nb*S, E)
        enc3 = enc.reshape(nb, S, E)
        # memory = PE(flatten(enc))   (dropout = identity in eval)
        mem_scr[...] = enc3 + pes_ref[...]
        # global features = mean over spatial of raw encoder features (pre-PE)
        g = jnp.mean(enc3, axis=1)                                           # (nb, E)
        glob_ref[...] = g[:, None, :].astype(glob_ref.dtype)
        # target embedding = PE(repeat(global, T_pad))
        x_scr[...] = (g[:, None, :] + pet_ref[...]).reshape(M, E)

    # ---------------- one post-norm TransformerDecoderLayer --------------------
    vecs = vec_ref[0]                                   # (16, E) f32 packed vectors

    def vrow(i):
        return vecs[i:i + 1, :]                         # (1, E)

    def wmat(j):
        return w8_ref[j]                                # (E, E) bf16

    def mm(a, w, b):
        # bf16 MXU operands, f32 accumulation; bias add in f32.
        return jnp.dot(a.astype(jnp.bfloat16), w,
                       preferred_element_type=jnp.float32) + b

    def layer_norm(v, gi, bi):
        mu = jnp.mean(v, axis=-1, keepdims=True)
        var = jnp.mean((v - mu) ** 2, axis=-1, keepdims=True)
        return (v - mu) * jax.lax.rsqrt(var + eps) * vrow(gi) + vrow(bi)

    # additive key mask so padded target rows never influence real rows
    if t_real < Tp:
        key_bias = jnp.where(
            jax.lax.broadcasted_iota(jnp.int32, (1, Tp), 1) < t_real, 0.0, -1e30)
    else:
        key_bias = None

    def attend(q, k, v, lq, lk, bias=None):
        # q: (nb*lq, E), k/v: (nb*lk, E) -> (nb*lq, E); per-batch attention,
        # batched over batch elements in one einsum per head (flash pattern).
        q3 = q.reshape(nb, lq, E).astype(jnp.bfloat16)
        k3 = k.reshape(nb, lk, E).astype(jnp.bfloat16)
        v3 = v.reshape(nb, lk, E).astype(jnp.bfloat16)
        outs = []
        for h in range(heads):
            sl = slice(h * Dh, (h + 1) * Dh)
            s = jnp.einsum("bqd,bkd->bqk", q3[:, :, sl], k3[:, :, sl],
                           preferred_element_type=jnp.float32)
            if bias is not None:
                s = s + bias
            s = s - jnp.max(s, axis=-1, keepdims=True)
            p = jnp.exp(s)
            p = p * pl.reciprocal(jnp.sum(p, axis=-1, keepdims=True), approx=True)
            outs.append(jnp.einsum("bqk,bkd->bqd", p.astype(jnp.bfloat16),
                                   v3[:, :, sl],
                                   preferred_element_type=jnp.float32))
        return jnp.concatenate(outs, axis=-1).reshape(nb * lq, E)

    x = x_scr[...]                                      # (M, E) f32
    mem = mem_scr[...].reshape(nb * S, E)               # (nb*S, E) f32

    # ---- self-attention (1/sqrt(Dh) scale pre-folded into the Q weights) ----
    sa = attend(mm(x, wmat(0), vrow(0)),
                mm(x, wmat(1), vrow(1)),
                mm(x, wmat(2), vrow(2)), Tp, Tp, bias=key_bias)
    x = layer_norm(x + mm(sa, wmat(3), vrow(3)), 4, 5)

    # ---- cross-attention over memory ----
    ca = attend(mm(x, wmat(4), vrow(6)),
                mm(mem, wmat(5), vrow(7)),
                mm(mem, wmat(6), vrow(8)), Tp, S)
    x = layer_norm(x + mm(ca, wmat(7), vrow(9)), 10, 11)

    # ---- feed-forward (relu) ----
    h1 = jnp.maximum(mm(x, w1_ref[0], b1_ref[0]), 0.0)
    x = layer_norm(x + mm(h1, w2_ref[0], vrow(12)), 13, 14)

    x_scr[...] = x

    # ---------------- fine predictor (lane-dense, padded nclass) ---------------
    @pl.when(l == n_layers - 1)
    def _head():
        y = jnp.dot(x.astype(jnp.bfloat16), fw_ref[...],
                    preferred_element_type=jnp.float32) + fb_ref[...]
        logit_ref[...] = y.reshape(nb, Tp, Np).astype(logit_ref.dtype)


def _pick_batch_block(N, rows_per_elem):
    """>=2 batch blocks keeps a parallel grid axis for v7x megacore, as long as
    each block still carries >=16 activation rows (MXU/store fill); otherwise
    fold the whole batch into one block (small-N case)."""
    if N % 2 == 0 and (N // 2) * rows_per_elem >= 16:
        return N // 2
    return N


# ----------------------------------------------------------------------------
# Model forward (plain-JAX glue only for layout / slicing)
# ----------------------------------------------------------------------------
def sinusoidal_pe(max_len, d):
    pos = np.arange(max_len, dtype=np.float32)[:, None]
    div = np.exp(np.arange(0, d, 2, dtype=np.float32) * (-math.log(10000.0) / d))
    pe = np.zeros((max_len, d), np.float32)
    pe[:, 0::2] = np.sin(pos * div)
    pe[:, 1::2] = np.cos(pos * div)
    return jnp.asarray(pe)


def nastr_forward(images, target_lengths, params, cfg):
    E, heads, p, nclass = cfg["E"], cfg["heads"], cfg["patch"], cfg["nclass"]
    n_layers, F = cfg["layers"], cfg["ffn"]

    # batch_max_length = max(target_lengths) + 1 (static python int, like .cpu().item())
    T = int(max(target_lengths)) + 1
    T_pad = ((T + 7) // 8) * 8            # sublane-aligned target length (masked/sliced)

    N, C, H, W = images.shape
    h, w = H // p, W // p
    S = h * w
    Kin = C * p * p

    # ---- Encoder (stand-in): patch-embed projection inside the fused kernel ----
    # TODO(synk): full svtr_base / ViT backbone is an external module; replaced by a
    #             single patch-embedding projection.  The patch rearrangement below
    #             stays wrapper-side; fold it into the kernel via an (h, w) index_map
    #             / strided DMA at production image resolutions.
    patches = (images.reshape(N, C, h, p, w, p)
                     .transpose(0, 2, 4, 1, 3, 5)
                     .reshape(N, S, Kin))

    pe = params["pe"]
    nb = _pick_batch_block(N, T_pad)
    Np = params["fine_w"].shape[1]

    bmap3 = lambda n, l: (n, 0, 0)
    lmap3 = lambda n, l: (l, 0, 0)
    cmap2 = lambda n, l: (0, 0)

    # TODO(synk): at svtr_base scale (E=384) set vmem_limit_bytes and audit the
    #             double-buffered per-layer weight set against v7x's 64 MiB VMEM.
    logits_pad, glob3 = pl.pallas_call(
        partial(_nastr_kernel, heads=heads, nb=nb, t_real=T, eps=1e-5),
        out_shape=(jax.ShapeDtypeStruct((N, T_pad, Np), jnp.float32),
                   jax.ShapeDtypeStruct((N, 1, E), jnp.float32)),
        grid=(N // nb, n_layers),
        in_specs=[pl.BlockSpec((nb, S, Kin), bmap3),        # patches
                  pl.BlockSpec((Kin, E), cmap2),            # patch-embed weight (bf16)
                  pl.BlockSpec((1, E), cmap2),              # patch-embed bias
                  pl.BlockSpec((S, E), cmap2),              # PE[:S]
                  pl.BlockSpec((T_pad, E), cmap2),          # PE[:T_pad]
                  pl.BlockSpec((8, E, E), lmap3),           # stacked attn mats (8 per layer)
                  pl.BlockSpec((1, E, F), lmap3),           # FFN w1
                  pl.BlockSpec((1, F, E), lmap3),           # FFN w2
                  pl.BlockSpec((1, 16, E), lmap3),          # packed biases / LN params
                  pl.BlockSpec((1, 1, F), lmap3),           # FFN b1
                  pl.BlockSpec((E, Np), cmap2),             # fine head W (lane-padded)
                  pl.BlockSpec((1, Np), cmap2)],            # fine head b
        out_specs=(pl.BlockSpec((nb, T_pad, Np), bmap3),
                   pl.BlockSpec((nb, 1, E), bmap3)),
        scratch_shapes=[pltpu.VMEM((nb * T_pad, E), jnp.float32),   # decoder activations
                        pltpu.VMEM((nb, S, E), jnp.float32)],       # memory (seq features)
        compiler_params=pltpu.CompilerParams(
            dimension_semantics=("parallel", "arbitrary")),
    )(patches, params["patch_w"], params["patch_b"], pe[:S, :], pe[:T_pad, :],
      params["w8"], params["w1"], params["w2"], params["vecs"], params["b1"],
      params["fine_w"], params["fine_b"])

    fine_logits = logits_pad[:, :T, :nclass]
    global_features = glob3[:, 0, :]

    return {
        "coarse_logits": None,
        "length_logits": None,
        "fine_logits": fine_logits,
        "text_encoder_features": None,      # ITC=False path
        "vision_encoder_features": global_features,
    }


# ----------------------------------------------------------------------------
# Deterministic parameter init
#   * matmul weights stored bf16 at rest; LN params / biases f32
#   * softmax scale folded into Q projections
#   * per-layer attn mats stacked along a leading axis: (L*8, E, E)
#   * biases + LN gamma/beta packed into one (L, 16, E) operand
#   * fine head lane-padded nclass -> multiple of 128
# ----------------------------------------------------------------------------
def init_params(key, cfg):
    E, F, nclass, L = cfg["E"], cfg["ffn"], cfg["nclass"], cfg["layers"]
    heads, patch, C = cfg["heads"], cfg["patch"], cfg["C"]
    Dh = E // heads
    scale = 1.0 / math.sqrt(Dh)
    Kin = C * patch * patch
    keys = iter(jax.random.split(key, 16 * L + 16))

    def W(shape):
        return jax.random.normal(next(keys), shape, jnp.float32) * 0.02

    w8, w1, w2, b1, vecs = [], [], [], [], []
    for _ in range(L):
        # order: [q_s, k_s, v_s, o_s, q_c, k_c, v_c, o_c]
        mats = [W((E, E)) for _ in range(8)]
        mats[0] = mats[0] * scale            # fold 1/sqrt(Dh) into self-attn Q
        mats[4] = mats[4] * scale            # fold 1/sqrt(Dh) into cross-attn Q
        w8.append(jnp.stack(mats, axis=0))
        w1.append(W((E, F)))
        w2.append(W((F, E)))
        b1.append(jnp.zeros((1, F), jnp.float32))
        # rows: 0 b_q_s, 1 b_k_s, 2 b_v_s, 3 b_o_s, 4 ln1_g, 5 ln1_b,
        #       6 b_q_c, 7 b_k_c, 8 b_v_c, 9 b_o_c, 10 ln2_g, 11 ln2_b,
        #       12 b_ffn2, 13 ln3_g, 14 ln3_b, 15 pad
        v = jnp.zeros((16, E), jnp.float32)
        v = v.at[4].set(1.0).at[10].set(1.0).at[13].set(1.0)
        vecs.append(v)

    nclass_pad = ((nclass + 127) // 128) * 128
    fine_w = jnp.zeros((E, nclass_pad), jnp.float32).at[:, :nclass].set(W((E, nclass)))

    return dict(
        patch_w=W((Kin, E)).astype(jnp.bfloat16),
        patch_b=jnp.zeros((1, E), jnp.float32),
        w8=jnp.concatenate(w8, axis=0).astype(jnp.bfloat16),     # (L*8, E, E)
        w1=jnp.stack(w1, axis=0).astype(jnp.bfloat16),           # (L, E, F)
        w2=jnp.stack(w2, axis=0).astype(jnp.bfloat16),           # (L, F, E)
        b1=jnp.stack(b1, axis=0),                                # (L, 1, F)
        vecs=jnp.stack(vecs, axis=0),                            # (L, 16, E)
        fine_w=fine_w.astype(jnp.bfloat16),                      # (E, nclass_pad)
        fine_b=jnp.zeros((1, nclass_pad), jnp.float32),
        pe=sinusoidal_pe(cfg["max_pe"], E),
    )


# ----------------------------------------------------------------------------
if __name__ == "__main__":
    cfg = dict(E=64, heads=4, ffn=4 * 64, nclass=40, layers=2,
               patch=8, C=3, max_pe=128)

    key = jax.random.PRNGKey(0)
    k_img, k_par = jax.random.split(key)

    images = jax.random.normal(k_img, (2, 3, 16, 32), jnp.float32)   # NCHW, like PyTorch
    target_lengths = [5, 6]                                          # -> batch_max_length = 7
    params = init_params(k_par, cfg)

    out = nastr_forward(images, target_lengths, params, cfg)
    jax.block_until_ready(out["fine_logits"])
    jax.block_until_ready(out["vision_encoder_features"])

    assert out["fine_logits"].shape == (2, 7, cfg["nclass"])
    assert out["vision_encoder_features"].shape == (2, cfg["E"])
    print("KERNEL_OK")
</pallas_src>

<mosaic_0001>
module attributes {stable_mosaic.version = 11 : i64} {
  func.func @_nastr_kernel(%arg0: i32, %arg1: i32, %arg2: memref<2x8x192xf32, #tpu.memory_space<vmem>>, %arg3: memref<192x64xbf16, #tpu.memory_space<vmem>>, %arg4: memref<1x64xf32, #tpu.memory_space<vmem>>, %arg5: memref<8x64xf32, #tpu.memory_space<vmem>>, %arg6: memref<8x64xf32, #tpu.memory_space<vmem>>, %arg7: memref<8x64x64xbf16, #tpu.memory_space<vmem>>, %arg8: memref<1x64x256xbf16, #tpu.memory_space<vmem>>, %arg9: memref<1x256x64xbf16, #tpu.memory_space<vmem>>, %arg10: memref<1x16x64xf32, #tpu.memory_space<vmem>>, %arg11: memref<1x1x256xf32, #tpu.memory_space<vmem>>, %arg12: memref<64x128xbf16, #tpu.memory_space<vmem>>, %arg13: memref<1x128xf32, #tpu.memory_space<vmem>>, %arg14: memref<2x8x128xf32, #tpu.memory_space<vmem>>, %arg15: memref<2x1x64xf32, #tpu.memory_space<vmem>>, %arg16: memref<16x64xf32, #tpu.memory_space<vmem>>, %arg17: memref<2x8x64xf32, #tpu.memory_space<vmem>>) attributes {dimension_semantics = [#tpu.dimension_semantics<parallel>, #tpu.dimension_semantics<arbitrary>], iteration_bounds = array<i64: 1, 2>, scalar_prefetch = 0 : i64, scratch_operands = 2 : i64, tpu.core_type = #tpu.core_type<tc>, window_params = [{transform_indices = @transform_0, window_bounds = array<i64: 2, 8, 192>}, {pipeline_mode = #tpu.pipeline_mode<synchronous>, transform_indices = @transform_1, window_bounds = array<i64: 192, 64>}, {pipeline_mode = #tpu.pipeline_mode<synchronous>, transform_indices = @transform_2, window_bounds = array<i64: 1, 64>}, {pipeline_mode = #tpu.pipeline_mode<synchronous>, transform_indices = @transform_3, window_bounds = array<i64: 8, 64>}, {pipeline_mode = #tpu.pipeline_mode<synchronous>, transform_indices = @transform_4, window_bounds = array<i64: 8, 64>}, {transform_indices = @transform_5, window_bounds = array<i64: 8, 64, 64>}, {transform_indices = @transform_6, window_bounds = array<i64: 1, 64, 256>}, {transform_indices = @transform_7, window_bounds = array<i64: 1, 256, 64>}, {transform_indices = @transform_8, window_bounds = array<i64: 1, 16, 64>}, {transform_indices = @transform_9, window_bounds = array<i64: 1, 1, 256>}, {pipeline_mode = #tpu.pipeline_mode<synchronous>, transform_indices = @transform_10, window_bounds = array<i64: 64, 128>}, {pipeline_mode = #tpu.pipeline_mode<synchronous>, transform_indices = @transform_11, window_bounds = array<i64: 1, 128>}, {transform_indices = @transform_12, window_bounds = array<i64: 2, 8, 128>}, {transform_indices = @transform_13, window_bounds = array<i64: 2, 1, 64>}]} {
    %c0_i32 = arith.constant 0 : i32
    %0 = arith.cmpi eq, %arg1, %c0_i32 : i32
    %1 = arith.extui %0 : i1 to i32
    %c0_i32_0 = arith.constant 0 : i32
    %2 = arith.cmpi ne, %1, %c0_i32_0 : i32
    scf.if %2 {
      %c0_96 = arith.constant 0 : index
      %c0_97 = arith.constant 0 : index
      %c0_98 = arith.constant 0 : index
      %322 = vector.load %arg2[%c0_96, %c0_97, %c0_98] : memref<2x8x192xf32, #tpu.memory_space<vmem>>, vector<2x8x192xf32>
      %323 = vector.shape_cast %322 : vector<2x8x192xf32> to vector<16x192xf32>
      %324 = arith.truncf %323 : vector<16x192xf32> to vector<16x192xbf16>
      %c0_99 = arith.constant 0 : index
      %c0_100 = arith.constant 0 : index
      %325 = vector.load %arg3[%c0_99, %c0_100] : memref<192x64xbf16, #tpu.memory_space<vmem>>, vector<192x64xbf16>
      %cst_101 = arith.constant dense<0.000000e+00> : vector<16x64xf32>
      %326 = tpu.matmul %324, %325, %cst_101 {dimension_numbers = #tpu.dot_dimension_numbers<[1], [0], [0], [1], [0, 0, 1, 1], [], []>} : vector<16x192xbf16>, vector<192x64xbf16>, vector<16x64xf32> -> vector<16x64xf32>
      %c0_102 = arith.constant 0 : index
      %c0_103 = arith.constant 0 : index
      %327 = vector.load %arg4[%c0_102, %c0_103] : memref<1x64xf32, #tpu.memory_space<vmem>>, vector<1x64xf32>
      %328 = vector.broadcast %327 : vector<1x64xf32> to vector<16x64xf32>
      %329 = arith.addf %326, %328 : vector<16x64xf32>
      %330 = vector.shape_cast %329 : vector<16x64xf32> to vector<2x8x64xf32>
      %c0_104 = arith.constant 0 : index
      %c0_105 = arith.constant 0 : index
      %331 = vector.load %arg5[%c0_104, %c0_105] : memref<8x64xf32, #tpu.memory_space<vmem>>, vector<8x64xf32>
      %332 = vector.shape_cast %331 : vector<8x64xf32> to vector<1x8x64xf32>
      %333 = vector.broadcast %332 : vector<1x8x64xf32> to vector<2x8x64xf32>
      %334 = arith.addf %330, %333 : vector<2x8x64xf32>
      %c0_106 = arith.constant 0 : index
      %c0_107 = arith.constant 0 : index
      %c0_108 = arith.constant 0 : index
      %335 = vector.load %arg17[%c0_106, %c0_107, %c0_108] : memref<2x8x64xf32, #tpu.memory_space<vmem>>, vector<2x8x64xf32>
      tpu.vector_store %arg17[%c0_106, %c0_107, %c0_108], %334 {strides = array<i32>} : memref<2x8x64xf32, #tpu.memory_space<vmem>>, vector<2x8x64xf32>,
      %cst_109 = arith.constant dense<0.000000e+00> : vector<2x64xf32>
      %336 = vector.multi_reduction <add>, %330, %cst_109 [1] : vector<2x8x64xf32> to vector<2x64xf32>
      %cst_110 = arith.constant 8.000000e+00 : f32
      %337 = vector.broadcast %cst_110 : f32 to vector<2x64xf32>
      %338 = arith.divf %336, %337 : vector<2x64xf32>
      %339 = vector.shape_cast %338 : vector<2x64xf32> to vector<2x1x64xf32>
      %c0_111 = arith.constant 0 : index
      %c0_112 = arith.constant 0 : index
      %c0_113 = arith.constant 0 : index
      %340 = vector.load %arg15[%c0_111, %c0_112, %c0_113] : memref<2x1x64xf32, #tpu.memory_space<vmem>>, vector<2x1x64xf32>
      tpu.vector_store %arg15[%c0_111, %c0_112, %c0_113], %339 {strides = array<i32>} : memref<2x1x64xf32, #tpu.memory_space<vmem>>, vector<2x1x64xf32>,
      %341 = vector.shape_cast %338 : vector<2x64xf32> to vector<2x1x64xf32>
      %c0_114 = arith.constant 0 : index
      %c0_115 = arith.constant 0 : index
      %342 = vector.load %arg6[%c0_114, %c0_115] : memref<8x64xf32, #tpu.memory_space<vmem>>, vector<8x64xf32>
      %343 = vector.shape_cast %342 : vector<8x64xf32> to vector<1x8x64xf32>
      %344 = vector.broadcast %341 : vector<2x1x64xf32> to vector<2x8x64xf32>
      %345 = vector.broadcast %343 : vector<1x8x64xf32> to vector<2x8x64xf32>
      %346 = arith.addf %344, %345 : vector<2x8x64xf32>
      %347 = vector.shape_cast %346 : vector<2x8x64xf32> to vector<16x64xf32>
      %c0_116 = arith.constant 0 : index
      %c0_117 = arith.constant 0 : index
      %348 = vector.load %arg16[%c0_116, %c0_117] : memref<16x64xf32, #tpu.memory_space<vmem>>, vector<16x64xf32>
      tpu.vector_store %arg16[%c0_116, %c0_117], %347 {strides = array<i32>} : memref<16x64xf32, #tpu.memory_space<vmem>>, vector<16x64xf32>,
    } else {
    }
    %c0 = arith.constant 0 : index
    %c0_1 = arith.constant 0 : index
    %c0_2 = arith.constant 0 : index
    %3 = vector.load %arg10[%c0, %c0_1, %c0_2] : memref<1x16x64xf32, #tpu.memory_space<vmem>>, vector<1x16x64xf32>
    %4 = vector.shape_cast %3 : vector<1x16x64xf32> to vector<16x64xf32>
    %5 = tpu.iota {dimensions = array<i32: 1>} : vector<1x8xi32>
    %c7_i32 = arith.constant 7 : i32
    %6 = vector.broadcast %c7_i32 : i32 to vector<1x8xi32>
    %7 = arith.cmpi slt, %5, %6 : vector<1x8xi32>
    %cst = arith.constant 0.000000e+00 : f32
    %cst_3 = arith.constant -1.000000e+30 : f32
    %8 = vector.broadcast %cst : f32 to vector<1x8xf32>
    %9 = vector.broadcast %cst_3 : f32 to vector<1x8xf32>
    %10 = arith.select %7, %8, %9 : vector<1x8xi1>, vector<1x8xf32>
    %c0_4 = arith.constant 0 : index
    %c0_5 = arith.constant 0 : index
    %11 = vector.load %arg16[%c0_4, %c0_5] : memref<16x64xf32, #tpu.memory_space<vmem>>, vector<16x64xf32>
    %c0_6 = arith.constant 0 : index
    %c0_7 = arith.constant 0 : index
    %c0_8 = arith.constant 0 : index
    %12 = vector.load %arg17[%c0_6, %c0_7, %c0_8] : memref<2x8x64xf32, #tpu.memory_space<vmem>>, vector<2x8x64xf32>
    %13 = vector.shape_cast %12 : vector<2x8x64xf32> to vector<16x64xf32>
    %c0_9 = arith.constant 0 : index
    %c0_10 = arith.constant 0 : index
    %c0_11 = arith.constant 0 : index
    %14 = vector.load %arg7[%c0_9, %c0_10, %c0_11] : memref<8x64x64xbf16, #tpu.memory_space<vmem>>, vector<1x64x64xbf16>
    %15 = vector.shape_cast %14 : vector<1x64x64xbf16> to vector<64x64xbf16>
    %16 = vector.extract_strided_slice %4 {offsets = [0, 0], sizes = [1, 64], strides = [1, 1]} : vector<16x64xf32> to vector<1x64xf32>
    %17 = arith.truncf %11 : vector<16x64xf32> to vector<16x64xbf16>
    %cst_12 = arith.constant dense<0.000000e+00> : vector<16x64xf32>
    %18 = tpu.matmul %17, %15, %cst_12 {dimension_numbers = #tpu.dot_dimension_numbers<[1], [0], [0], [1], [0, 0, 1, 1], [], []>} : vector<16x64xbf16>, vector<64x64xbf16>, vector<16x64xf32> -> vector<16x64xf32>
    %19 = vector.broadcast %16 : vector<1x64xf32> to vector<16x64xf32>
    %20 = arith.addf %18, %19 : vector<16x64xf32>
    %c1 = arith.constant 1 : index
    %c0_13 = arith.constant 0 : index
    %c0_14 = arith.constant 0 : index
    %21 = vector.load %arg7[%c1, %c0_13, %c0_14] : memref<8x64x64xbf16, #tpu.memory_space<vmem>>, vector<1x64x64xbf16>
    %22 = vector.shape_cast %21 : vector<1x64x64xbf16> to vector<64x64xbf16>
    %23 = vector.extract_strided_slice %4 {offsets = [1, 0], sizes = [1, 64], strides = [1, 1]} : vector<16x64xf32> to vector<1x64xf32>
    %24 = arith.truncf %11 : vector<16x64xf32> to vector<16x64xbf16>
    %cst_15 = arith.constant dense<0.000000e+00> : vector<16x64xf32>
    %25 = tpu.matmul %24, %22, %cst_15 {dimension_numbers = #tpu.dot_dimension_numbers<[1], [0], [0], [1], [0, 0, 1, 1], [], []>} : vector<16x64xbf16>, vector<64x64xbf16>, vector<16x64xf32> -> vector<16x64xf32>
    %26 = vector.broadcast %23 : vector<1x64xf32> to vector<16x64xf32>
    %27 = arith.addf %25, %26 : vector<16x64xf32>
    %c2 = arith.constant 2 : index
    %c0_16 = arith.constant 0 : index
    %c0_17 = arith.constant 0 : index
    %28 = vector.load %arg7[%c2, %c0_16, %c0_17] : memref<8x64x64xbf16, #tpu.memory_space<vmem>>, vector<1x64x64xbf16>
    %29 = vector.shape_cast %28 : vector<1x64x64xbf16> to vector<64x64xbf16>
    %30 = vector.extract_strided_slice %4 {offsets = [2, 0], sizes = [1, 64], strides = [1, 1]} : vector<16x64xf32> to vector<1x64xf32>
    %31 = arith.truncf %11 : vector<16x64xf32> to vector<16x64xbf16>
    %cst_18 = arith.constant dense<0.000000e+00> : vector<16x64xf32>
    %32 = tpu.matmul %31, %29, %cst_18 {dimension_numbers = #tpu.dot_dimension_numbers<[1], [0], [0], [1], [0, 0, 1, 1], [], []>} : vector<16x64xbf16>, vector<64x64xbf16>, vector<16x64xf32> -> vector<16x64xf32>
    %33 = vector.broadcast %30 : vector<1x64xf32> to vector<16x64xf32>
    %34 = arith.addf %32, %33 : vector<16x64xf32>
    %35 = vector.shape_cast %20 : vector<16x64xf32> to vector<2x8x64xf32>
    %36 = arith.truncf %35 : vector<2x8x64xf32> to vector<2x8x64xbf16>
    %37 = vector.shape_cast %27 : vector<16x64xf32> to vector<2x8x64xf32>
    %38 = arith.truncf %37 : vector<2x8x64xf32> to vector<2x8x64xbf16>
    %39 = vector.shape_cast %34 : vector<16x64xf32> to vector<2x8x64xf32>
    %40 = arith.truncf %39 : vector<2x8x64xf32> to vector<2x8x64xbf16>
    %41 = vector.extract_strided_slice %36 {offsets = [0, 0, 0], sizes = [2, 8, 16], strides = [1, 1, 1]} : vector<2x8x64xbf16> to vector<2x8x16xbf16>
    %42 = vector.extract_strided_slice %38 {offsets = [0, 0, 0], sizes = [2, 8, 16], strides = [1, 1, 1]} : vector<2x8x64xbf16> to vector<2x8x16xbf16>
    "tpu.trace_start"() <{level = 10 : i32, message = "bqd,bkd->bqk"}> : () -> ()
    %cst_19 = arith.constant dense<0.000000e+00> : vector<2x8x8xf32>
    %43 = tpu.matmul %41, %42, %cst_19 {dimension_numbers = #tpu.dot_dimension_numbers<[2], [2], [1], [1], [0, 0, 0, 1, 1, 1], [0], [0]>} : vector<2x8x16xbf16>, vector<2x8x16xbf16>, vector<2x8x8xf32> -> vector<2x8x8xf32>
    "tpu.trace_stop"() : () -> ()
    %44 = vector.shape_cast %10 : vector<1x8xf32> to vector<1x1x8xf32>
    %45 = vector.broadcast %44 : vector<1x1x8xf32> to vector<2x8x8xf32>
    %46 = arith.addf %43, %45 : vector<2x8x8xf32>
    %cst_20 = arith.constant dense<0xFF800000> : vector<2x8xf32>
    %47 = vector.multi_reduction <maximumf>, %46, %cst_20 [2] : vector<2x8x8xf32> to vector<2x8xf32>
    %48 = vector.shape_cast %47 : vector<2x8xf32> to vector<2x8x1xf32>
    %49 = vector.broadcast %48 : vector<2x8x1xf32> to vector<2x8x8xf32>
    %50 = arith.subf %46, %49 : vector<2x8x8xf32>
    %51 = math.exp %50 : vector<2x8x8xf32>
    %cst_21 = arith.constant dense<0.000000e+00> : vector<2x8xf32>
    %52 = vector.multi_reduction <add>, %51, %cst_21 [2] : vector<2x8x8xf32> to vector<2x8xf32>
    %53 = vector.shape_cast %52 : vector<2x8xf32> to vector<2x8x1xf32>
    %54 = tpu.reciprocal %53 {approx = true} : vector<2x8x1xf32> -> vector<2x8x1xf32>
    %55 = vector.broadcast %54 : vector<2x8x1xf32> to vector<2x8x8xf32>
    %56 = arith.mulf %51, %55 : vector<2x8x8xf32>
    %57 = arith.truncf %56 : vector<2x8x8xf32> to vector<2x8x8xbf16>
    %58 = vector.extract_strided_slice %40 {offsets = [0, 0, 0], sizes = [2, 8, 16], strides = [1, 1, 1]} : vector<2x8x64xbf16> to vector<2x8x16xbf16>
    "tpu.trace_start"() <{level = 10 : i32, message = "bqk,bkd->bqd"}> : () -> ()
    %cst_22 = arith.constant dense<0.000000e+00> : vector<2x8x16xf32>
    %59 = tpu.matmul %57, %58, %cst_22 {dimension_numbers = #tpu.dot_dimension_numbers<[2], [1], [1], [2], [0, 0, 0, 1, 1, 2], [0], [0]>} : vector<2x8x8xbf16>, vector<2x8x16xbf16>, vector<2x8x16xf32> -> vector<2x8x16xf32>
    "tpu.trace_stop"() : () -> ()
    %60 = vector.extract_strided_slice %36 {offsets = [0, 0, 16], sizes = [2, 8, 16], strides = [1, 1, 1]} : vector<2x8x64xbf16> to vector<2x8x16xbf16>
    %61 = vector.extract_strided_slice %38 {offsets = [0, 0, 16], sizes = [2, 8, 16], strides = [1, 1, 1]} : vector<2x8x64xbf16> to vector<2x8x16xbf16>
    "tpu.trace_start"() <{level = 10 : i32, message = "bqd,bkd->bqk"}> : () -> ()
    %cst_23 = arith.constant dense<0.000000e+00> : vector<2x8x8xf32>
    %62 = tpu.matmul %60, %61, %cst_23 {dimension_numbers = #tpu.dot_dimension_numbers<[2], [2], [1], [1], [0, 0, 0, 1, 1, 1], [0], [0]>} : vector<2x8x16xbf16>, vector<2x8x16xbf16>, vector<2x8x8xf32> -> vector<2x8x8xf32>
    "tpu.trace_stop"() : () -> ()
    %63 = vector.shape_cast %10 : vector<1x8xf32> to vector<1x1x8xf32>
    %64 = vector.broadcast %63 : vector<1x1x8xf32> to vector<2x8x8xf32>
    %65 = arith.addf %62, %64 : vector<2x8x8xf32>
    %cst_24 = arith.constant dense<0xFF800000> : vector<2x8xf32>
    %66 = vector.multi_reduction <maximumf>, %65, %cst_24 [2] : vector<2x8x8xf32> to vector<2x8xf32>
    %67 = vector.shape_cast %66 : vector<2x8xf32> to vector<2x8x1xf32>
    %68 = vector.broadcast %67 : vector<2x8x1xf32> to vector<2x8x8xf32>
    %69 = arith.subf %65, %68 : vector<2x8x8xf32>
    %70 = math.exp %69 : vector<2x8x8xf32>
    %cst_25 = arith.constant dense<0.000000e+00> : vector<2x8xf32>
    %71 = vector.multi_reduction <add>, %70, %cst_25 [2] : vector<2x8x8xf32> to vector<2x8xf32>
    %72 = vector.shape_cast %71 : vector<2x8xf32> to vector<2x8x1xf32>
    %73 = tpu.reciprocal %72 {approx = true} : vector<2x8x1xf32> -> vector<2x8x1xf32>
    %74 = vector.broadcast %73 : vector<2x8x1xf32> to vector<2x8x8xf32>
    %75 = arith.mulf %70, %74 : vector<2x8x8xf32>
    %76 = arith.truncf %75 : vector<2x8x8xf32> to vector<2x8x8xbf16>
    %77 = vector.extract_strided_slice %40 {offsets = [0, 0, 16], sizes = [2, 8, 16], strides = [1, 1, 1]} : vector<2x8x64xbf16> to vector<2x8x16xbf16>
    "tpu.trace_start"() <{level = 10 : i32, message = "bqk,bkd->bqd"}> : () -> ()
    %cst_26 = arith.constant dense<0.000000e+00> : vector<2x8x16xf32>
    %78 = tpu.matmul %76, %77, %cst_26 {dimension_numbers = #tpu.dot_dimension_numbers<[2], [1], [1], [2], [0, 0, 0, 1, 1, 2], [0], [0]>} : vector<2x8x8xbf16>, vector<2x8x16xbf16>, vector<2x8x16xf32> -> vector<2x8x16xf32>
    "tpu.trace_stop"() : () -> ()
    %79 = vector.extract_strided_slice %36 {offsets = [0, 0, 32], sizes = [2, 8, 16], strides = [1, 1, 1]} : vector<2x8x64xbf16> to vector<2x8x16xbf16>
    %80 = vector.extract_strided_slice %38 {offsets = [0, 0, 32], sizes = [2, 8, 16], strides = [1, 1, 1]} : vector<2x8x64xbf16> to vector<2x8x16xbf16>
    "tpu.trace_start"() <{level = 10 : i32, message = "bqd,bkd->bqk"}> : () -> ()
    %cst_27 = arith.constant dense<0.000000e+00> : vector<2x8x8xf32>
    %81 = tpu.matmul %79, %80, %cst_27 {dimension_numbers = #tpu.dot_dimension_numbers<[2], [2], [1], [1], [0, 0, 0, 1, 1, 1], [0], [0]>} : vector<2x8x16xbf16>, vector<2x8x16xbf16>, vector<2x8x8xf32> -> vector<2x8x8xf32>
    "tpu.trace_stop"() : () -> ()
    %82 = vector.shape_cast %10 : vector<1x8xf32> to vector<1x1x8xf32>
    %83 = vector.broadcast %82 : vector<1x1x8xf32> to vector<2x8x8xf32>
    %84 = arith.addf %81, %83 : vector<2x8x8xf32>
    %cst_28 = arith.constant dense<0xFF800000> : vector<2x8xf32>
    %85 = vector.multi_reduction <maximumf>, %84, %cst_28 [2] : vector<2x8x8xf32> to vector<2x8xf32>
    %86 = vector.shape_cast %85 : vector<2x8xf32> to vector<2x8x1xf32>
    %87 = vector.broadcast %86 : vector<2x8x1xf32> to vector<2x8x8xf32>
    %88 = arith.subf %84, %87 : vector<2x8x8xf32>
    %89 = math.exp %88 : vector<2x8x8xf32>
    %cst_29 = arith.constant dense<0.000000e+00> : vector<2x8xf32>
    %90 = vector.multi_reduction <add>, %89, %cst_29 [2] : vector<2x8x8xf32> to vector<2x8xf32>
    %91 = vector.shape_cast %90 : vector<2x8xf32> to vector<2x8x1xf32>
    %92 = tpu.reciprocal %91 {approx = true} : vector<2x8x1xf32> -> vector<2x8x1xf32>
    %93 = vector.broadcast %92 : vector<2x8x1xf32> to vector<2x8x8xf32>
    %94 = arith.mulf %89, %93 : vector<2x8x8xf32>
    %95 = arith.truncf %94 : vector<2x8x8xf32> to vector<2x8x8xbf16>
    %96 = vector.extract_strided_slice %40 {offsets = [0, 0, 32], sizes = [2, 8, 16], strides = [1, 1, 1]} : vector<2x8x64xbf16> to vector<2x8x16xbf16>
    "tpu.trace_start"() <{level = 10 : i32, message = "bqk,bkd->bqd"}> : () -> ()
    %cst_30 = arith.constant dense<0.000000e+00> : vector<2x8x16xf32>
    %97 = tpu.matmul %95, %96, %cst_30 {dimension_numbers = #tpu.dot_dimension_numbers<[2], [1], [1], [2], [0, 0, 0, 1, 1, 2], [0], [0]>} : vector<2x8x8xbf16>, vector<2x8x16xbf16>, vector<2x8x16xf32> -> vector<2x8x16xf32>
    "tpu.trace_stop"() : () -> ()
    %98 = vector.extract_strided_slice %36 {offsets = [0, 0, 48], sizes = [2, 8, 16], strides = [1, 1, 1]} : vector<2x8x64xbf16> to vector<2x8x16xbf16>
    %99 = vector.extract_strided_slice %38 {offsets = [0, 0, 48], sizes = [2, 8, 16], strides = [1, 1, 1]} : vector<2x8x64xbf16> to vector<2x8x16xbf16>
    "tpu.trace_start"() <{level = 10 : i32, message = "bqd,bkd->bqk"}> : () -> ()
    %cst_31 = arith.constant dense<0.000000e+00> : vector<2x8x8xf32>
    %100 = tpu.matmul %98, %99, %cst_31 {dimension_numbers = #tpu.dot_dimension_numbers<[2], [2], [1], [1], [0, 0, 0, 1, 1, 1], [0], [0]>} : vector<2x8x16xbf16>, vector<2x8x16xbf16>, vector<2x8x8xf32> -> vector<2x8x8xf32>
    "tpu.trace_stop"() : () -> ()
    %101 = vector.shape_cast %10 : vector<1x8xf32> to vector<1x1x8xf32>
    %102 = vector.broadcast %101 : vector<1x1x8xf32> to vector<2x8x8xf32>
    %103 = arith.addf %100, %102 : vector<2x8x8xf32>
    %cst_32 = arith.constant dense<0xFF800000> : vector<2x8xf32>
    %104 = vector.multi_reduction <maximumf>, %103, %cst_32 [2] : vector<2x8x8xf32> to vector<2x8xf32>
    %105 = vector.shape_cast %104 : vector<2x8xf32> to vector<2x8x1xf32>
    %106 = vector.broadcast %105 : vector<2x8x1xf32> to vector<2x8x8xf32>
    %107 = arith.subf %103, %106 : vector<2x8x8xf32>
    %108 = math.exp %107 : vector<2x8x8xf32>
    %cst_33 = arith.constant dense<0.000000e+00> : vector<2x8xf32>
    %109 = vector.multi_reduction <add>, %108, %cst_33 [2] : vector<2x8x8xf32> to vector<2x8xf32>
    %110 = vector.shape_cast %109 : vector<2x8xf32> to vector<2x8x1xf32>
    %111 = tpu.reciprocal %110 {approx = true} : vector<2x8x1xf32> -> vector<2x8x1xf32>
    %112 = vector.broadcast %111 : vector<2x8x1xf32> to vector<2x8x8xf32>
    %113 = arith.mulf %108, %112 : vector<2x8x8xf32>
    %114 = arith.truncf %113 : vector<2x8x8xf32> to vector<2x8x8xbf16>
    %115 = vector.extract_strided_slice %40 {offsets = [0, 0, 48], sizes = [2, 8, 16], strides = [1, 1, 1]} : vector<2x8x64xbf16> to vector<2x8x16xbf16>
    "tpu.trace_start"() <{level = 10 : i32, message = "bqk,bkd->bqd"}> : () -> ()
    %cst_34 = arith.constant dense<0.000000e+00> : vector<2x8x16xf32>
    %116 = tpu.matmul %114, %115, %cst_34 {dimension_numbers = #tpu.dot_dimension_numbers<[2], [1], [1], [2], [0, 0, 0, 1, 1, 2], [0], [0]>} : vector<2x8x8xbf16>, vector<2x8x16xbf16>, vector<2x8x16xf32> -> vector<2x8x16xf32>
    "tpu.trace_stop"() : () -> ()
    %117 = tpu.concatenate %59, %78, %97, %116 in 2 : vector<2x8x16xf32>, vector<2x8x16xf32>, vector<2x8x16xf32>, vector<2x8x16xf32> -> vector<2x8x64xf32>
    %118 = vector.shape_cast %117 : vector<2x8x64xf32> to vector<16x64xf32>
    %c3 = arith.constant 3 : index
    %c0_35 = arith.constant 0 : index
    %c0_36 = arith.constant 0 : index
    %119 = vector.load %arg7[%c3, %c0_35, %c0_36] : memref<8x64x64xbf16, #tpu.memory_space<vmem>>, vector<1x64x64xbf16>
    %120 = vector.shape_cast %119 : vector<1x64x64xbf16> to vector<64x64xbf16>
    %121 = vector.extract_strided_slice %4 {offsets = [3, 0], sizes = [1, 64], strides = [1, 1]} : vector<16x64xf32> to vector<1x64xf32>
    %122 = arith.truncf %118 : vector<16x64xf32> to vector<16x64xbf16>
    %cst_37 = arith.constant dense<0.000000e+00> : vector<16x64xf32>
    %123 = tpu.matmul %122, %120, %cst_37 {dimension_numbers = #tpu.dot_dimension_numbers<[1], [0], [0], [1], [0, 0, 1, 1], [], []>} : vector<16x64xbf16>, vector<64x64xbf16>, vector<16x64xf32> -> vector<16x64xf32>
    %124 = vector.broadcast %121 : vector<1x64xf32> to vector<16x64xf32>
    %125 = arith.addf %123, %124 : vector<16x64xf32>
    %126 = arith.addf %11, %125 : vector<16x64xf32>
    %cst_38 = arith.constant dense<0.000000e+00> : vector<16xf32>
    %127 = vector.multi_reduction <add>, %126, %cst_38 [1] : vector<16x64xf32> to vector<16xf32>
    %128 = vector.shape_cast %127 : vector<16xf32> to vector<16x1xf32>
    %cst_39 = arith.constant 6.400000e+01 : f32
    %129 = vector.broadcast %cst_39 : f32 to vector<16x1xf32>
    %130 = arith.divf %128, %129 : vector<16x1xf32>
    %131 = vector.broadcast %130 : vector<16x1xf32> to vector<16x64xf32>
    %132 = arith.subf %126, %131 : vector<16x64xf32>
    %133 = arith.mulf %132, %132 : vector<16x64xf32>
    %cst_40 = arith.constant dense<0.000000e+00> : vector<16xf32>
    %134 = vector.multi_reduction <add>, %133, %cst_40 [1] : vector<16x64xf32> to vector<16xf32>
    %135 = vector.shape_cast %134 : vector<16xf32> to vector<16x1xf32>
    %cst_41 = arith.constant 6.400000e+01 : f32
    %136 = vector.broadcast %cst_41 : f32 to vector<16x1xf32>
    %137 = arith.divf %135, %136 : vector<16x1xf32>
    %138 = vector.broadcast %130 : vector<16x1xf32> to vector<16x64xf32>
    %139 = arith.subf %126, %138 : vector<16x64xf32>
    %cst_42 = arith.constant 9.99999974E-6 : f32
    %140 = vector.broadcast %cst_42 : f32 to vector<16x1xf32>
    %141 = arith.addf %137, %140 : vector<16x1xf32>
    %142 = math.rsqrt %141 : vector<16x1xf32>
    %143 = vector.broadcast %142 : vector<16x1xf32> to vector<16x64xf32>
    %144 = arith.mulf %139, %143 : vector<16x64xf32>
    %145 = vector.extract_strided_slice %4 {offsets = [4, 0], sizes = [1, 64], strides = [1, 1]} : vector<16x64xf32> to vector<1x64xf32>
    %146 = vector.broadcast %145 : vector<1x64xf32> to vector<16x64xf32>
    %147 = arith.mulf %144, %146 : vector<16x64xf32>
    %148 = vector.extract_strided_slice %4 {offsets = [5, 0], sizes = [1, 64], strides = [1, 1]} : vector<16x64xf32> to vector<1x64xf32>
    %149 = vector.broadcast %148 : vector<1x64xf32> to vector<16x64xf32>
    %150 = arith.addf %147, %149 : vector<16x64xf32>
    %c4 = arith.constant 4 : index
    %c0_43 = arith.constant 0 : index
    %c0_44 = arith.constant 0 : index
    %151 = vector.load %arg7[%c4, %c0_43, %c0_44] : memref<8x64x64xbf16, #tpu.memory_space<vmem>>, vector<1x64x64xbf16>
    %152 = vector.shape_cast %151 : vector<1x64x64xbf16> to vector<64x64xbf16>
    %153 = vector.extract_strided_slice %4 {offsets = [6, 0], sizes = [1, 64], strides = [1, 1]} : vector<16x64xf32> to vector<1x64xf32>
    %154 = arith.truncf %150 : vector<16x64xf32> to vector<16x64xbf16>
    %cst_45 = arith.constant dense<0.000000e+00> : vector<16x64xf32>
    %155 = tpu.matmul %154, %152, %cst_45 {dimension_numbers = #tpu.dot_dimension_numbers<[1], [0], [0], [1], [0, 0, 1, 1], [], []>} : vector<16x64xbf16>, vector<64x64xbf16>, vector<16x64xf32> -> vector<16x64xf32>
    %156 = vector.broadcast %153 : vector<1x64xf32> to vector<16x64xf32>
    %157 = arith.addf %155, %156 : vector<16x64xf32>
    %c5 = arith.constant 5 : index
    %c0_46 = arith.constant 0 : index
    %c0_47 = arith.constant 0 : index
    %158 = vector.load %arg7[%c5, %c0_46, %c0_47] : memref<8x64x64xbf16, #tpu.memory_space<vmem>>, vector<1x64x64xbf16>
    %159 = vector.shape_cast %158 : vector<1x64x64xbf16> to vector<64x64xbf16>
    %160 = vector.extract_strided_slice %4 {offsets = [7, 0], sizes = [1, 64], strides = [1, 1]} : vector<16x64xf32> to vector<1x64xf32>
    %161 = arith.truncf %13 : vector<16x64xf32> to vector<16x64xbf16>
    %cst_48 = arith.constant dense<0.000000e+00> : vector<16x64xf32>
    %162 = tpu.matmul %161, %159, %cst_48 {dimension_numbers = #tpu.dot_dimension_numbers<[1], [0], [0], [1], [0, 0, 1, 1], [], []>} : vector<16x64xbf16>, vector<64x64xbf16>, vector<16x64xf32> -> vector<16x64xf32>
    %163 = vector.broadcast %160 : vector<1x64xf32> to vector<16x64xf32>
    %164 = arith.addf %162, %163 : vector<16x64xf32>
    %c6 = arith.constant 6 : index
    %c0_49 = arith.constant 0 : index
    %c0_50 = arith.constant 0 : index
    %165 = vector.load %arg7[%c6, %c0_49, %c0_50] : memref<8x64x64xbf16, #tpu.memory_space<vmem>>, vector<1x64x64xbf16>
    %166 = vector.shape_cast %165 : vector<1x64x64xbf16> to vector<64x64xbf16>
    %167 = vector.extract_strided_slice %4 {offsets = [8, 0], sizes = [1, 64], strides = [1, 1]} : vector<16x64xf32> to vector<1x64xf32>
    %168 = arith.truncf %13 : vector<16x64xf32> to vector<16x64xbf16>
    %cst_51 = arith.constant dense<0.000000e+00> : vector<16x64xf32>
    %169 = tpu.matmul %168, %166, %cst_51 {dimension_numbers = #tpu.dot_dimension_numbers<[1], [0], [0], [1], [0, 0, 1, 1], [], []>} : vector<16x64xbf16>, vector<64x64xbf16>, vector<16x64xf32> -> vector<16x64xf32>
    %170 = vector.broadcast %167 : vector<1x64xf32> to vector<16x64xf32>
    %171 = arith.addf %169, %170 : vector<16x64xf32>
    %172 = vector.shape_cast %157 : vector<16x64xf32> to vector<2x8x64xf32>
    %173 = arith.truncf %172 : vector<2x8x64xf32> to vector<2x8x64xbf16>
    %174 = vector.shape_cast %164 : vector<16x64xf32> to vector<2x8x64xf32>
    %175 = arith.truncf %174 : vector<2x8x64xf32> to vector<2x8x64xbf16>
    %176 = vector.shape_cast %171 : vector<16x64xf32> to vector<2x8x64xf32>
    %177 = arith.truncf %176 : vector<2x8x64xf32> to vector<2x8x64xbf16>
    %178 = vector.extract_strided_slice %173 {offsets = [0, 0, 0], sizes = [2, 8, 16], strides = [1, 1, 1]} : vector<2x8x64xbf16> to vector<2x8x16xbf16>
    %179 = vector.extract_strided_slice %175 {offsets = [0, 0, 0], sizes = [2, 8, 16], strides = [1, 1, 1]} : vector<2x8x64xbf16> to vector<2x8x16xbf16>
    "tpu.trace_start"() <{level = 10 : i32, message = "bqd,bkd->bqk"}> : () -> ()
    %cst_52 = arith.constant dense<0.000000e+00> : vector<2x8x8xf32>
    %180 = tpu.matmul %178, %179, %cst_52 {dimension_numbers = #tpu.dot_dimension_numbers<[2], [2], [1], [1], [0, 0, 0, 1, 1, 1], [0], [0]>} : vector<2x8x16xbf16>, vector<2x8x16xbf16>, vector<2x8x8xf32> -> vector<2x8x8xf32>
    "tpu.trace_stop"() : () -> ()
    %cst_53 = arith.constant dense<0xFF800000> : vector<2x8xf32>
    %181 = vector.multi_reduction <maximumf>, %180, %cst_53 [2] : vector<2x8x8xf32> to vector<2x8xf32>
    %182 = vector.shape_cast %181 : vector<2x8xf32> to vector<2x8x1xf32>
    %183 = vector.broadcast %182 : vector<2x8x1xf32> to vector<2x8x8xf32>
    %184 = arith.subf %180, %183 : vector<2x8x8xf32>
    %185 = math.exp %184 : vector<2x8x8xf32>
    %cst_54 = arith.constant dense<0.000000e+00> : vector<2x8xf32>
    %186 = vector.multi_reduction <add>, %185, %cst_54 [2] : vector<2x8x8xf32> to vector<2x8xf32>
    %187 = vector.shape_cast %186 : vector<2x8xf32> to vector<2x8x1xf32>
    %188 = tpu.reciprocal %187 {approx = true} : vector<2x8x1xf32> -> vector<2x8x1xf32>
    %189 = vector.broadcast %188 : vector<2x8x1xf32> to vector<2x8x8xf32>
    %190 = arith.mulf %185, %189 : vector<2x8x8xf32>
    %191 = arith.truncf %190 : vector<2x8x8xf32> to vector<2x8x8xbf16>
    %192 = vector.extract_strided_slice %177 {offsets = [0, 0, 0], sizes = [2, 8, 16], strides = [1, 1, 1]} : vector<2x8x64xbf16> to vector<2x8x16xbf16>
    "tpu.trace_start"() <{level = 10 : i32, message = "bqk,bkd->bqd"}> : () -> ()
    %cst_55 = arith.constant dense<0.000000e+00> : vector<2x8x16xf32>
    %193 = tpu.matmul %191, %192, %cst_55 {dimension_numbers = #tpu.dot_dimension_numbers<[2], [1], [1], [2], [0, 0, 0, 1, 1, 2], [0], [0]>} : vector<2x8x8xbf16>, vector<2x8x16xbf16>, vector<2x8x16xf32> -> vector<2x8x16xf32>
    "tpu.trace_stop"() : () -> ()
    %194 = vector.extract_strided_slice %173 {offsets = [0, 0, 16], sizes = [2, 8, 16], strides = [1, 1, 1]} : vector<2x8x64xbf16> to vector<2x8x16xbf16>
    %195 = vector.extract_strided_slice %175 {offsets = [0, 0, 16], sizes = [2, 8, 16], strides = [1, 1, 1]} : vector<2x8x64xbf16> to vector<2x8x16xbf16>
    "tpu.trace_start"() <{level = 10 : i32, message = "bqd,bkd->bqk"}> : () -> ()
    %cst_56 = arith.constant dense<0.000000e+00> : vector<2x8x8xf32>
    %196 = tpu.matmul %194, %195, %cst_56 {dimension_numbers = #tpu.dot_dimension_numbers<[2], [2], [1], [1], [0, 0, 0, 1, 1, 1], [0], [0]>} : vector<2x8x16xbf16>, vector<2x8x16xbf16>, vector<2x8x8xf32> -> vector<2x8x8xf32>
    "tpu.trace_stop"() : () -> ()
    %cst_57 = arith.constant dense<0xFF800000> : vector<2x8xf32>
    %197 = vector.multi_reduction <maximumf>, %196, %cst_57 [2] : vector<2x8x8xf32> to vector<2x8xf32>
    %198 = vector.shape_cast %197 : vector<2x8xf32> to vector<2x8x1xf32>
    %199 = vector.broadcast %198 : vector<2x8x1xf32> to vector<2x8x8xf32>
    %200 = arith.subf %196, %199 : vector<2x8x8xf32>
    %201 = math.exp %200 : vector<2x8x8xf32>
    %cst_58 = arith.constant dense<0.000000e+00> : vector<2x8xf32>
    %202 = vector.multi_reduction <add>, %201, %cst_58 [2] : vector<2x8x8xf32> to vector<2x8xf32>
    %203 = vector.shape_cast %202 : vector<2x8xf32> to vector<2x8x1xf32>
    %204 = tpu.reciprocal %203 {approx = true} : vector<2x8x1xf32> -> vector<2x8x1xf32>
    %205 = vector.broadcast %204 : vector<2x8x1xf32> to vector<2x8x8xf32>
    %206 = arith.mulf %201, %205 : vector<2x8x8xf32>
    %207 = arith.truncf %206 : vector<2x8x8xf32> to vector<2x8x8xbf16>
    %208 = vector.extract_strided_slice %177 {offsets = [0, 0, 16], sizes = [2, 8, 16], strides = [1, 1, 1]} : vector<2x8x64xbf16> to vector<2x8x16xbf16>
    "tpu.trace_start"() <{level = 10 : i32, message = "bqk,bkd->bqd"}> : () -> ()
    %cst_59 = arith.constant dense<0.000000e+00> : vector<2x8x16xf32>
    %209 = tpu.matmul %207, %208, %cst_59 {dimension_numbers = #tpu.dot_dimension_numbers<[2], [1], [1], [2], [0, 0, 0, 1, 1, 2], [0], [0]>} : vector<2x8x8xbf16>, vector<2x8x16xbf16>, vector<2x8x16xf32> -> vector<2x8x16xf32>
    "tpu.trace_stop"() : () -> ()
    %210 = vector.extract_strided_slice %173 {offsets = [0, 0, 32], sizes = [2, 8, 16], strides = [1, 1, 1]} : vector<2x8x64xbf16> to vector<2x8x16xbf16>
    %211 = vector.extract_strided_slice %175 {offsets = [0, 0, 32], sizes = [2, 8, 16], strides = [1, 1, 1]} : vector<2x8x64xbf16> to vector<2x8x16xbf16>
    "tpu.trace_start"() <{level = 10 : i32, message = "bqd,bkd->bqk"}> : () -> ()
    %cst_60 = arith.constant dense<0.000000e+00> : vector<2x8x8xf32>
    %212 = tpu.matmul %210, %211, %cst_60 {dimension_numbers = #tpu.dot_dimension_numbers<[2], [2], [1], [1], [0, 0, 0, 1, 1, 1], [0], [0]>} : vector<2x8x16xbf16>, vector<2x8x16xbf16>, vector<2x8x8xf32> -> vector<2x8x8xf32>
    "tpu.trace_stop"() : () -> ()
    %cst_61 = arith.constant dense<0xFF800000> : vector<2x8xf32>
    %213 = vector.multi_reduction <maximumf>, %212, %cst_61 [2] : vector<2x8x8xf32> to vector<2x8xf32>
    %214 = vector.shape_cast %213 : vector<2x8xf32> to vector<2x8x1xf32>
    %215 = vector.broadcast %214 : vector<2x8x1xf32> to vector<2x8x8xf32>
    %216 = arith.subf %212, %215 : vector<2x8x8xf32>
    %217 = math.exp %216 : vector<2x8x8xf32>
    %cst_62 = arith.constant dense<0.000000e+00> : vector<2x8xf32>
    %218 = vector.multi_reduction <add>, %217, %cst_62 [2] : vector<2x8x8xf32> to vector<2x8xf32>
    %219 = vector.shape_cast %218 : vector<2x8xf32> to vector<2x8x1xf32>
    %220 = tpu.reciprocal %219 {approx = true} : vector<2x8x1xf32> -> vector<2x8x1xf32>
    %221 = vector.broadcast %220 : vector<2x8x1xf32> to vector<2x8x8xf32>
    %222 = arith.mulf %217, %221 : vector<2x8x8xf32>
    %223 = arith.truncf %222 : vector<2x8x8xf32> to vector<2x8x8xbf16>
    %224 = vector.extract_strided_slice %177 {offsets = [0, 0, 32], sizes = [2, 8, 16], strides = [1, 1, 1]} : vector<2x8x64xbf16> to vector<2x8x16xbf16>
    "tpu.trace_start"() <{level = 10 : i32, message = "bqk,bkd->bqd"}> : () -> ()
    %cst_63 = arith.constant dense<0.000000e+00> : vector<2x8x16xf32>
    %225 = tpu.matmul %223, %224, %cst_63 {dimension_numbers = #tpu.dot_dimension_numbers<[2], [1], [1], [2], [0, 0, 0, 1, 1, 2], [0], [0]>} : vector<2x8x8xbf16>, vector<2x8x16xbf16>, vector<2x8x16xf32> -> vector<2x8x16xf32>
    "tpu.trace_stop"() : () -> ()
    %226 = vector.extract_strided_slice %173 {offsets = [0, 0, 48], sizes = [2, 8, 16], strides = [1, 1, 1]} : vector<2x8x64xbf16> to vector<2x8x16xbf16>
    %227 = vector.extract_strided_slice %175 {offsets = [0, 0, 48], sizes = [2, 8, 16], strides = [1, 1, 1]} : vector<2x8x64xbf16> to vector<2x8x16xbf16>
    "tpu.trace_start"() <{level = 10 : i32, message = "bqd,bkd->bqk"}> : () -> ()
    %cst_64 = arith.constant dense<0.000000e+00> : vector<2x8x8xf32>
    %228 = tpu.matmul %226, %227, %cst_64 {dimension_numbers = #tpu.dot_dimension_numbers<[2], [2], [1], [1], [0, 0, 0, 1, 1, 1], [0], [0]>} : vector<2x8x16xbf16>, vector<2x8x16xbf16>, vector<2x8x8xf32> -> vector<2x8x8xf32>
    "tpu.trace_stop"() : () -> ()
    %cst_65 = arith.constant dense<0xFF800000> : vector<2x8xf32>
    %229 = vector.multi_reduction <maximumf>, %228, %cst_65 [2] : vector<2x8x8xf32> to vector<2x8xf32>
    %230 = vector.shape_cast %229 : vector<2x8xf32> to vector<2x8x1xf32>
    %231 = vector.broadcast %230 : vector<2x8x1xf32> to vector<2x8x8xf32>
    %232 = arith.subf %228, %231 : vector<2x8x8xf32>
    %233 = math.exp %232 : vector<2x8x8xf32>
    %cst_66 = arith.constant dense<0.000000e+00> : vector<2x8xf32>
    %234 = vector.multi_reduction <add>, %233, %cst_66 [2] : vector<2x8x8xf32> to vector<2x8xf32>
    %235 = vector.shape_cast %234 : vector<2x8xf32> to vector<2x8x1xf32>
    %236 = tpu.reciprocal %235 {approx = true} : vector<2x8x1xf32> -> vector<2x8x1xf32>
    %237 = vector.broadcast %236 : vector<2x8x1xf32> to vector<2x8x8xf32>
    %238 = arith.mulf %233, %237 : vector<2x8x8xf32>
    %239 = arith.truncf %238 : vector<2x8x8xf32> to vector<2x8x8xbf16>
    %240 = vector.extract_strided_slice %177 {offsets = [0, 0, 48], sizes = [2, 8, 16], strides = [1, 1, 1]} : vector<2x8x64xbf16> to vector<2x8x16xbf16>
    "tpu.trace_start"() <{level = 10 : i32, message = "bqk,bkd->bqd"}> : () -> ()
    %cst_67 = arith.constant dense<0.000000e+00> : vector<2x8x16xf32>
    %241 = tpu.matmul %239, %240, %cst_67 {dimension_numbers = #tpu.dot_dimension_numbers<[2], [1], [1], [2], [0, 0, 0, 1, 1, 2], [0], [0]>} : vector<2x8x8xbf16>, vector<2x8x16xbf16>, vector<2x8x16xf32> -> vector<2x8x16xf32>
    "tpu.trace_stop"() : () -> ()
    %242 = tpu.concatenate %193, %209, %225, %241 in 2 : vector<2x8x16xf32>, vector<2x8x16xf32>, vector<2x8x16xf32>, vector<2x8x16xf32> -> vector<2x8x64xf32>
    %243 = vector.shape_cast %242 : vector<2x8x64xf32> to vector<16x64xf32>
    %c7 = arith.constant 7 : index
    %c0_68 = arith.constant 0 : index
    %c0_69 = arith.constant 0 : index
    %244 = vector.load %arg7[%c7, %c0_68, %c0_69] : memref<8x64x64xbf16, #tpu.memory_space<vmem>>, vector<1x64x64xbf16>
    %245 = vector.shape_cast %244 : vector<1x64x64xbf16> to vector<64x64xbf16>
    %246 = vector.extract_strided_slice %4 {offsets = [9, 0], sizes = [1, 64], strides = [1, 1]} : vector<16x64xf32> to vector<1x64xf32>
    %247 = arith.truncf %243 : vector<16x64xf32> to vector<16x64xbf16>
    %cst_70 = arith.constant dense<0.000000e+00> : vector<16x64xf32>
    %248 = tpu.matmul %247, %245, %cst_70 {dimension_numbers = #tpu.dot_dimension_numbers<[1], [0], [0], [1], [0, 0, 1, 1], [], []>} : vector<16x64xbf16>, vector<64x64xbf16>, vector<16x64xf32> -> vector<16x64xf32>
    %249 = vector.broadcast %246 : vector<1x64xf32> to vector<16x64xf32>
    %250 = arith.addf %248, %249 : vector<16x64xf32>
    %251 = arith.addf %150, %250 : vector<16x64xf32>
    %cst_71 = arith.constant dense<0.000000e+00> : vector<16xf32>
    %252 = vector.multi_reduction <add>, %251, %cst_71 [1] : vector<16x64xf32> to vector<16xf32>
    %253 = vector.shape_cast %252 : vector<16xf32> to vector<16x1xf32>
    %cst_72 = arith.constant 6.400000e+01 : f32
    %254 = vector.broadcast %cst_72 : f32 to vector<16x1xf32>
    %255 = arith.divf %253, %254 : vector<16x1xf32>
    %256 = vector.broadcast %255 : vector<16x1xf32> to vector<16x64xf32>
    %257 = arith.subf %251, %256 : vector<16x64xf32>
    %258 = arith.mulf %257, %257 : vector<16x64xf32>
    %cst_73 = arith.constant dense<0.000000e+00> : vector<16xf32>
    %259 = vector.multi_reduction <add>, %258, %cst_73 [1] : vector<16x64xf32> to vector<16xf32>
    %260 = vector.shape_cast %259 : vector<16xf32> to vector<16x1xf32>
    %cst_74 = arith.constant 6.400000e+01 : f32
    %261 = vector.broadcast %cst_74 : f32 to vector<16x1xf32>
    %262 = arith.divf %260, %261 : vector<16x1xf32>
    %263 = vector.broadcast %255 : vector<16x1xf32> to vector<16x64xf32>
    %264 = arith.subf %251, %263 : vector<16x64xf32>
    %cst_75 = arith.constant 9.99999974E-6 : f32
    %265 = vector.broadcast %cst_75 : f32 to vector<16x1xf32>
    %266 = arith.addf %262, %265 : vector<16x1xf32>
    %267 = math.rsqrt %266 : vector<16x1xf32>
    %268 = vector.broadcast %267 : vector<16x1xf32> to vector<16x64xf32>
    %269 = arith.mulf %264, %268 : vector<16x64xf32>
    %270 = vector.extract_strided_slice %4 {offsets = [10, 0], sizes = [1, 64], strides = [1, 1]} : vector<16x64xf32> to vector<1x64xf32>
    %271 = vector.broadcast %270 : vector<1x64xf32> to vector<16x64xf32>
    %272 = arith.mulf %269, %271 : vector<16x64xf32>
    %273 = vector.extract_strided_slice %4 {offsets = [11, 0], sizes = [1, 64], strides = [1, 1]} : vector<16x64xf32> to vector<1x64xf32>
    %274 = vector.broadcast %273 : vector<1x64xf32> to vector<16x64xf32>
    %275 = arith.addf %272, %274 : vector<16x64xf32>
    %c0_76 = arith.constant 0 : index
    %c0_77 = arith.constant 0 : index
    %c0_78 = arith.constant 0 : index
    %276 = vector.load %arg8[%c0_76, %c0_77, %c0_78] : memref<1x64x256xbf16, #tpu.memory_space<vmem>>, vector<1x64x256xbf16>
    %277 = vector.shape_cast %276 : vector<1x64x256xbf16> to vector<64x256xbf16>
    %c0_79 = arith.constant 0 : index
    %c0_80 = arith.constant 0 : index
    %c0_81 = arith.constant 0 : index
    %278 = vector.load %arg11[%c0_79, %c0_80, %c0_81] : memref<1x1x256xf32, #tpu.memory_space<vmem>>, vector<1x1x256xf32>
    %279 = vector.shape_cast %278 : vector<1x1x256xf32> to vector<1x256xf32>
    %280 = arith.truncf %275 : vector<16x64xf32> to vector<16x64xbf16>
    %cst_82 = arith.constant dense<0.000000e+00> : vector<16x256xf32>
    %281 = tpu.matmul %280, %277, %cst_82 {dimension_numbers = #tpu.dot_dimension_numbers<[1], [0], [0], [1], [0, 0, 1, 1], [], []>} : vector<16x64xbf16>, vector<64x256xbf16>, vector<16x256xf32> -> vector<16x256xf32>
    %282 = vector.broadcast %279 : vector<1x256xf32> to vector<16x256xf32>
    %283 = arith.addf %281, %282 : vector<16x256xf32>
    %cst_83 = arith.constant 0.000000e+00 : f32
    %284 = vector.broadcast %cst_83 : f32 to vector<16x256xf32>
    %285 = arith.maximumf %283, %284 : vector<16x256xf32>
    %c0_84 = arith.constant 0 : index
    %c0_85 = arith.constant 0 : index
    %c0_86 = arith.constant 0 : index
    %286 = vector.load %arg9[%c0_84, %c0_85, %c0_86] : memref<1x256x64xbf16, #tpu.memory_space<vmem>>, vector<1x256x64xbf16>
    %287 = vector.shape_cast %286 : vector<1x256x64xbf16> to vector<256x64xbf16>
    %288 = vector.extract_strided_slice %4 {offsets = [12, 0], sizes = [1, 64], strides = [1, 1]} : vector<16x64xf32> to vector<1x64xf32>
    %289 = arith.truncf %285 : vector<16x256xf32> to vector<16x256xbf16>
    %cst_87 = arith.constant dense<0.000000e+00> : vector<16x64xf32>
    %290 = tpu.matmul %289, %287, %cst_87 {dimension_numbers = #tpu.dot_dimension_numbers<[1], [0], [0], [1], [0, 0, 1, 1], [], []>} : vector<16x256xbf16>, vector<256x64xbf16>, vector<16x64xf32> -> vector<16x64xf32>
    %291 = vector.broadcast %288 : vector<1x64xf32> to vector<16x64xf32>
    %292 = arith.addf %290, %291 : vector<16x64xf32>
    %293 = arith.addf %275, %292 : vector<16x64xf32>
    %cst_88 = arith.constant dense<0.000000e+00> : vector<16xf32>
    %294 = vector.multi_reduction <add>, %293, %cst_88 [1] : vector<16x64xf32> to vector<16xf32>
    %295 = vector.shape_cast %294 : vector<16xf32> to vector<16x1xf32>
    %cst_89 = arith.constant 6.400000e+01 : f32
    %296 = vector.broadcast %cst_89 : f32 to vector<16x1xf32>
    %297 = arith.divf %295, %296 : vector<16x1xf32>
    %298 = vector.broadcast %297 : vector<16x1xf32> to vector<16x64xf32>
    %299 = arith.subf %293, %298 : vector<16x64xf32>
    %300 = arith.mulf %299, %299 : vector<16x64xf32>
    %cst_90 = arith.constant dense<0.000000e+00> : vector<16xf32>
    %301 = vector.multi_reduction <add>, %300, %cst_90 [1] : vector<16x64xf32> to vector<16xf32>
    %302 = vector.shape_cast %301 : vector<16xf32> to vector<16x1xf32>
    %cst_91 = arith.constant 6.400000e+01 : f32
    %303 = vector.broadcast %cst_91 : f32 to vector<16x1xf32>
    %304 = arith.divf %302, %303 : vector<16x1xf32>
    %305 = vector.broadcast %297 : vector<16x1xf32> to vector<16x64xf32>
    %306 = arith.subf %293, %305 : vector<16x64xf32>
    %cst_92 = arith.constant 9.99999974E-6 : f32
    %307 = vector.broadcast %cst_92 : f32 to vector<16x1xf32>
    %308 = arith.addf %304, %307 : vector<16x1xf32>
    %309 = math.rsqrt %308 : vector<16x1xf32>
    %310 = vector.broadcast %309 : vector<16x1xf32> to vector<16x64xf32>
    %311 = arith.mulf %306, %310 : vector<16x64xf32>
    %312 = vector.extract_strided_slice %4 {offsets = [13, 0], sizes = [1, 64], strides = [1, 1]} : vector<16x64xf32> to vector<1x64xf32>
    %313 = vector.broadcast %312 : vector<1x64xf32> to vector<16x64xf32>
    %314 = arith.mulf %311, %313 : vector<16x64xf32>
    %315 = vector.extract_strided_slice %4 {offsets = [14, 0], sizes = [1, 64], strides = [1, 1]} : vector<16x64xf32> to vector<1x64xf32>
    %316 = vector.broadcast %315 : vector<1x64xf32> to vector<16x64xf32>
    %317 = arith.addf %314, %316 : vector<16x64xf32>
    %c0_93 = arith.constant 0 : index
    %c0_94 = arith.constant 0 : index
    %318 = vector.load %arg16[%c0_93, %c0_94] : memref<16x64xf32, #tpu.memory_space<vmem>>, vector<16x64xf32>
    tpu.vector_store %arg16[%c0_93, %c0_94], %317 {strides = array<i32>} : memref<16x64xf32, #tpu.memory_space<vmem>>, vector<16x64xf32>,
    %c1_i32 = arith.constant 1 : i32
    %319 = arith.cmpi eq, %arg1, %c1_i32 : i32
    %320 = arith.extui %319 : i1 to i32
    %c0_i32_95 = arith.constant 0 : i32
    %321 = arith.cmpi ne, %320, %c0_i32_95 : i32
    scf.if %321 {
      %322 = arith.truncf %317 : vector<16x64xf32> to vector<16x64xbf16>
      %c0_96 = arith.constant 0 : index
      %c0_97 = arith.constant 0 : index
      %323 = vector.load %arg12[%c0_96, %c0_97] : memref<64x128xbf16, #tpu.memory_space<vmem>>, vector<64x128xbf16>
      %cst_98 = arith.constant dense<0.000000e+00> : vector<16x128xf32>
      %324 = tpu.matmul %322, %323, %cst_98 {dimension_numbers = #tpu.dot_dimension_numbers<[1], [0], [0], [1], [0, 0, 1, 1], [], []>} : vector<16x64xbf16>, vector<64x128xbf16>, vector<16x128xf32> -> vector<16x128xf32>
      %c0_99 = arith.constant 0 : index
      %c0_100 = arith.constant 0 : index
      %325 = vector.load %arg13[%c0_99, %c0_100] : memref<1x128xf32, #tpu.memory_space<vmem>>, vector<1x128xf32>
      %326 = vector.broadcast %325 : vector<1x128xf32> to vector<16x128xf32>
      %327 = arith.addf %324, %326 : vector<16x128xf32>
      %328 = vector.shape_cast %327 : vector<16x128xf32> to vector<2x8x128xf32>
      %c0_101 = arith.constant 0 : index
      %c0_102 = arith.constant 0 : index
      %c0_103 = arith.constant 0 : index
      %329 = vector.load %arg14[%c0_101, %c0_102, %c0_103] : memref<2x8x128xf32, #tpu.memory_space<vmem>>, vector<2x8x128xf32>
      tpu.vector_store %arg14[%c0_101, %c0_102, %c0_103], %328 {strides = array<i32>} : memref<2x8x128xf32, #tpu.memory_space<vmem>>, vector<2x8x128xf32>,
    } else {
    }
    return
  }
  func.func @transform_0(%arg0: i32, %arg1: i32) -> (i32, i32, i32) {
    %c0_i32 = arith.constant 0 : i32
    %c0_i32_0 = arith.constant 0 : i32
    %c0_i32_1 = arith.constant 0 : i32
    return %arg0, %c0_i32, %c0_i32_0 : i32, i32, i32
  }
  func.func @transform_1(%arg0: i32, %arg1: i32) -> (i32, i32) {
    %c0_i32 = arith.constant 0 : i32
    %c0_i32_0 = arith.constant 0 : i32
    %c0_i32_1 = arith.constant 0 : i32
    return %c0_i32, %c0_i32_0 : i32, i32
  }
  func.func @transform_2(%arg0: i32, %arg1: i32) -> (i32, i32) {
    %c0_i32 = arith.constant 0 : i32
    %c0_i32_0 = arith.constant 0 : i32
    %c0_i32_1 = arith.constant 0 : i32
    return %c0_i32, %c0_i32_0 : i32, i32
  }
  func.func @transform_3(%arg0: i32, %arg1: i32) -> (i32, i32) {
    %c0_i32 = arith.constant 0 : i32
    %c0_i32_0 = arith.constant 0 : i32
    %c0_i32_1 = arith.constant 0 : i32
    return %c0_i32, %c0_i32_0 : i32, i32
  }
  func.func @transform_4(%arg0: i32, %arg1: i32) -> (i32, i32) {
    %c0_i32 = arith.constant 0 : i32
    %c0_i32_0 = arith.constant 0 : i32
    %c0_i32_1 = arith.constant 0 : i32
    return %c0_i32, %c0_i32_0 : i32, i32
  }
  func.func @transform_5(%arg0: i32, %arg1: i32) -> (i32, i32, i32) {
    %c0_i32 = arith.constant 0 : i32
    %c0_i32_0 = arith.constant 0 : i32
    %c0_i32_1 = arith.constant 0 : i32
    return %arg1, %c0_i32, %c0_i32_0 : i32, i32, i32
  }
  func.func @transform_6(%arg0: i32, %arg1: i32) -> (i32, i32, i32) {
    %c0_i32 = arith.constant 0 : i32
    %c0_i32_0 = arith.constant 0 : i32
    %c0_i32_1 = arith.constant 0 : i32
    return %arg1, %c0_i32, %c0_i32_0 : i32, i32, i32
  }
  func.func @transform_7(%arg0: i32, %arg1: i32) -> (i32, i32, i32) {
    %c0_i32 = arith.constant 0 : i32
    %c0_i32_0 = arith.constant 0 : i32
    %c0_i32_1 = arith.constant 0 : i32
    return %arg1, %c0_i32, %c0_i32_0 : i32, i32, i32
  }
  func.func @transform_8(%arg0: i32, %arg1: i32) -> (i32, i32, i32) {
    %c0_i32 = arith.constant 0 : i32
    %c0_i32_0 = arith.constant 0 : i32
    %c0_i32_1 = arith.constant 0 : i32
    return %arg1, %c0_i32, %c0_i32_0 : i32, i32, i32
  }
  func.func @transform_9(%arg0: i32, %arg1: i32) -> (i32, i32, i32) {
    %c0_i32 = arith.constant 0 : i32
    %c0_i32_0 = arith.constant 0 : i32
    %c0_i32_1 = arith.constant 0 : i32
    return %arg1, %c0_i32, %c0_i32_0 : i32, i32, i32
  }
  func.func @transform_10(%arg0: i32, %arg1: i32) -> (i32, i32) {
    %c0_i32 = arith.constant 0 : i32
    %c0_i32_0 = arith.constant 0 : i32
    %c0_i32_1 = arith.constant 0 : i32
    return %c0_i32, %c0_i32_0 : i32, i32
  }
  func.func @transform_11(%arg0: i32, %arg1: i32) -> (i32, i32) {
    %c0_i32 = arith.constant 0 : i32
    %c0_i32_0 = arith.constant 0 : i32
    %c0_i32_1 = arith.constant 0 : i32
    return %c0_i32, %c0_i32_0 : i32, i32
  }
  func.func @transform_12(%arg0: i32, %arg1: i32) -> (i32, i32, i32) {
    %c0_i32 = arith.constant 0 : i32
    %c0_i32_0 = arith.constant 0 : i32
    %c0_i32_1 = arith.constant 0 : i32
    return %arg0, %c0_i32, %c0_i32_0 : i32, i32, i32
  }
  func.func @transform_13(%arg0: i32, %arg1: i32) -> (i32, i32, i32) {
    %c0_i32 = arith.constant 0 : i32
    %c0_i32_0 = arith.constant 0 : i32
    %c0_i32_1 = arith.constant 0 : i32
    return %arg0, %c0_i32, %c0_i32_0 : i32, i32, i32
  }
}

</mosaic_0001>

<bundles_post_ra>
// kernel: tpu_custom_call.1
= control target key start
LH: loop header
LB: loop body
LE: loop exit
PB: predicated region body
PF: predicated region fallthrough
CT: control target
= control target key end

     0   :  { %s6092_s0 = inlined_call_operand.vmem [shape: f32[2,8,192], index: 0, kind: input, shape index: {}]   ;;  %s6093_s1 = inlined_call_operand.vmem [shape: bf16[192,64], index: 1, kind: input, shape index: {}]   ;;  %s6094_s2 = inlined_call_operand.vmem [shape: f32[1,64], index: 2, kind: input, shape index: {}]   ;;  %s6095_s3 = inlined_call_operand.vmem [shape: f32[8,64], index: 3, kind: input, shape index: {}]   ;;  %s6096_s4 = inlined_call_operand.hbm [shape: f32[8,64], index: 4, kind: input, shape index: {}]   ;;  %s6097_s5 = inlined_call_operand.vmem [shape: bf16[16,64,64], index: 5, kind: input, shape index: {}]   ;;  %s6098_s6 = inlined_call_operand.hbm [shape: bf16[2,64,256], index: 6, kind: input, shape index: {}]   ;;  %s6099_s7 = inlined_call_operand.vmem [shape: bf16[2,256,64], index: 7, kind: input, shape index: {}]   ;;  %s6100_s8 = inlined_call_operand.hbm [shape: f32[2,16,64], index: 8, kind: input, shape index: {}]   ;;  %s6101_s9 = inlined_call_operand.vmem [shape: f32[2,1,256], index: 9, kind: input, shape index: {}]   ;;  %s6102_s10 = inlined_call_operand.hbm [shape: bf16[64,128], index: 10, kind: input, shape index: {}]   ;;  %s6103_s11 = inlined_call_operand.vmem [shape: f32[1,128], index: 11, kind: input, shape index: {}]   ;;  %s6104_s12 = inlined_call_operand.hbm [shape: f32[2,8,128], index: 12, kind: output, shape index: {0}]   ;;  %s6105_s13 = inlined_call_operand.hbm [shape: f32[2,1,64], index: 13, kind: output, shape index: {1}]  }
   0x1   :  { %6111 = sst [smem:[#allocation22_spill]] %s6096_s4 }
   0x2   :  { %6112 = sst [smem:[#allocation23_spill]] %s6098_s6 }
   0x3   :  { %6113 = sst [smem:[#allocation24_spill]] %s6103_s11 }
   0x4   :  { %6114 = sst [smem:[#allocation25_spill]] %s6104_s12 }
   0x5   :  { %6115 = sst [smem:[#allocation26_spill]] %s6105_s13 }
   0x6   :  { %19 = vsyncpa [#allocation5], 0 }
   0x7   :  { %20 = vsyncpa [#allocation8], 0 }
   0x8   :  { %22 = vsyncpa [#allocation8 + $0x1], 0 }
   0x9   :  { %23 = vsyncpa [#allocation11], 0 }
   0xa   :  { %24 = vsyncpa [#allocation6], 0 }
   0xb   :  { %25 = vsyncpa [#allocation14], 0  ;;  %s5242_s25 = smov 0   ;;  %s5244_s26 = smov 0  }
   0xc   :  { %s5246_s27 = smov 0   ;;  %s5248_s28 = smov 0  }
   0xd   :  { %s5250_s29 = smov 0   ;;  %s5252_s30 = smov 0  }
   0xe LB: > { %6116 = sst [smem:[#allocation20_spill]] %s5140_s29  ;;  %s40_s14 = sadd.s32 1, %s5140_s29  ;;  %s5144_s30 = sphi %s5252_s30, %s31_s30   ;;  %s5140_s29 = sphi %s5250_s29, %s6136_s29   ;;  %s5136_s28 = sphi %s5248_s28, %s6135_s28   ;;  %s5132_s27 = sphi %s5246_s27, %s6139_s27   ;;  %s5128_s26 = sphi %s5244_s26, %s6138_s26   ;;  %s5124_s25 = sphi %s5242_s25, %s6137_s25  }
   0xf   : > { %s186_s15 = sadd.s32 1, %s5132_s27  ;;  %p41_p0 = scmp.ge.s32.totalorder %s40_s14, 2 }
  0x10   : > { %p193_p1 = scmp.ne.s32.totalorder %s5132_s27, %s5128_s26  ;;  %p194_p2 = scmp.eq.s32.totalorder %s5144_s30, 0 }
  0x11   : > { %s6141_s14 = smov (%p41_p0, %s40_s14), 0  ;;  %p4659_p4 = scmp.lt.s32.totalorder %s5144_s30, 2 }
  0x12   : > { %6117 = sst [smem:[#allocation21_spill]] %s6141_s14  ;;  %p195_p3 = por %p194_p2, %p193_p1 }
  0x13   : > { %s183_s16 = ssub.s32 %s5140_s29, %s6141_s14  ;;  %s451_s17 = sand.u32 1, %s5144_s30  }
  0x14   : > { %p184_p5 = scmp.eq.s32.totalorder %s183_s16, 0  ;;  %s453_s18 = sand.u32 1, %s5132_s27  }
  0x15   : > { %s4188_s19 = sshll.u32 %s5140_s29, 10  ;;  %s3990_s21 = sshll.u32 %s453_s18, 6 }
  0x16   : > { %s5286_s20 = scalar_select %p184_p5, %s5132_s27, %s186_s15  }
  0x17   : > { %s6118_s6 = sld [smem:[#allocation23_spill]]  ;;  %p5291_p6 = pnand %p4659_p4, %p195_p3 }
  0x18   : > { %s455_s12 = scalar_lea.vmem [#allocation7], %s3990_s21  ;;  %s3993_s14 = sshll.u32 %s453_s18, 4 }
  0x19   : > { %s462_s11 = sshll.u32 %s455_s12, 4  ;;  %s5295_s16 = scalar_lea.sflag [#allocation8], %s451_s17  ;;  %s463_s11 = int_to_ptr.vmem [resolvable:$true] %s462_s11 }
  0x1a   : > { %p4924_p7 = pneg %p5291_p6  ;;  %s4935_s15 = scalar_lea.vmem %s463_s11, 1024 }
  0x1b   : > { %p4936_p8 = scmp.ne.s32.totalorder %s463_s11, %s4935_s15 }
  0x1d   : > { %s461_s24 = scalar_lea.hbm %s6118_s6, %s4188_s19  ;;  %p4938_p9 = pnand %p4936_p8, %p4924_p7 }
  0x1e   : > { %s5146_s19 = smov [#allocation7]  }
  0x1f   : > { %p4939_p10 = pneg %p4938_p9  ;;  %s4940_s22 = sshll.u32 %s5146_s19, 4  ;;  %s4941_s22 = int_to_ptr.vmem [resolvable:$false] %s4940_s22 }
  0x20   : > { %s4942_s23 = scalar_lea.vmem %s4941_s22, 2048  ;;  %p4943_p11 = scmp.lt.s32.totalorder %s463_s11, %s4941_s22 }
  0x21   : > { %p4944_p12 = scmp.lt.s32.totalorder %s4942_s23, %s4935_s15 }
  0x23   : > { %p4945_p13 = por %p4944_p12, %p4943_p11 }
  0x25   : > { %p4946_p0 = pnand %p4945_p13, %p4939_p10 }
  0x27   : > { %4949 = shalt.err (!%p4946_p0)
}
  0x28   : > { %s6107_s12 = smov 128   ;;  %s6108_s17 = smov 8  }
  0x29   : > { %4653 = dma.hbm_to_vmem [thread:$0]  (!%p5291_p6), %s461_s24, 1024, %s463_s11, %s5295_s16, %s6107_s12, %s6107_s12, %s6108_s17  }
  0x2a   : > { %s484_s18 = scalar_lea.vmem [#allocation9], %s3993_s14  ;;  %s5309_s15 = sadd.s32 4294967295, %s5144_s30  }
  0x2b   : > { %s491_s21 = sshll.u32 %s484_s18, 4  ;;  %p199_p1 = scmp.ne.s32.totalorder %s5128_s26, %s5124_s25  ;;  %s5337_s21 = int_to_ptr.vmem [resolvable:$true] %s491_s21 }
  0x2c   : > { %p6110_p2 = scmp.eq.s32.totalorder %s5309_s15, 0  ;;  %p3985_p3 = scmp.ge.s32.totalorder %s5144_s30, 1 }
  0x2d   : > { %p382_p4 = scmp.lt.s32.totalorder %s5144_s30, 3  ;;  %s5149_s11 = smov [#allocation4]  }
  0x2e   : > { %p5318_p5 = por %p6110_p2, %p199_p1  ;;  %s414_s14 = sshll.u32 %s5149_s11, 4  ;;  %s415_s14 = int_to_ptr.vmem [resolvable:$true] %s414_s14 }
  0x2f   : > { %p5322_p8 = pnand %p3985_p3, %p382_p4  ;;  %s5150_s24 = smov [#allocation10]  }
  0x30   : > { %s424_s25 = sshll.u32 %s5150_s24, 4  ;;  %s4189_s18 = sshll.u32 %s5140_s29, 8  ;;  %s5328_s25 = int_to_ptr.vmem [resolvable:$true] %s424_s25 }
  0x31   : > { %p4643_p9 = pneg %p5322_p8  ;;  %s5342_s11 = scalar_lea.hbm %s6100_s8, %s4189_s18 }
  0x32   : > { %s4961_s24 = scalar_lea.vmem %s415_s14, 128  ;;  %p4969_p1 = scmp.lt.s32.totalorder %s415_s14, %s415_s14 }
  0x33   : > { %p5332_p10 = pnand %p4643_p9, %p6110_p2  ;;  %p4962_p12 = scmp.ne.s32.totalorder %s415_s14, %s4961_s24 }
  0x34   : > { %p4970_p3 = scmp.lt.s32.totalorder %s4961_s24, %s4961_s24 }
  0x35   : > { %p4952_p11 = pneg %p5332_p10 }
  0x36   : > { %p4971_p4 = por %p4970_p3, %p4969_p1 }
  0x37   : > { %p4964_p13 = pnand %p4962_p12, %p4952_p11 }
  0x39   : > { %p4965_p0 = pneg %p4964_p13 }
  0x3b   : > { %p4972_p9 = pnand %p4971_p4, %p4965_p0 }
  0x3d   : > { %4975 = shalt.err (!%p4972_p9)
}
  0x3e   : > { %s6123_s4 = sld [smem:[#allocation22_spill]]  ;;  %s4987_s12 = scalar_lea.vmem %s5328_s25, 512 }
  0x3f   : > { %p4988_p2 = scmp.ne.s32.totalorder %s5328_s25, %s4987_s12  ;;  %p4995_p1 = scmp.lt.s32.totalorder %s5328_s25, %s5328_s25 }
  0x40   : > { %p4996_p0 = scmp.lt.s32.totalorder %s4987_s12, %s4987_s12 }
  0x41   : > { %p4990_p12 = pnand %p4988_p2, %p4952_p11 }
  0x42   : > { %p4997_p3 = por %p4996_p0, %p4995_p1 }
  0x43   : > { %p4991_p13 = pneg %p4990_p12 }
  0x44   : > { %4646 = dma.hbm_to_vmem [thread:$0]  (!%p5332_p10), %s6123_s4, 128, %s415_s14, [#allocation5]  }
  0x45   : > { %p4998_p4 = pnand %p4997_p3, %p4991_p13 }
  0x47   : > { %5001 = shalt.err (!%p4998_p4)
}
  0x48   : > { %s5151_s17 = smov 64   ;;  %s5152_s6 = smov 4  }
  0x49   : > { %4649 = dma.hbm_to_vmem [thread:$0]  (!%p5332_p10), %s6102_s10, 512, %s5328_s25, [#allocation11], %s5151_s17, %s5151_s17, %s5152_s6  }
  0x4a   : > { %s5015_s18 = scalar_lea.vmem %s5337_s21, 256  ;;  %s5153_s24 = smov [#allocation9]  }
  0x4b   : > { %p5016_p2 = scmp.ne.s32.totalorder %s5337_s21, %s5015_s18  ;;  %s5020_s12 = sshll.u32 %s5153_s24, 4  ;;  %s5021_s12 = int_to_ptr.vmem [resolvable:$false] %s5020_s12 }
  0x4c   : > { %s5022_s4 = scalar_lea.vmem %s5021_s12, 512  ;;  %p5023_p12 = scmp.lt.s32.totalorder %s5337_s21, %s5021_s12 }
  0x4d   : > { %p5018_p11 = pnand %p5016_p2, %p4924_p7  ;;  %p5024_p13 = scmp.lt.s32.totalorder %s5022_s4, %s5015_s18 }
  0x4f   : > { %p5019_p9 = pneg %p5018_p11  ;;  %p5025_p1 = por %p5024_p13, %p5023_p12 }
  0x51   : > { %p5026_p0 = pnand %p5025_p1, %p5019_p9 }
  0x53   : > { %5029 = shalt.err (!%p5026_p0)
}
  0x54   : > { %s6124_s23 = smov 8   ;;  %s6125_s29 = smov 128  }
  0x55   : > { %4656 = dma.hbm_to_vmem [thread:$0]  (!%p5291_p6), %s5342_s11, 256, %s5337_s21, %s5295_s16, %s6125_s29, %s6125_s29, %s6124_s23  }
  0x56   : > { %510 = sbr.rel (%p5322_p8) target bundleno = 7557 (0x1d85), region = 68  ;;  %p6126_p7 = scmp.eq.s32.totalorder (!%p5322_p8), %s5309_s15, 0 }
  0x5b   : > { %5103 = dma.done.wait (%p6126_p7), [#allocation5], 128   ;;  %p6127_p10 = pmov %p6126_p7 }
  0x5c   : > { %s516_s4 = sand.u32 1, %s5309_s15   ;;  %s518_s13 = sand.u32 1, %s5128_s26  }
  0x5d   : > { %5105 = vsyncadd (%p6127_p10), [#allocation5], 4294967168  ;;  %s3998_s25 = sshll.u32 %s518_s13, 6  ;;  %s517_s17 = scalar_lea.sflag [#allocation8], %s516_s4 }
  0x5e   : > { %s5389_s6 = scalar_lea.vmem [#allocation7], %s3998_s25 }
  0x5f   : > { %5107 = dma.done.wait (%p5318_p5), %s517_s17, 1280  }
  0x60   : > { %5109 = vsyncadd (%p5318_p5), %s517_s17, 4294966016  ;;  %s5395_s16 = sshll.u32 %s518_s13, 4  ;;  %p6128_p6 = pmov %p6126_p7 }
  0x62   : > { %5111 = dma.done.wait (%p6128_p6), [#allocation11], 512   ;;  %p6129_p8 = pmov %p6128_p6 }
  0x63   : > { %s4001_s22 = sshll.u32 %s5136_s28, 3  ;;  %p611_p3 = scmp.lt.s32.totalorder %s5136_s28, 1 }
  0x64   : > { %5113 = vsyncadd (%p6129_p8), [#allocation11], 4294966784  ;;  %p605_p4 = scmp.lt.s32.totalorder %s4001_s22, 15  ;;  %p4007_p5 = scmp.ne.s32.totalorder %s5136_s28, 0 }
  0x65   : > { %s612_s11 = scalar_select %p611_p3, %s5136_s28, 1 }
  0x66   : > { %s6143_s22 = smov (!%p605_p4, %s4001_s22), 15  ;;  %626 = sbr.rel (%p4007_p5) target bundleno = 373 (0x175), region = 88 }
  0x67   : > { %s4191_s19 = sshll.u32 %s612_s11, 7  ;;  %s4006_s14 = sshll.u32 %s612_s11, 1 }
  0x68   : > { %s4190_s18 = sshll.u32 %s6143_s22, 5  ;;  %s5408_s23 = scalar_lea.vmem %s6099_s7, %s4191_s19 }
  0x69   : > { %s5413_s13 = scalar_lea.vmem %s6097_s5, %s4190_s18  ;;  %s5418_s21 = scalar_lea.vmem %s6101_s9, %s4006_s14 }
  0x6b   : > { %v4738_v0 = vld [vmem:[%s6093_s1 + $0x38] sm:$0xff]   ;;  %v5154_v1 = vmov 0   ;;  %v4739_v2 = vld [vmem:[%s6093_s1 + $0x30] sm:$0xff]   ;;  %v4740_v3 = vld [vmem:[%s6093_s1 + $0x28] sm:$0xff]   ;;  %vm736_vm0 = vcmask 523264   ;;  %vm803_vm1 = vcmask 516096  }
  0x6c   : > { %740 = vmatprep.subr.bf16.mxu0 %v5154_v1  ;;  %v4741_v4 = vld [vmem:[%s6093_s1 + $0x20] sm:$0xff]   ;;  %v628_v5 = vld [vmem:[%s6092_s0 + $0x8] sm:$0xff]  ;;  %v630_v6 = vld [vmem:[%s6092_s0 + $0x18] sm:$0xff] }
  0x6d   : > { %741 = vmatpush1.bf16.msra.mxu0 %v4738_v0  ;;  %v632_v7 = vpack.c.bf16 %v630_v6, %v628_v5  ;;  %v4742_v8 = vld [vmem:[%s6093_s1 + $0x18] sm:$0xff]   ;;  %v4743_v9 = vld [vmem:[%s6093_s1 + $0x10] sm:$0xff]   ;;  %v4744_v10 = vld [vmem:[%s6093_s1 + $0x8] sm:$0xff]  }
  0x6e   : > { %742 = vmatprep.subr.bf16.mxu0 %v5154_v1  ;;  %v4745_v11 = vld [vmem:[%s6093_s1] sm:$0xff]   ;;  %v4746_v12 = vld [vmem:[%s6093_s1 + $0x58] sm:$0xff]   ;;  %v4747_v13 = vld [vmem:[%s6093_s1 + $0x50] sm:$0xff]  }
  0x6f   : > { %4021 = vmatprep.mubr.msk.bf16.mxu0 %vm736_vm0, %v632_v7  ;;  %v4748_v14 = vld [vmem:[%s6093_s1 + $0x48] sm:$0xff]   ;;  %v4749_v15 = vld [vmem:[%s6093_s1 + $0x40] sm:$0xff]   ;;  %v629_v17 = vld [vmem:[%s6092_s0 + $0x10] sm:$0xff] }
  0x70   : > { %v627_v16 = vld [vmem:[%s6092_s0] sm:$0xff] }
  0x71   : > { %743 = vmatpush1.bf16.msra.mxu0 %v4739_v2  ;;  %v631_v18 = vpack.c.bf16 %v629_v17, %v627_v16  ;;  %v4008_v19 = vld [vmem:[%s6094_s2] ss:$0 sm:$0xff] }
  0x72   : > { %744 = vmatprep.subr.bf16.mxu0 %v5154_v1  ;;  %v781_v21 = vld [vmem:[%s6095_s3] sm:$0xff] }
  0x73   : > { %v806_v41 = vld [vmem:[#allocation4] sm:$0xff] }
  0x75   : > { %745 = vmatpush1.bf16.msra.mxu0 %v4740_v3 }
  0x76   : > { %746 = vmatprep.subr.bf16.mxu0 %v5154_v1 }
  0x79   : > { %747 = vmatpush1.bf16.msra.mxu0 %v4741_v4 }
  0x7a   : > { %748 = vmatprep.subr.bf16.mxu0 %v5154_v1 }
  0x7d   : > { %749 = vmatpush1.bf16.msra.mxu0 %v4742_v8 }
  0x7e   : > { %750 = vmatprep.subr.bf16.mxu0 %v5154_v1 }
  0x81   : > { %751 = vmatpush1.bf16.msra.mxu0 %v4743_v9 }
  0x82   : > { %752 = vmatprep.subr.bf16.mxu0 %v5154_v1 }
  0x85   : > { %753 = vmatpush1.bf16.msra.mxu0 %v4744_v10 }
  0x86   : > { %754 = vmatprep.subr.bf16.mxu0 %v5154_v1 }
  0x89   : > { %755 = vmatpush1.bf16.msra.mxu0 %v4745_v11 }
  0x8a   : > { %764 = vmatprep.subr.bf16.mxu0 %v5154_v1 }
  0x8d   : > { %765 = vmatpush2.bf16.msra.mxu0 %v4746_v12 }
  0x8e   : > { %766 = vmatprep.subr.bf16.mxu0 %v5154_v1 }
  0x91   : > { %767 = vmatpush2.bf16.msra.mxu0 %v4747_v13 }
  0x92   : > { %768 = vmatprep.subr.bf16.mxu0 %v5154_v1 }
  0x95   : > { %769 = vmatpush2.bf16.msra.mxu0 %v4748_v14 }
  0x96   : > { %770 = vmatprep.subr.bf16.mxu0 %v5154_v1 }
  0x99   : > { %771 = vmatpush2.bf16.msra.mxu0 %v4749_v15 }
  0x9c   : > { %773 = vmatmul.mubr.bf16.vlgmr.msra.gmra.mxu0 %v631_v18 }
 0x15c   : > { %v774_v20 = vpop.f32.mrf.mxu0 }
 0x15d   : > { %v775_v22 = vadd.f32 %v4008_v19, %v774_v20 }
 0x15e   : > { %v776_v23 = vpop.f32.mrf.mxu0 }
 0x15f   : > { %v782_v24 = vadd.f32 %v781_v21, %v775_v22  ;;  %v786_v25 = vsel %vm736_vm0, %v775_v22, 0.0 }
 0x160   : > { %v787_v26 = vrot.slane %v786_v25, 4  ;;  %v777_v27 = vpop.f32.mrf.mxu0 }
 0x161   : > { %784 = vst.msk [vmem:[#allocation3] sm:$0xff] %vm736_vm0, %v782_v24  ;;  %v778_v28 = vadd.f32 %v4008_v19, %v777_v27 }
 0x162   : > { %v788_v29 = vadd.f32 %v787_v26, %v786_v25  ;;  %v779_v30 = vpop.f32.mrf.mxu0 }
 0x163   : > { %v783_v31 = vadd.f32 %v781_v21, %v778_v28  ;;  %v793_v32 = vsel %vm736_vm0, %v778_v28, 0.0 }
 0x164   : > { %v789_v33 = vrot.slane %v788_v29, 2  ;;  %v794_v34 = vrot.slane %v793_v32, 4 }
 0x165   : > { %785 = vst.msk [vmem:[#allocation3 + $0x8] sm:$0xff] %vm736_vm0, %v783_v31 }
 0x166   : > { %v790_v35 = vadd.f32 %v789_v33, %v788_v29  ;;  %v795_v36 = vadd.f32 %v794_v34, %v793_v32 }
 0x168   : > { %v791_v37 = vrot.slane %v790_v35, 1  ;;  %v796_v38 = vrot.slane %v795_v36, 2 }
 0x16a   : > { %v792_v39 = vadd.f32 %v791_v37, %v790_v35  ;;  %v797_v40 = vadd.f32 %v796_v38, %v795_v36 }
 0x16c   : > { %v801_v42 = vmul.f32 0.125, %v792_v39  ;;  %v798_v43 = vrot.slane %v797_v40, 1 }
 0x16e   : > { %804 = vst.msk [vmem:[#allocation13] sm:$0x1] %vm803_vm1, %v801_v42  ;;  %v807_v44 = vadd.f32 %v806_v41, %v801_v42  ;;  %v799_v45 = vadd.f32 %v798_v43, %v797_v40 }
 0x170   : > { %809 = vst.msk [vmem:[#allocation2] sm:$0xff] %vm736_vm0, %v807_v44  ;;  %v802_v46 = vmul.f32 0.125, %v799_v45 }
 0x172   : > { %805 = vst.msk [vmem:[#allocation13 + $0x1] sm:$0x1] %vm803_vm1, %v802_v46  ;;  %v808_v47 = vadd.f32 %v806_v41, %v802_v46 }
 0x174   : > { %810 = vst.msk [vmem:[#allocation2 + $0x8] sm:$0xff] %vm736_vm0, %v808_v47 }
 0x175 PF: > { %v4780_v48 = vld [vmem:[%s5413_s13 + $0x18] sm:$0xff]   ;;  %v5155_v49 = vmov 0.0   ;;  %v4781_v50 = vld [vmem:[%s5413_s13 + $0x10] sm:$0xff]   ;;  %vm5156_vm2 = vmmov 0   ;;  %v4782_v51 = vld [vmem:[%s5413_s13 + $0x8] sm:$0xff]   ;;  %vm858_vm3 = vcmask 523264   ;;  %v813_v62 = vlaneseq }
 0x176   : > { %4323 = vmatprep.subr.bf16.mxu1 %v5155_v49  ;;  %4347 = vmatprep.subr.bf16.mxu0 %v5155_v49  ;;  %v4783_v52 = vld [vmem:[%s5413_s13] sm:$0xff]   ;;  %v4784_v55 = vld [vmem:[%s5413_s13 + $0x38] sm:$0xff]   ;;  %v4785_v57 = vld [vmem:[%s5413_s13 + $0x30] sm:$0xff]   ;;  %s6130_s24 = scalar_lea.vmem [#allocation9], %s5395_s16  ;;  %vm1065_vm4 = vcmask 130048   ;;  %s5157_s18 = smov 112  }
 0x177   : > { %4324 = vmatpush3.bf16.msra.mxu1 %v4780_v48  ;;  %4331 = vmatprep.mubr.msk.bf16.mxu1 %vm5156_vm2, %v5155_v49  ;;  %v817_v53 = vld [vmem:[#allocation2] sm:$0xff]  ;;  %v4786_v58 = vld [vmem:[%s5413_s13 + $0x28] sm:$0xff]   ;;  %v5514_v1 = vshrl.u32 %v813_v62, 7  ;;  %v4788_v21 = vld [vmem:[%s5413_s13 + $0x58] sm:$0xff]   ;;  %v814_v25 = vand.u32 127, %v813_v62  ;;  %vm1158_vm6 = vcmask 64512   ;;  %s6131_s17 = smov %s6130_s24 }
 0x178   : > { %4325 = vmatprep.subr.bf16.mxu1 %v5155_v49  ;;  %4355 = vmatprep.mubr.msk.bf16.mxu0 %vm5156_vm2, %v5155_v49  ;;  %v4787_v59 = vld [vmem:[%s5413_s13 + $0x20] sm:$0xff]   ;;  %v5521_v3 = vld [vmem:[%s6130_s24] sm:$0xff]  ;;  %v4789_v22 = vld [vmem:[%s5413_s13 + $0x50] sm:$0xff]   ;;  %v5158_v26 = vmov -1e+30   ;;  %vm1186_vm7 = vcmask 1043456  }
 0x179   : > { %v5517_v2 = vsub.s32 1, %v5514_v1  ;;  %v5526_v5 = vsub.s32 0, %v5514_v1  ;;  %4348 = vmatpush3.bf16.msra.mxu0 %v4788_v21  ;;  %v4790_v23 = vld [vmem:[%s5413_s13 + $0x48] sm:$0xff]   ;;  %v4791_v24 = vld [vmem:[%s5413_s13 + $0x40] sm:$0xff]   ;;  %vm815_vm5 = vcmp.lt.s32.totalorder %v814_v25, 7  ;;  %s5159_s12 = smov 96  }
 0x17a   : > { %4349 = vmatprep.subr.bf16.mxu0 %v5155_v49  ;;  %v5566_v27 = vsel %vm815_vm5, 0.0, %v5158_v26  ;;  %s5160_s14 = smov 80   ;;  %s5161_s29 = smov 16   ;;  %vm1968_vm8 = vcmask 261120   ;;  %vm1971_vm9 = vcmask 392192  }
 0x17b   : > { %4326 = vmatpush3.bf16.msra.mxu1 %v4781_v50  ;;  %v818_v54 = vld [vmem:[#allocation2 + $0x8] sm:$0xff]  ;;  %v915_v4 = vrot.slane %v5521_v3, %v5517_v2  ;;  %v833_v9 = vrot.slane %v5521_v3, %v5526_v5  ;;  %s5162_s4 = smov 32   ;;  %s5163_s25 = smov 48  }
 0x17c   : > { %4327 = vmatprep.subr.bf16.mxu1 %v5155_v49  ;;  %v5496_v56 = vpack.c.bf16 %v818_v54, %v817_v53  ;;  %p4175_p2 = scmp.ne.s32.totalorder %s5136_s28, 1 }
 0x17d   : > { %4350 = vmatpush3.bf16.msra.mxu0 %v4789_v22  ;;  %s6132_s16 = sld [smem:[#allocation24_spill]] (!%p4175_p2) }
 0x17e   : > { %4351 = vmatprep.subr.bf16.mxu0 %v5155_v49 }
 0x17f   : > { %4328 = vmatpush3.bf16.msra.mxu1 %v4782_v51  ;;  %v992_v51 = vsub.s32 2, %v5514_v1 }
 0x180   : > { %4329 = vmatprep.subr.bf16.mxu1 %v5155_v49 }
 0x181   : > { %4352 = vmatpush3.bf16.msra.mxu0 %v4790_v23  ;;  %v993_v53 = vrot.slane %v5521_v3, %v992_v51 }
 0x182   : > { %4353 = vmatprep.subr.bf16.mxu0 %v5155_v49 }
 0x183   : > { %4330 = vmatpush3.bf16.msra.mxu1 %v4783_v52 }
 0x184   : > { %4335 = vmatprep.subr.bf16.mxu1 %v5155_v49 }
 0x185   : > { %4354 = vmatpush3.bf16.msra.mxu0 %v4791_v24 }
 0x186   : > { %4332 = vmatmul.mubr.msk.bf16.vlgmr.msra.gmra.mxu1 %vm858_vm3, %v5496_v56  ;;  %4371 = vmatprep.subr.bf16.mxu0 %v5155_v49 }
 0x187   : > { %4336 = vmatpush3.bf16.msra.mxu1 %v4784_v55  ;;  %4343 = vmatprep.mubr.msk.bf16.mxu1 %vm5156_vm2, %v5155_v49 }
 0x188   : > { %4337 = vmatprep.subr.bf16.mxu1 %v5155_v49  ;;  %4356 = vmatmul.mubr.msk.bf16.vlgmr.msra.gmra.mxu0 %vm858_vm3, %v5496_v56 }
 0x189   : > { %4373 = vmatprep.mubr.msk.bf16.mxu0 %vm5156_vm2, %v5155_v49 }
 0x18b   : > { %4338 = vmatpush3.bf16.msra.mxu1 %v4785_v57 }
 0x18c   : > { %4339 = vmatprep.subr.bf16.mxu1 %v5155_v49 }
 0x18f   : > { %4340 = vmatpush3.bf16.msra.mxu1 %v4786_v58 }
 0x190   : > { %4341 = vmatprep.subr.bf16.mxu1 %v5155_v49 }
 0x193   : > { %4342 = vmatpush3.bf16.msra.mxu1 %v4787_v59 }
 0x194   : > { %4359 = vmatprep.subr.bf16.mxu1 %v5155_v49 }
 0x196   : > { %4344 = vmatmul.mubr.msk.bf16.vlgmr.msra.gmra.mxu1 %vm858_vm3, %v5496_v56 }
 0x197   : > { %4361 = vmatprep.mubr.msk.bf16.mxu1 %vm5156_vm2, %v5155_v49 }
 0x246   : > { %v896_v60 = vpop.f32.mrf.mxu1 }
 0x247   : > { %v897_v15 = vadd.f32 %v896_v60, %v833_v9 }
 0x248   : > { %v4333_v61 = vpop.f32.mrf.mxu1  ;;  %v1052_v52 = vpop.f32.mrf.mxu0 }
 0x249   : > { %v5539_v17 = vpack.c.bf16 %v897_v15, %v897_v15  ;;  %v1053_v55 = vadd.f32 %v1052_v52, %v993_v53 }
 0x24a   : > { %v899_v63 = vpop.f32.mrf.mxu1  ;;  %v4357_v54 = vpop.f32.mrf.mxu0 }
 0x24b   : > { %v900_v19 = vadd.f32 %v899_v63, %v833_v9  ;;  %v5580_v59 = vpack.c.bf16 %v1053_v55, %v1053_v55 }
 0x24c   : > { %v4334_v0 = vpop.f32.mrf.mxu1  ;;  %v1055_v56 = vpop.f32.mrf.mxu0 }
 0x24d   : > { %v5548_v20 = vpack.c.bf16 %v900_v19, %v900_v19  ;;  %v1056_v57 = vadd.f32 %v1055_v56, %v993_v53  ;;  %v1188_v61 = vsel %vm1186_vm7, %v5580_v59, 0 }
 0x24e   : > { %v4358_v58 = vpop.f32.mrf.mxu0  ;;  %4372 = vmatpush3.bf16.msra.mxu0 %v1188_v61 }
 0x24f   : > { %v5582_v60 = vpack.c.bf16 %v1056_v57, %v1056_v57  ;;  %4383 = vmatprep.subr.bf16.mxu0 %v5155_v49 }
 0x251   : > { %v1234_v62 = vsel %vm1186_vm7, %v5582_v60, 0 }
 0x256   : > { %v974_v6 = vpop.f32.mrf.mxu1 }
 0x257   : > { %v975_v7 = vadd.f32 %v974_v6, %v915_v4 }
 0x258   : > { %v4345_v8 = vpop.f32.mrf.mxu1 }
 0x259   : > { %v5530_v10 = vpack.c.bf16 %v975_v7, %v975_v7 }
 0x25a   : > { %v977_v11 = vpop.f32.mrf.mxu1 }
 0x25b   : > { %v978_v12 = vadd.f32 %v977_v11, %v915_v4  ;;  %v1070_v13 = vsel %vm1065_vm4, %v5530_v10, 0 }
 0x25c   : > { %v4346_v14 = vpop.f32.mrf.mxu1  ;;  %4360 = vmatpush3.bf16.xpose.msra.mxu1 %v1070_v13 }
 0x25d   : > { %v5534_v16 = vpack.c.bf16 %v978_v12, %v978_v12  ;;  %4365 = vmatprep.subr.bf16.mxu1 %v5155_v49 }
 0x25f   : > { %1332 = vrot.lane.b32.xlu1 %v5534_v16, %s5157_s18  ;;  %v1116_v18 = vsel %vm1065_vm4, %v5534_v16, 0 }
 0x263   : > { %4362 = vmatmul.mubr.msk.bf16.vlgmr.msra.gmra.mxu1 %vm1065_vm4, %v5539_v17 }
 0x264   : > { %4366 = vmatpush3.bf16.xpose.msra.mxu1 %v1116_v18  ;;  %4367 = vmatprep.mubr.msk.bf16.mxu1 %vm5156_vm2, %v5155_v49 }
 0x265   : > { %4377 = vmatprep.subr.bf16.mxu1 %v5155_v49 }
 0x26b   : > { %4368 = vmatmul.mubr.msk.bf16.vlgmr.msra.gmra.mxu1 %vm1065_vm4, %v5548_v20 }
 0x26c   : > { %4379 = vmatprep.mubr.msk.bf16.mxu1 %vm5156_vm2, %v5155_v49  ;;  %4378 = vmatpush3.bf16.msra.mxu1 %v1234_v62 }
 0x26d   : > { %4389 = vmatprep.subr.bf16.mxu1 %v5155_v49 }
 0x2d1   : > { %v1333_v63 = vpop.permute.xlu1 %1332 }
 0x2d2   : > { %v1338_v18 = vsel %vm1065_vm4, %v1333_v63, 0 }
 0x323   : > { %v1106_v28 = vpop.f32.mrf.mxu1 }
 0x324   : > { %v1107_v29 = vadd.f32 %v1106_v28, %v5566_v27 }
 0x325   : > { %v4363_v30 = vpop.f32.mrf.mxu1 }
 0x326   : > { %v1159_v31 = vsel %vm1158_vm6, %v1107_v29, -inf }
 0x327   : > { %1160 = vmax.xlane.f32.xlu0 %v1159_v31  ;;  %v1109_v32 = vpop.f32.mrf.mxu1 }
 0x329   : > { %v4364_v33 = vpop.f32.mrf.mxu1 }
 0x32b   : > { %v1152_v34 = vpop.f32.mrf.mxu1 }
 0x32c   : > { %v1153_v35 = vadd.f32 %v1152_v34, %v5566_v27 }
 0x32d   : > { %v4369_v36 = vpop.f32.mrf.mxu1 }
 0x32e   : > { %v1162_v37 = vsel %vm1158_vm6, %v1153_v35, -inf }
 0x32f   : > { %1163 = vmax.xlane.f32.xlu0 %v1162_v37  ;;  %v1155_v38 = vpop.f32.mrf.mxu1 }
 0x331   : > { %v4370_v39 = vpop.f32.mrf.mxu1 }
 0x345   : > { %1280 = vrot.lane.b32.xlu0 %v5530_v10, %s5157_s18 }
 0x3b0   : > { %v1161_v40 = vpop.xlane.xlu0 %1160 }
 0x3b1   : > { %v1165_v41 = vsub.f32 %v1107_v29, %v1161_v40 }
 0x3b3   : > { %v1167_v42 = vmul.f32 1.442695, %v1165_v41 }
 0x3b5   : > { %4840 = vpow2.f32 %v1167_v42 }
 0x3b8   : > { %v1164_v43 = vpop.xlane.xlu0 %1163 }
 0x3b9   : > { %v1166_v44 = vsub.f32 %v1153_v35, %v1164_v43 }
 0x3bb   : > { %v1169_v45 = vmul.f32 1.442695, %v1166_v44 }
 0x3bc   : > { %v1281_v8 = vpop.permute.xlu0 %1280 }
 0x3bd   : > { %4842 = vpow2.f32 %v1169_v45  ;;  %v1286_v11 = vsel %vm1065_vm4, %v1281_v8, 0 }
 0x3c2   : > { %v4841_v46 = vpop.eup %4840 }
 0x3c3   : > { %v1171_v47 = vsel %vm1158_vm6, %v4841_v46, 0.0 }
 0x3c4   : > { %1172 = vadd.xlane.f32.xlu1 %v1171_v47 }
 0x3ca   : > { %v4843_v48 = vpop.eup %4842 }
 0x3cb   : > { %v1174_v50 = vsel %vm1158_vm6, %v4843_v48, 0.0 }
 0x3cc   : > { %1175 = vadd.xlane.f32.xlu1 %v1174_v50 }
 0x3dd   : > { %1277 = vrot.lane.b32.xlu1 %v5539_v17, %s5157_s18 }
 0x3e1   : > { %1329 = vrot.lane.b32.xlu1 %v5548_v20, %s5157_s18 }
 0x44d   : > { %v1173_v0 = vpop.xlane.xlu1 %1172 }
 0x44e   : > { %4844 = vrcp.f32 %v1173_v0 }
 0x455   : > { %v1176_v4 = vpop.xlane.xlu1 %1175 }
 0x456   : > { %4846 = vrcp.f32 %v1176_v4 }
 0x459   : > { %v1278_v15 = vpop.permute.xlu1 %1277 }
 0x45b   : > { %v4845_v6 = vpop.eup %4844 }
 0x45c   : > { %v1179_v7 = vmul.f32 %v4845_v6, %v4841_v46 }
 0x45d   : > { %v1330_v19 = vpop.permute.xlu1 %1329 }
 0x45e   : > { %v1181_v9 = vpack.c.bf16 %v1179_v7, %v1179_v7 }
 0x460   : > { %4374 = vmatmul.mubr.msk.bf16.vlgmr.msra.gmra.mxu0 %vm1158_vm6, %v1181_v9 }
 0x461   : > { %4384 = vmatpush3.bf16.xpose.msra.mxu0 %v1286_v11  ;;  %4385 = vmatprep.mubr.msk.bf16.mxu0 %vm5156_vm2, %v5155_v49 }
 0x462   : > { %4395 = vmatprep.subr.bf16.mxu0 %v5155_v49 }
 0x463   : > { %v4847_v12 = vpop.eup %4846 }
 0x464   : > { %v1180_v13 = vmul.f32 %v4847_v12, %v4843_v48 }
 0x466   : > { %v1182_v14 = vpack.c.bf16 %v1180_v13, %v1180_v13 }
 0x468   : > { %4380 = vmatmul.mubr.msk.bf16.vlgmr.msra.gmra.mxu1 %vm1158_vm6, %v1182_v14  ;;  %4386 = vmatmul.mubr.msk.bf16.vlgmr.msra.gmra.mxu0 %vm1065_vm4, %v1278_v15 }
 0x469   : > { %4390 = vmatpush3.bf16.xpose.msra.mxu1 %v1338_v18  ;;  %4391 = vmatprep.mubr.msk.bf16.mxu1 %vm5156_vm2, %v5155_v49 }
 0x46a   : > { %4401 = vmatprep.subr.bf16.mxu1 %v5155_v49  ;;  %4397 = vmatprep.mubr.msk.bf16.mxu0 %vm5156_vm2, %v5155_v49 }
 0x470   : > { %4392 = vmatmul.mubr.msk.bf16.vlgmr.msra.gmra.mxu1 %vm1065_vm4, %v1330_v19 }
 0x471   : > { %4403 = vmatprep.mubr.msk.bf16.mxu1 %vm5156_vm2, %v5155_v49 }
 0x520   : > { %v5610_v21 = vpop.f32.mrf.mxu0 }
 0x522   : > { %v4375_v22 = vpop.f32.mrf.mxu0 }
 0x524   : > { %v1227_v23 = vpop.f32.mrf.mxu0 }
 0x526   : > { %v4376_v24 = vpop.f32.mrf.mxu0 }
 0x528   : > { %v5612_v25 = vpop.f32.mrf.mxu1  ;;  %v1322_v26 = vpop.f32.mrf.mxu0 }
 0x529   : > { %v1323_v28 = vadd.f32 %v1322_v26, %v5566_v27 }
 0x52a   : > { %v4381_v29 = vpop.f32.mrf.mxu1  ;;  %v4387_v30 = vpop.f32.mrf.mxu0 }
 0x52b   : > { %v1380_v31 = vsel %vm1158_vm6, %v1323_v28, -inf }
 0x52c   : > { %1381 = vmax.xlane.f32.xlu0 %v1380_v31  ;;  %v1273_v32 = vpop.f32.mrf.mxu1  ;;  %v1325_v33 = vpop.f32.mrf.mxu0 }
 0x52e   : > { %v4382_v34 = vpop.f32.mrf.mxu1  ;;  %v4388_v35 = vpop.f32.mrf.mxu0 }
 0x530   : > { %v1374_v36 = vpop.f32.mrf.mxu1 }
 0x531   : > { %v1375_v37 = vadd.f32 %v1374_v36, %v5566_v27 }
 0x532   : > { %v4393_v38 = vpop.f32.mrf.mxu1 }
 0x533   : > { %v1383_v39 = vsel %vm1158_vm6, %v1375_v37, -inf }
 0x534   : > { %1384 = vmax.xlane.f32.xlu1 %v1383_v39  ;;  %v1377_v40 = vpop.f32.mrf.mxu1 }
 0x536   : > { %v4394_v41 = vpop.f32.mrf.mxu1 }
 0x545   : > { %1454 = vrot.lane.b32.xlu1 %v5582_v60, %s5157_s18 }
 0x549   : > { %1504 = vrot.lane.b32.xlu1 %v5530_v10, %s5159_s12 }
 0x54d   : > { %1554 = vrot.lane.b32.xlu1 %v5534_v16, %s5159_s12 }
 0x551   : > { %1552 = vrot.lane.b32.xlu1 %v5548_v20, %s5159_s12 }
 0x5b5   : > { %v1382_v42 = vpop.xlane.xlu0 %1381 }
 0x5b6   : > { %v1386_v43 = vsub.f32 %v1323_v28, %v1382_v42 }
 0x5b8   : > { %v1388_v44 = vmul.f32 1.442695, %v1386_v43 }
 0x5ba   : > { %4848 = vpow2.f32 %v1388_v44 }
 0x5bd   : > { %v1385_v45 = vpop.xlane.xlu1 %1384 }
 0x5be   : > { %v1387_v46 = vsub.f32 %v1375_v37, %v1385_v45 }
 0x5c0   : > { %v1390_v47 = vmul.f32 1.442695, %v1387_v46 }
 0x5c1   : > { %v1455_v48 = vpop.permute.xlu1 %1454 }
 0x5c2   : > { %4850 = vpow2.f32 %v1390_v47  ;;  %v1460_v50 = vsel %vm1186_vm7, %v1455_v48, 0 }
 0x5c3   : > { %4402 = vmatpush3.bf16.msra.mxu1 %v1460_v50 }
 0x5c4   : > { %4413 = vmatprep.subr.bf16.mxu1 %v5155_v49 }
 0x5c5   : > { %v1505_v0 = vpop.permute.xlu1 %1504 }
 0x5c6   : > { %v1510_v6 = vsel %vm1065_vm4, %v1505_v0, 0 }
 0x5c7   : > { %v4849_v52 = vpop.eup %4848 }
 0x5c8   : > { %v1392_v53 = vsel %vm1158_vm6, %v4849_v52, 0.0 }
 0x5c9   : > { %1393 = vadd.xlane.f32.xlu0 %v1392_v53  ;;  %v1555_v9 = vpop.permute.xlu1 %1554 }
 0x5ca   : > { %v1560_v13 = vsel %vm1065_vm4, %v1555_v9, 0 }
 0x5cd   : > { %v1553_v14 = vpop.permute.xlu1 %1552 }
 0x5cf   : > { %v4851_v54 = vpop.eup %4850 }
 0x5d0   : > { %v1395_v55 = vsel %vm1158_vm6, %v4851_v54, 0.0 }
 0x5d1   : > { %1396 = vadd.xlane.f32.xlu0 %v1395_v55 }
 0x5e7   : > { %1405 = vrot.lane.b32.xlu0 %v5580_v59, %s5157_s18 }
 0x5eb   : > { %1502 = vrot.lane.b32.xlu0 %v5539_v17, %s5159_s12 }
 0x652   : > { %v1394_v56 = vpop.xlane.xlu0 %1393 }
 0x653   : > { %4852 = vrcp.f32 %v1394_v56 }
 0x65a   : > { %v1397_v57 = vpop.xlane.xlu0 %1396 }
 0x65b   : > { %4854 = vrcp.f32 %v1397_v57 }
 0x65e   : > { %v1406_v58 = vpop.permute.xlu0 %1405 }
 0x65f   : > { %v1411_v61 = vsel %vm1186_vm7, %v1406_v58, 0 }
 0x660   : > { %v4853_v62 = vpop.eup %4852  ;;  %4396 = vmatpush3.bf16.msra.mxu0 %v1411_v61 }
 0x661   : > { %4407 = vmatprep.subr.bf16.mxu0 %v5155_v49  ;;  %v1400_v63 = vmul.f32 %v4853_v62, %v4849_v52 }
 0x662   : > { %v1503_v12 = vpop.permute.xlu0 %1502 }
 0x663   : > { %v1402_v4 = vpack.c.bf16 %v1400_v63, %v1400_v63 }
 0x665   : > { %4398 = vmatmul.mubr.msk.bf16.vlgmr.msra.gmra.mxu0 %vm1158_vm6, %v1402_v4 }
 0x666   : > { %4408 = vmatpush3.bf16.xpose.msra.mxu0 %v1510_v6  ;;  %4409 = vmatprep.mubr.msk.bf16.mxu0 %vm5156_vm2, %v5155_v49 }
 0x667   : > { %4419 = vmatprep.subr.bf16.mxu0 %v5155_v49 }
 0x668   : > { %v4855_v7 = vpop.eup %4854 }
 0x669   : > { %v1401_v8 = vmul.f32 %v4855_v7, %v4851_v54 }
 0x66b   : > { %v1403_v11 = vpack.c.bf16 %v1401_v8, %v1401_v8 }
 0x66d   : > { %4404 = vmatmul.mubr.msk.bf16.vlgmr.msra.gmra.mxu1 %vm1158_vm6, %v1403_v11  ;;  %4410 = vmatmul.mubr.msk.bf16.vlgmr.msra.gmra.mxu0 %vm1065_vm4, %v1503_v12 }
 0x66e   : > { %4414 = vmatpush3.bf16.xpose.msra.mxu1 %v1560_v13  ;;  %4415 = vmatprep.mubr.msk.bf16.mxu1 %vm5156_vm2, %v5155_v49 }
 0x66f   : > { %4425 = vmatprep.subr.bf16.mxu1 %v5155_v49  ;;  %4421 = vmatprep.mubr.msk.bf16.mxu0 %vm5156_vm2, %v5155_v49 }
 0x675   : > { %4416 = vmatmul.mubr.msk.bf16.vlgmr.msra.gmra.mxu1 %vm1065_vm4, %v1553_v14 }
 0x676   : > { %4427 = vmatprep.mubr.msk.bf16.mxu1 %vm5156_vm2, %v5155_v49 }
 0x725   : > { %v5652_v15 = vpop.f32.mrf.mxu0 }
 0x727   : > { %v4399_v18 = vpop.f32.mrf.mxu0 }
 0x729   : > { %v1450_v19 = vpop.f32.mrf.mxu0 }
 0x72b   : > { %v4400_v22 = vpop.f32.mrf.mxu0 }
 0x72d   : > { %v5654_v23 = vpop.f32.mrf.mxu1  ;;  %v1546_v24 = vpop.f32.mrf.mxu0 }
 0x72e   : > { %v4750_v26 = vpack.i.bf16 %v5654_v23, %v5652_v15  ;;  %v1547_v28 = vadd.f32 %v1546_v24, %v5566_v27 }
 0x72f   : > { %v4405_v29 = vpop.f32.mrf.mxu1  ;;  %v4411_v30 = vpop.f32.mrf.mxu0 }
 0x730   : > { %v1602_v31 = vsel %vm1158_vm6, %v1547_v28, -inf }
 0x731   : > { %1603 = vmax.xlane.f32.xlu0 %v1602_v31  ;;  %v1499_v32 = vpop.f32.mrf.mxu1  ;;  %v1549_v33 = vpop.f32.mrf.mxu0 }
 0x733   : > { %v4406_v34 = vpop.f32.mrf.mxu1  ;;  %v4412_v35 = vpop.f32.mrf.mxu0 }
 0x735   : > { %v1596_v36 = vpop.f32.mrf.mxu1 }
 0x736   : > { %v1597_v37 = vadd.f32 %v1596_v36, %v5566_v27 }
 0x737   : > { %v4417_v38 = vpop.f32.mrf.mxu1 }
 0x738   : > { %v1605_v39 = vsel %vm1158_vm6, %v1597_v37, -inf }
 0x739   : > { %1606 = vmax.xlane.f32.xlu1 %v1605_v39  ;;  %v1599_v40 = vpop.f32.mrf.mxu1 }
 0x73b   : > { %v4418_v41 = vpop.f32.mrf.mxu1 }
 0x74a   : > { %1674 = vrot.lane.b32.xlu1 %v5582_v60, %s5159_s12 }
 0x74e   : > { %1724 = vrot.lane.b32.xlu1 %v5530_v10, %s5160_s14 }
 0x752   : > { %1774 = vrot.lane.b32.xlu1 %v5534_v16, %s5160_s14 }
 0x756   : > { %1772 = vrot.lane.b32.xlu1 %v5548_v20, %s5160_s14 }
 0x7ba   : > { %v1604_v42 = vpop.xlane.xlu0 %1603 }
 0x7bb   : > { %v1608_v43 = vsub.f32 %v1547_v28, %v1604_v42 }
 0x7bd   : > { %v1610_v44 = vmul.f32 1.442695, %v1608_v43 }
 0x7bf   : > { %4856 = vpow2.f32 %v1610_v44 }
 0x7c2   : > { %v1607_v45 = vpop.xlane.xlu1 %1606 }
 0x7c3   : > { %v1609_v46 = vsub.f32 %v1597_v37, %v1607_v45 }
 0x7c5   : > { %v1612_v47 = vmul.f32 1.442695, %v1609_v46 }
 0x7c6   : > { %v1675_v48 = vpop.permute.xlu1 %1674 }
 0x7c7   : > { %4858 = vpow2.f32 %v1612_v47  ;;  %v1680_v50 = vsel %vm1186_vm7, %v1675_v48, 0 }
 0x7c8   : > { %4426 = vmatpush3.bf16.msra.mxu1 %v1680_v50 }
 0x7c9   : > { %4437 = vmatprep.subr.bf16.mxu1 %v5155_v49 }
 0x7ca   : > { %v1725_v61 = vpop.permute.xlu1 %1724 }
 0x7cb   : > { %v1730_v63 = vsel %vm1065_vm4, %v1725_v61, 0  ;;  %v4795_v61 = vld [vmem:[%s5413_s13 + $0x60] sm:$0xff]  }
 0x7cc   : > { %v4857_v10 = vpop.eup %4856 }
 0x7cd   : > { %v1614_v16 = vsel %vm1158_vm6, %v4857_v10, 0.0 }
 0x7ce   : > { %1615 = vadd.xlane.f32.xlu0 %v1614_v16  ;;  %v1775_v4 = vpop.permute.xlu1 %1774 }
 0x7cf   : > { %v1780_v8 = vsel %vm1065_vm4, %v1775_v4, 0 }
 0x7d2   : > { %v1773_v9 = vpop.permute.xlu1 %1772 }
 0x7d4   : > { %v4859_v52 = vpop.eup %4858 }
 0x7d5   : > { %v1617_v20 = vsel %vm1158_vm6, %v4859_v52, 0.0 }
 0x7d6   : > { %1618 = vadd.xlane.f32.xlu0 %v1617_v20 }
 0x7ec   : > { %1626 = vrot.lane.b32.xlu0 %v5580_v59, %s5159_s12 }
 0x7f0   : > { %1722 = vrot.lane.b32.xlu0 %v5539_v17, %s5160_s14 }
 0x857   : > { %v1616_v53 = vpop.xlane.xlu0 %1615 }
 0x858   : > { %4860 = vrcp.f32 %v1616_v53 }
 0x85f   : > { %v1619_v54 = vpop.xlane.xlu0 %1618 }
 0x860   : > { %4862 = vrcp.f32 %v1619_v54 }
 0x863   : > { %v1627_v55 = vpop.permute.xlu0 %1626 }
 0x864   : > { %v1632_v56 = vsel %vm1186_vm7, %v1627_v55, 0 }
 0x865   : > { %v4861_v57 = vpop.eup %4860  ;;  %4420 = vmatpush3.bf16.msra.mxu0 %v1632_v56  ;;  %v4792_v56 = vld [vmem:[%s5413_s13 + $0x78] sm:$0xff]  }
 0x866   : > { %4431 = vmatprep.subr.bf16.mxu0 %v5155_v49  ;;  %v1622_v58 = vmul.f32 %v4861_v57, %v4857_v10  ;;  %v4793_v57 = vld [vmem:[%s5413_s13 + $0x70] sm:$0xff]  }
 0x867   : > { %v1723_v7 = vpop.permute.xlu0 %1722 }
 0x868   : > { %v1624_v62 = vpack.c.bf16 %v1622_v58, %v1622_v58  ;;  %v4794_v58 = vld [vmem:[%s5413_s13 + $0x68] sm:$0xff]  }
 0x86a   : > { %4422 = vmatmul.mubr.msk.bf16.vlgmr.msra.gmra.mxu0 %vm1158_vm6, %v1624_v62 }
 0x86b   : > { %4432 = vmatpush3.bf16.xpose.msra.mxu0 %v1730_v63  ;;  %4433 = vmatprep.mubr.msk.bf16.mxu0 %vm5156_vm2, %v5155_v49 }
 0x86c   : > { %4443 = vmatprep.subr.bf16.mxu0 %v5155_v49 }
 0x86d   : > { %v4863_v17 = vpop.eup %4862 }
 0x86e   : > { %v1623_v0 = vmul.f32 %v4863_v17, %v4859_v52 }
 0x870   : > { %v1625_v6 = vpack.c.bf16 %v1623_v0, %v1623_v0 }
 0x872   : > { %4428 = vmatmul.mubr.msk.bf16.vlgmr.msra.gmra.mxu1 %vm1158_vm6, %v1625_v6  ;;  %4434 = vmatmul.mubr.msk.bf16.vlgmr.msra.gmra.mxu0 %vm1065_vm4, %v1723_v7 }
 0x873   : > { %4438 = vmatpush3.bf16.xpose.msra.mxu1 %v1780_v8  ;;  %4439 = vmatprep.mubr.msk.bf16.mxu1 %vm5156_vm2, %v5155_v49 }
 0x874   : > { %4449 = vmatprep.subr.bf16.mxu1 %v5155_v49  ;;  %4445 = vmatprep.mubr.msk.bf16.mxu0 %vm5156_vm2, %v5155_v49 }
 0x87a   : > { %4440 = vmatmul.mubr.msk.bf16.vlgmr.msra.gmra.mxu1 %vm1065_vm4, %v1773_v9 }
 0x87b   : > { %4451 = vmatprep.mubr.msk.bf16.mxu1 %vm5156_vm2, %v5155_v49 }
 0x92a   : > { %v1668_v11 = vpop.f32.mrf.mxu0 }
 0x92c   : > { %v4423_v12 = vpop.f32.mrf.mxu0 }
 0x92e   : > { %v1671_v13 = vpop.f32.mrf.mxu0 }
 0x930   : > { %v4424_v14 = vpop.f32.mrf.mxu0 }
 0x932   : > { %v1716_v18 = vpop.f32.mrf.mxu1  ;;  %v1766_v19 = vpop.f32.mrf.mxu0 }
 0x933   : > { %v1767_v22 = vadd.f32 %v1766_v19, %v5566_v27  ;;  %v4755_v40 = vpack.i.bf16 %v1716_v18, %v1668_v11 }
 0x934   : > { %v4429_v24 = vpop.f32.mrf.mxu1  ;;  %v4435_v28 = vpop.f32.mrf.mxu0 }
 0x935   : > { %v1822_v29 = vsel %vm1158_vm6, %v1767_v22, -inf }
 0x936   : > { %1823 = vmax.xlane.f32.xlu0 %v1822_v29  ;;  %v1719_v30 = vpop.f32.mrf.mxu1  ;;  %v1769_v31 = vpop.f32.mrf.mxu0 }
 0x938   : > { %v4430_v32 = vpop.f32.mrf.mxu1  ;;  %v4436_v33 = vpop.f32.mrf.mxu0 }
 0x93a   : > { %v1816_v34 = vpop.f32.mrf.mxu1 }
 0x93b   : > { %v1817_v35 = vadd.f32 %v1816_v34, %v5566_v27 }
 0x93c   : > { %v4441_v36 = vpop.f32.mrf.mxu1 }
 0x93d   : > { %v1825_v37 = vsel %vm1158_vm6, %v1817_v35, -inf }
 0x93e   : > { %1826 = vmax.xlane.f32.xlu1 %v1825_v37  ;;  %v1819_v38 = vpop.f32.mrf.mxu1 }
 0x940   : > { %v4442_v39 = vpop.f32.mrf.mxu1 }
 0x941   : > { %v4916_v39 = vld [vmem:[#allocation2] sm:$0xff] }
 0x94f   : > { %1894 = vrot.lane.b32.xlu1 %v5582_v60, %s5160_s14 }
 0x953   : > { %4751 = vrot.lane.b32.xlu1 %v4750_v26, %s5161_s29 }
 0x957   : > { %4756 = vrot.lane.b32.xlu1 %v4755_v40, %s5162_s4 }
 0x9bf   : > { %v1824_v27 = vpop.xlane.xlu0 %1823 }
 0x9c0   : > { %v1828_v41 = vsub.f32 %v1767_v22, %v1824_v27 }
 0x9c2   : > { %v1830_v42 = vmul.f32 1.442695, %v1828_v41 }
 0x9c4   : > { %4864 = vpow2.f32 %v1830_v42 }
 0x9c7   : > { %v1827_v43 = vpop.xlane.xlu1 %1826 }
 0x9c8   : > { %v1829_v44 = vsub.f32 %v1817_v35, %v1827_v43 }
 0x9ca   : > { %v1832_v45 = vmul.f32 1.442695, %v1829_v44  ;;  %v4917_v44 = vld [vmem:[#allocation2 + $0x8] sm:$0xff] }
 0x9cb   : > { %v1895_v46 = vpop.permute.xlu1 %1894 }
 0x9cc   : > { %4866 = vpow2.f32 %v1832_v45  ;;  %v1900_v60 = vsel %vm1186_vm7, %v1895_v46, 0 }
 0x9cd   : > { %4450 = vmatpush3.bf16.msra.mxu1 %v1900_v60 }
 0x9ce   : > { %4467 = vmatprep.subr.bf16.mxu1 %v5155_v49 }
 0x9cf   : > { %v4752_v11 = vpop.permute.xlu1 %4751 }
 0x9d0   : > { %v4754_v13 = vunpack.i.h.bf16 %v4752_v11  ;;  %v4753_v14 = vunpack.i.l.bf16 %v4752_v11 }
 0x9d1   : > { %v4865_v15 = vpop.eup %4864 }
 0x9d2   : > { %v1834_v23 = vsel %vm1158_vm6, %v4865_v15, 0.0  ;;  %v1967_v24 = vsel %vm1065_vm4, %v5612_v25, %v4754_v13  ;;  %v1966_v28 = vsel %vm1065_vm4, %v5610_v21, %v4753_v14  ;;  %v1986_v25 = vsub.s32 3, %v5514_v1 }
 0x9d3   : > { %1835 = vadd.xlane.f32.xlu0 %v1834_v23  ;;  %v4757_v12 = vpop.permute.xlu1 %4756  ;;  %v2093_v14 = vsub.s32 5, %v5514_v1 }
 0x9d4   : > { %v4759_v18 = vunpack.i.h.bf16 %v4757_v12  ;;  %v4758_v19 = vunpack.i.l.bf16 %v4757_v12  ;;  %v1987_v21 = vrot.slane %v5521_v3, %v1986_v25 }
 0x9d6   : > { %v1969_v31 = vsel %vm1968_vm8, %v1966_v28, %v4758_v19  ;;  %v1970_v32 = vsel %vm1968_vm8, %v1967_v24, %v4759_v18  ;;  %v2094_v24 = vrot.slane %v5521_v3, %v2093_v14 }
 0x9d9   : > { %v4867_v26 = vpop.eup %4866 }
 0x9da   : > { %v1837_v47 = vsel %vm1158_vm6, %v4867_v26, 0.0 }
 0x9db   : > { %1838 = vadd.xlane.f32.xlu0 %v1837_v47 }
 0x9f1   : > { %1846 = vrot.lane.b32.xlu0 %v5580_v59, %s5160_s14 }
 0xa5c   : > { %v1836_v48 = vpop.xlane.xlu0 %1835 }
 0xa5d   : > { %4868 = vrcp.f32 %v1836_v48 }
 0xa64   : > { %v1839_v50 = vpop.xlane.xlu0 %1838 }
 0xa65   : > { %4870 = vrcp.f32 %v1839_v50 }
 0xa68   : > { %v1847_v10 = vpop.permute.xlu0 %1846 }
 0xa69   : > { %v1852_v16 = vsel %vm1186_vm7, %v1847_v10, 0 }
 0xa6a   : > { %v4869_v52 = vpop.eup %4868  ;;  %4444 = vmatpush3.bf16.msra.mxu0 %v1852_v16 }
 0xa6b   : > { %v1842_v20 = vmul.f32 %v4869_v52, %v4865_v15  ;;  %4455 = vmatprep.subr.bf16.mxu0 %v5155_v49 }
 0xa6d   : > { %v1844_v53 = vpack.c.bf16 %v1842_v20, %v1842_v20  ;;  %v4796_v20 = vld [vmem:[%s5413_s13 + $0xb8] sm:$0xff]  }
 0xa6f   : > { %4446 = vmatmul.mubr.msk.bf16.vlgmr.msra.gmra.mxu0 %vm1158_vm6, %v1844_v53  ;;  %v4797_v53 = vld [vmem:[%s5413_s13 + $0xb0] sm:$0xff]  }
 0xa70   : > { %4463 = vmatprep.mubr.msk.bf16.mxu0 %vm5156_vm2, %v5155_v49  ;;  %4456 = vmatpush3.bf16.msra.mxu0 %v4792_v56  ;;  %v819_v56 = vld [vmem:[#allocation3] sm:$0xff] }
 0xa71   : > { %4457 = vmatprep.subr.bf16.mxu0 %v5155_v49 }
 0xa72   : > { %v4871_v59 = vpop.eup %4870 }
 0xa73   : > { %v1843_v54 = vmul.f32 %v4871_v59, %v4867_v26  ;;  %v4798_v59 = vld [vmem:[%s5413_s13 + $0xa8] sm:$0xff]  }
 0xa74   : > { %4458 = vmatpush3.bf16.msra.mxu0 %v4793_v57  ;;  %v820_v57 = vld [vmem:[#allocation3 + $0x8] sm:$0xff] }
 0xa75   : > { %v1845_v55 = vpack.c.bf16 %v1843_v54, %v1843_v54  ;;  %4459 = vmatprep.subr.bf16.mxu0 %v5155_v49  ;;  %v4799_v54 = vld [vmem:[%s5413_s13 + $0xa0] sm:$0xff]  }
 0xa77   : > { %4452 = vmatmul.mubr.msk.bf16.vlgmr.msra.gmra.mxu1 %vm1158_vm6, %v1845_v55  ;;  %v4800_v55 = vld [vmem:[%s5413_s13 + $0x98] sm:$0xff]  }
 0xa78   : > { %4475 = vmatprep.mubr.msk.bf16.mxu1 %vm5156_vm2, %v5155_v49  ;;  %4460 = vmatpush3.bf16.msra.mxu0 %v4794_v58  ;;  %v2188_v58 = vpack.c.bf16 %v820_v57, %v819_v56 }
 0xa79   : > { %4461 = vmatprep.subr.bf16.mxu0 %v5155_v49  ;;  %4468 = vmatpush3.bf16.msra.mxu1 %v4800_v55 }
 0xa7a   : > { %4469 = vmatprep.subr.bf16.mxu1 %v5155_v49 }
 0xa7c   : > { %4462 = vmatpush3.bf16.msra.mxu0 %v4795_v61  ;;  %v4801_v61 = vld [vmem:[%s5413_s13 + $0x90] sm:$0xff]  }
 0xa7d   : > { %4479 = vmatprep.subr.bf16.mxu0 %v5155_v49  ;;  %4470 = vmatpush3.bf16.msra.mxu1 %v4801_v61 }
 0xa7e   : > { %4471 = vmatprep.subr.bf16.mxu1 %v5155_v49 }
 0xb2f   : > { %v1888_v62 = vpop.f32.mrf.mxu0 }
 0xb31   : > { %v4447_v63 = vpop.f32.mrf.mxu0 }
 0xb32   : > { %v4803_v63 = vld [vmem:[%s5413_s13 + $0x80] sm:$0xff]  }
 0xb33   : > { %v1891_v17 = vpop.f32.mrf.mxu0 }
 0xb35   : > { %v4448_v0 = vpop.f32.mrf.mxu0 }
 0xb37   : > { %v1936_v4 = vpop.f32.mrf.mxu1 }
 0xb38   : > { %v4760_v6 = vpack.i.bf16 %v1936_v4, %v1888_v62  ;;  %v4802_v62 = vld [vmem:[%s5413_s13 + $0x88] sm:$0xff]  }
 0xb39   : > { %v4453_v7 = vpop.f32.mrf.mxu1  ;;  %4472 = vmatpush3.bf16.msra.mxu1 %v4802_v62 }
 0xb3a   : > { %4761 = vrot.lane.b32.xlu0 %v4760_v6, %s5163_s25  ;;  %4473 = vmatprep.subr.bf16.mxu1 %v5155_v49 }
 0xb3b   : > { %v1939_v8 = vpop.f32.mrf.mxu1 }
 0xb3d   : > { %v4454_v9 = vpop.f32.mrf.mxu1  ;;  %4474 = vmatpush3.bf16.msra.mxu1 %v4803_v63 }
 0xb3e   : > { %4491 = vmatprep.subr.bf16.mxu1 %v5155_v49  ;;  %v2087_v9 = vsub.s32 4, %v5514_v1 }
 0xb40   : > { %v2088_v13 = vrot.slane %v5521_v3, %v2087_v9 }
 0xbac   : > { %v4762_v22 = vpop.permute.xlu0 %4761 }
 0xbad   : > { %v4764_v29 = vunpack.i.h.bf16 %v4762_v22  ;;  %v4763_v30 = vunpack.i.l.bf16 %v4762_v22 }
 0xbaf   : > { %v1973_v33 = vsel %vm1971_vm9, %v1970_v32, %v4764_v29  ;;  %v1972_v34 = vsel %vm1971_vm9, %v1969_v31, %v4763_v30  ;;  %v4804_v31 = vld [vmem:[%s5413_s13 + $0xd8] sm:$0xff]  }
 0xbb0   : > { %v1983_v35 = vpack.c.bf16 %v1973_v33, %v1972_v34  ;;  %v4805_v33 = vld [vmem:[%s5413_s13 + $0xd0] sm:$0xff]   ;;  %v4806_v34 = vld [vmem:[%s5413_s13 + $0xc8] sm:$0xff]  }
 0xbb2   : > { %4464 = vmatmul.mubr.msk.bf16.vlgmr.msra.gmra.mxu0 %vm858_vm3, %v1983_v35  ;;  %v4807_v35 = vld [vmem:[%s5413_s13 + $0xc0] sm:$0xff]  }
 0xbb3   : > { %4487 = vmatprep.mubr.msk.bf16.mxu0 %vm5156_vm2, %v5155_v49  ;;  %4480 = vmatpush3.bf16.msra.mxu0 %v4796_v20 }
 0xbb4   : > { %4481 = vmatprep.subr.bf16.mxu0 %v5155_v49 }
 0xbb7   : > { %4482 = vmatpush3.bf16.msra.mxu0 %v4797_v53 }
 0xbb8   : > { %4483 = vmatprep.subr.bf16.mxu0 %v5155_v49 }
 0xbbb   : > { %4484 = vmatpush3.bf16.msra.mxu0 %v4798_v59  ;;  %v5826_v59 = vld [vmem:[%s6131_s17 + $0x8] sm:$0xff] }
 0xbbc   : > { %4485 = vmatprep.subr.bf16.mxu0 %v5155_v49 }
 0xbbf   : > { %4486 = vmatpush3.bf16.msra.mxu0 %v4799_v54  ;;  %v2273_v54 = vrot.slane %v5826_v59, %v5526_v5 }
 0xbc0   : > { %4503 = vmatprep.subr.bf16.mxu0 %v5155_v49 }
 0xbc2   : > { %4488 = vmatmul.mubr.msk.bf16.vlgmr.msra.gmra.mxu0 %vm858_vm3, %v2188_v58 }
 0xbc3   : > { %4505 = vmatprep.mubr.msk.bf16.mxu0 %vm5156_vm2, %v5155_v49 }
 0xc72   : > { %v2049_v36 = vpop.f32.mrf.mxu0 }
 0xc73   : > { %v2050_v37 = vadd.f32 %v2049_v36, %v1987_v21 }
 0xc74   : > { %v4465_v38 = vpop.f32.mrf.mxu0 }
 0xc75   : > { %v2056_v40 = vadd.f32 %v4916_v39, %v2050_v37 }
 0xc76   : > { %v2052_v27 = vpop.f32.mrf.mxu0 }
 0xc77   : > { %v2053_v41 = vadd.f32 %v2052_v27, %v1987_v21  ;;  %v2058_v42 = vsel %vm858_vm3, %v2056_v40, 0.0  ;;  %v2191_v21 = vsub.s32 7, %v5514_v1 }
 0xc78   : > { %2059 = vadd.xlane.f32.xlu1 %v2058_v42  ;;  %v4466_v43 = vpop.f32.mrf.mxu0 }
 0xc79   : > { %v2057_v45 = vadd.f32 %v4917_v44, %v2053_v41  ;;  %v2192_v36 = vrot.slane %v5521_v3, %v2191_v21 }
 0xc7b   : > { %v2061_v46 = vsel %vm858_vm3, %v2057_v45, 0.0 }
 0xc7c   : > { %2062 = vadd.xlane.f32.xlu0 %v2061_v46  ;;  %v2109_v46 = vsub.s32 6, %v5514_v1 }
 0xc82   : > { %v2254_v37 = vpop.f32.mrf.mxu0 }
 0xc83   : > { %v2255_v38 = vadd.f32 %v2254_v37, %v2192_v36 }
 0xc84   : > { %v4489_v39 = vpop.f32.mrf.mxu0 }
 0xc86   : > { %v2257_v27 = vpop.f32.mrf.mxu0 }
 0xc87   : > { %v2258_v41 = vadd.f32 %v2257_v27, %v2192_v36 }
 0xc88   : > { %v4490_v43 = vpop.f32.mrf.mxu0 }
 0xc89   : > { %v5802_v44 = vpack.c.bf16 %v2258_v41, %v2258_v41 }
 0xd01   : > { %v2060_v60 = vpop.xlane.xlu1 %2059 }
 0xd02   : > { %v2065_v15 = vmul.f32 0.015625, %v2060_v60  ;;  %v2110_v60 = vrot.slane %v5521_v3, %v2109_v46 }
 0xd04   : > { %v2067_v23 = vsub.f32 %v2056_v40, %v2065_v15  ;;  %v5798_v40 = vpack.c.bf16 %v2255_v38, %v2255_v38 }
 0xd05   : > { %v2063_v26 = vpop.xlane.xlu0 %2062 }
 0xd06   : > { %v2066_v47 = vmul.f32 0.015625, %v2063_v26  ;;  %v2069_v48 = vmul.f32 %v2067_v23, %v2067_v23  ;;  %v2349_v42 = vsel %vm1065_vm4, %v5798_v40, 0 }
 0xd07   : > { %4504 = vmatpush3.bf16.xpose.msra.mxu0 %v2349_v42 }
 0xd08   : > { %v2068_v50 = vsub.f32 %v2057_v45, %v2066_v47  ;;  %v2071_v10 = vsel %vm858_vm3, %v2069_v48, 0.0  ;;  %4515 = vmatprep.subr.bf16.mxu0 %v5155_v49  ;;  %v2395_v45 = vsel %vm1065_vm4, %v5802_v44, 0 }
 0xd09   : > { %2072 = vadd.xlane.f32.xlu0 %v2071_v10 }
 0xd0a   : > { %v2070_v16 = vmul.f32 %v2068_v50, %v2068_v50 }
 0xd0c   : > { %v2074_v52 = vsel %vm858_vm3, %v2070_v16, 0.0 }
 0xd0d   : > { %2075 = vadd.xlane.f32.xlu0 %v2074_v52 }
 0xd92   : > { %v2073_v17 = vpop.xlane.xlu0 %2072 }
 0xd93   : > { %v2077_v0 = vmul.f32 0.015625, %v2073_v17 }
 0xd95   : > { %v2079_v4 = vadd.f32 1e-05, %v2077_v0 }
 0xd96   : > { %v2076_v6 = vpop.xlane.xlu0 %2075 }
 0xd97   : > { %4872 = vrsqrt.f32 %v2079_v4  ;;  %v2078_v7 = vmul.f32 0.015625, %v2076_v6 }
 0xd99   : > { %v2080_v8 = vadd.f32 1e-05, %v2078_v7 }
 0xd9b   : > { %4874 = vrsqrt.f32 %v2080_v8 }
 0xda4   : > { %v4873_v11 = vpop.eup %4872 }
 0xda5   : > { %v2083_v12 = vmul.f32 %v4873_v11, %v2067_v23 }
 0xda7   : > { %v2089_v22 = vmul.f32 %v2088_v13, %v2083_v12 }
 0xda8   : > { %v4875_v18 = vpop.eup %4874 }
 0xda9   : > { %v2084_v19 = vmul.f32 %v4875_v18, %v2068_v50  ;;  %v5776_v29 = vadd.f32 %v2094_v24, %v2089_v22 }
 0xdab   : > { %v2090_v28 = vmul.f32 %v2088_v13, %v2084_v19 }
 0xdad   : > { %v5778_v30 = vadd.f32 %v2094_v24, %v2090_v28 }
 0xdaf   : > { %v2106_v32 = vpack.c.bf16 %v5778_v30, %v5776_v29 }
 0xdb1   : > { %4476 = vmatmul.mubr.msk.bf16.vlgmr.msra.gmra.mxu1 %vm858_vm3, %v2106_v32 }
 0xdb2   : > { %4492 = vmatpush3.bf16.msra.mxu1 %v4804_v31  ;;  %4499 = vmatprep.mubr.msk.bf16.mxu1 %vm5156_vm2, %v5155_v49 }
 0xdb3   : > { %4493 = vmatprep.subr.bf16.mxu1 %v5155_v49 }
 0xdb6   : > { %4494 = vmatpush3.bf16.msra.mxu1 %v4805_v33 }
 0xdb7   : > { %4495 = vmatprep.subr.bf16.mxu1 %v5155_v49 }
 0xdba   : > { %4496 = vmatpush3.bf16.msra.mxu1 %v4806_v34 }
 0xdbb   : > { %4497 = vmatprep.subr.bf16.mxu1 %v5155_v49 }
 0xdbe   : > { %4498 = vmatpush3.bf16.msra.mxu1 %v4807_v35 }
 0xdbf   : > { %4509 = vmatprep.subr.bf16.mxu1 %v5155_v49 }
 0xdc1   : > { %4500 = vmatmul.mubr.msk.bf16.vlgmr.msra.gmra.mxu1 %vm858_vm3, %v2188_v58 }
 0xdc2   : > { %4511 = vmatprep.mubr.msk.bf16.mxu1 %vm5156_vm2, %v5155_v49  ;;  %4510 = vmatpush3.bf16.xpose.msra.mxu1 %v2395_v45 }
 0xdc3   : > { %4521 = vmatprep.subr.bf16.mxu1 %v5155_v49 }
 0xe71   : > { %v2172_v15 = vpop.f32.mrf.mxu1 }
 0xe72   : > { %v2173_v23 = vadd.f32 %v2172_v15, %v2110_v60 }
 0xe73   : > { %v4477_v26 = vpop.f32.mrf.mxu1 }
 0xe74   : > { %v5812_v47 = vpack.c.bf16 %v2173_v23, %v2173_v23 }
 0xe75   : > { %v2175_v48 = vpop.f32.mrf.mxu1 }
 0xe76   : > { %v2176_v50 = vadd.f32 %v2175_v48, %v2110_v60  ;;  %4506 = vmatmul.mubr.msk.bf16.vlgmr.msra.gmra.mxu0 %vm1065_vm4, %v5812_v47 }
 0xe77   : > { %v4478_v10 = vpop.f32.mrf.mxu1  ;;  %4517 = vmatprep.mubr.msk.bf16.mxu0 %vm5156_vm2, %v5155_v49 }
 0xe78   : > { %v5818_v16 = vpack.c.bf16 %v2176_v50, %v2176_v50 }
 0xe7a   : > { %4512 = vmatmul.mubr.msk.bf16.vlgmr.msra.gmra.mxu1 %vm1065_vm4, %v5818_v16 }
 0xe7b   : > { %4523 = vmatprep.mubr.msk.bf16.mxu1 %vm5156_vm2, %v5155_v49 }
 0xe81   : > { %v2332_v3 = vpop.f32.mrf.mxu1 }
 0xe82   : > { %v2333_v55 = vadd.f32 %v2332_v3, %v2273_v54 }
 0xe83   : > { %v4501_v52 = vpop.f32.mrf.mxu1 }
 0xe84   : > { %v5830_v57 = vpack.c.bf16 %v2333_v55, %v2333_v55 }
 0xe85   : > { %v2335_v20 = vpop.f32.mrf.mxu1 }
 0xe86   : > { %v2336_v56 = vadd.f32 %v2335_v20, %v2273_v54  ;;  %v2465_v61 = vsel %vm1186_vm7, %v5830_v57, 0 }
 0xe87   : > { %v4502_v53 = vpop.f32.mrf.mxu1  ;;  %4516 = vmatpush3.bf16.msra.mxu0 %v2465_v61 }
 0xe88   : > { %v5832_v58 = vpack.c.bf16 %v2336_v56, %v2336_v56  ;;  %4527 = vmatprep.subr.bf16.mxu0 %v5155_v49 }
 0xe8a   : > { %v2511_v62 = vsel %vm1186_vm7, %v5832_v58, 0 }
 0xe8b   : > { %4522 = vmatpush3.bf16.msra.mxu1 %v2511_v62 }
 0xe8c   : > { %4533 = vmatprep.subr.bf16.mxu1 %v5155_v49 }
 0xf36   : > { %v2385_v63 = vpop.f32.mrf.mxu0 }
 0xf37   : > { %v2437_v17 = vsel %vm1158_vm6, %v2385_v63, -inf }
 0xf38   : > { %2438 = vmax.xlane.f32.xlu1 %v2437_v17  ;;  %v4507_v0 = vpop.f32.mrf.mxu0 }
 0xf3a   : > { %v2388_v4 = vpop.f32.mrf.mxu0  ;;  %v2431_v6 = vpop.f32.mrf.mxu1 }
 0xf3b   : > { %v2440_v7 = vsel %vm1158_vm6, %v2431_v6, -inf }
 0xf3c   : > { %v4508_v8 = vpop.f32.mrf.mxu0  ;;  %2441 = vmax.xlane.f32.xlu0 %v2440_v7  ;;  %v4513_v11 = vpop.f32.mrf.mxu1 }
 0xf3e   : > { %v2434_v12 = vpop.f32.mrf.mxu1 }
 0xf40   : > { %v4514_v13 = vpop.f32.mrf.mxu1 }
 0xf49   : > { %2557 = vrot.lane.b32.xlu1 %v5798_v40, %s5157_s18 }
 0xfc1   : > { %v2439_v18 = vpop.xlane.xlu1 %2438 }
 0xfc2   : > { %v2443_v19 = vsub.f32 %v2385_v63, %v2439_v18 }
 0xfc4   : > { %v2445_v22 = vmul.f32 1.442695, %v2443_v19 }
 0xfc5   : > { %v2442_v24 = vpop.xlane.xlu0 %2441  ;;  %v2558_v21 = vpop.permute.xlu1 %2557 }
 0xfc6   : > { %4876 = vpow2.f32 %v2445_v22  ;;  %v2444_v28 = vsub.f32 %v2431_v6, %v2442_v24  ;;  %v2563_v42 = vsel %vm1065_vm4, %v2558_v21, 0 }
 0xfc8   : > { %v2447_v31 = vmul.f32 1.442695, %v2444_v28 }
 0xfca   : > { %4878 = vpow2.f32 %v2447_v31 }
 0xfd3   : > { %v4877_v32 = vpop.eup %4876 }
 0xfd4   : > { %v2449_v33 = vsel %vm1158_vm6, %v4877_v32, 0.0 }
 0xfd5   : > { %2450 = vadd.xlane.f32.xlu1 %v2449_v33 }
 0xfd7   : > { %v4879_v34 = vpop.eup %4878 }
 0xfd8   : > { %v2452_v35 = vsel %vm1158_vm6, %v4879_v34, 0.0 }
 0xfd9   : > { %2453 = vadd.xlane.f32.xlu0 %v2452_v35 }
 0xfe6   : > { %2554 = vrot.lane.b32.xlu1 %v5812_v47, %s5157_s18 }
 0xfea   : > { %2606 = vrot.lane.b32.xlu1 %v5818_v16, %s5157_s18 }
 0xfef   : > { %2609 = vrot.lane.b32.xlu0 %v5802_v44, %s5157_s18 }
0x105e   : > { %v2451_v36 = vpop.xlane.xlu1 %2450 }
0x105f   : > { %4880 = vrcp.f32 %v2451_v36 }
0x1062   : > { %v2454_v37 = vpop.xlane.xlu0 %2453  ;;  %v2555_v23 = vpop.permute.xlu1 %2554 }
0x1063   : > { %4882 = vrcp.f32 %v2454_v37 }
0x1066   : > { %v2610_v45 = vpop.permute.xlu0 %2609  ;;  %v2607_v26 = vpop.permute.xlu1 %2606 }
0x1067   : > { %v2615_v15 = vsel %vm1065_vm4, %v2610_v45, 0 }
0x106c   : > { %v4881_v38 = vpop.eup %4880 }
0x106d   : > { %v2457_v39 = vmul.f32 %v4881_v38, %v4877_v32 }
0x106f   : > { %v2459_v27 = vpack.c.bf16 %v2457_v39, %v2457_v39 }
0x1070   : > { %v4883_v41 = vpop.eup %4882 }
0x1071   : > { %4518 = vmatmul.mubr.msk.bf16.vlgmr.msra.gmra.mxu0 %vm1158_vm6, %v2459_v27  ;;  %v2458_v43 = vmul.f32 %v4883_v41, %v4879_v34 }
0x1072   : > { %4528 = vmatpush3.bf16.xpose.msra.mxu0 %v2563_v42  ;;  %4529 = vmatprep.mubr.msk.bf16.mxu0 %vm5156_vm2, %v5155_v49 }
0x1073   : > { %v2460_v60 = vpack.c.bf16 %v2458_v43, %v2458_v43  ;;  %4539 = vmatprep.subr.bf16.mxu0 %v5155_v49 }
0x1075   : > { %4524 = vmatmul.mubr.msk.bf16.vlgmr.msra.gmra.mxu1 %vm1158_vm6, %v2460_v60 }
0x1076   : > { %4534 = vmatpush3.bf16.xpose.msra.mxu1 %v2615_v15  ;;  %4535 = vmatprep.mubr.msk.bf16.mxu1 %vm5156_vm2, %v5155_v49 }
0x1077   : > { %4545 = vmatprep.subr.bf16.mxu1 %v5155_v49 }
0x1079   : > { %4530 = vmatmul.mubr.msk.bf16.vlgmr.msra.gmra.mxu0 %vm1065_vm4, %v2555_v23 }
0x107a   : > { %4541 = vmatprep.mubr.msk.bf16.mxu0 %vm5156_vm2, %v5155_v49 }
0x107d   : > { %4536 = vmatmul.mubr.msk.bf16.vlgmr.msra.gmra.mxu1 %vm1065_vm4, %v2607_v26 }
0x107e   : > { %4547 = vmatprep.mubr.msk.bf16.mxu1 %vm5156_vm2, %v5155_v49 }
0x1131   : > { %v5868_v48 = vpop.f32.mrf.mxu0 }
0x1133   : > { %v4519_v50 = vpop.f32.mrf.mxu0 }
0x1135   : > { %v2504_v10 = vpop.f32.mrf.mxu0  ;;  %v5870_v3 = vpop.f32.mrf.mxu1 }
0x1137   : > { %v4520_v52 = vpop.f32.mrf.mxu0  ;;  %v4525_v20 = vpop.f32.mrf.mxu1 }
0x1139   : > { %v2550_v53 = vpop.f32.mrf.mxu1  ;;  %v2599_v54 = vpop.f32.mrf.mxu0 }
0x113a   : > { %v2657_v55 = vsel %vm1158_vm6, %v2599_v54, -inf }
0x113b   : > { %2658 = vmax.xlane.f32.xlu1 %v2657_v55  ;;  %v4526_v56 = vpop.f32.mrf.mxu1  ;;  %v4531_v61 = vpop.f32.mrf.mxu0 }
0x113d   : > { %v2602_v62 = vpop.f32.mrf.mxu0  ;;  %v2651_v63 = vpop.f32.mrf.mxu1 }
0x113e   : > { %v2660_v17 = vsel %vm1158_vm6, %v2651_v63, -inf }
0x113f   : > { %v4532_v0 = vpop.f32.mrf.mxu0  ;;  %2661 = vmax.xlane.f32.xlu0 %v2660_v17  ;;  %v4537_v4 = vpop.f32.mrf.mxu1 }
0x1141   : > { %v2654_v6 = vpop.f32.mrf.mxu1 }
0x1143   : > { %v4538_v7 = vpop.f32.mrf.mxu1 }
0x114c   : > { %2682 = vrot.lane.b32.xlu1 %v5830_v57, %s5157_s18 }
0x1150   : > { %2781 = vrot.lane.b32.xlu1 %v5798_v40, %s5159_s12 }
0x1154   : > { %2831 = vrot.lane.b32.xlu1 %v5802_v44, %s5159_s12 }
0x1158   : > { %2779 = vrot.lane.b32.xlu1 %v5812_v47, %s5159_s12 }
0x11c4   : > { %v2659_v8 = vpop.xlane.xlu1 %2658 }
0x11c5   : > { %v2663_v11 = vsub.f32 %v2599_v54, %v2659_v8 }
0x11c7   : > { %v2665_v12 = vmul.f32 1.442695, %v2663_v11 }
0x11c8   : > { %v2683_v13 = vpop.permute.xlu1 %2682  ;;  %v2662_v18 = vpop.xlane.xlu0 %2661 }
0x11c9   : > { %4884 = vpow2.f32 %v2665_v12  ;;  %v2688_v19 = vsel %vm1186_vm7, %v2683_v13, 0  ;;  %v2664_v22 = vsub.f32 %v2651_v63, %v2662_v18 }
0x11ca   : > { %4540 = vmatpush3.bf16.msra.mxu0 %v2688_v19 }
0x11cb   : > { %v2667_v24 = vmul.f32 1.442695, %v2664_v22  ;;  %4551 = vmatprep.subr.bf16.mxu0 %v5155_v49 }
0x11cc   : > { %v2782_v38 = vpop.permute.xlu1 %2781 }
0x11cd   : > { %4886 = vpow2.f32 %v2667_v24  ;;  %v2787_v42 = vsel %vm1065_vm4, %v2782_v38, 0 }
0x11d0   : > { %v2832_v45 = vpop.permute.xlu1 %2831 }
0x11d1   : > { %v2837_v15 = vsel %vm1065_vm4, %v2832_v45, 0 }
0x11d4   : > { %v2780_v23 = vpop.permute.xlu1 %2779 }
0x11d6   : > { %v4885_v28 = vpop.eup %4884 }
0x11d7   : > { %v2669_v31 = vsel %vm1158_vm6, %v4885_v28, 0.0 }
0x11d8   : > { %2670 = vadd.xlane.f32.xlu0 %v2669_v31 }
0x11da   : > { %v4887_v32 = vpop.eup %4886 }
0x11db   : > { %v2672_v33 = vsel %vm1158_vm6, %v4887_v32, 0.0 }
0x11dc   : > { %2673 = vadd.xlane.f32.xlu0 %v2672_v33 }
0x11f2   : > { %2731 = vrot.lane.b32.xlu0 %v5832_v58, %s5157_s18 }
0x11f6   : > { %2829 = vrot.lane.b32.xlu0 %v5818_v16, %s5159_s12 }
0x1261   : > { %v2671_v34 = vpop.xlane.xlu0 %2670 }
0x1262   : > { %4888 = vrcp.f32 %v2671_v34 }
0x1265   : > { %v2674_v35 = vpop.xlane.xlu0 %2673 }
0x1266   : > { %4890 = vrcp.f32 %v2674_v35 }
0x1269   : > { %v2732_v21 = vpop.permute.xlu0 %2731 }
0x126a   : > { %v2737_v36 = vsel %vm1186_vm7, %v2732_v21, 0 }
0x126b   : > { %4546 = vmatpush3.bf16.msra.mxu1 %v2737_v36 }
0x126c   : > { %4557 = vmatprep.subr.bf16.mxu1 %v5155_v49 }
0x126d   : > { %v2830_v26 = vpop.permute.xlu0 %2829 }
0x126f   : > { %v4889_v37 = vpop.eup %4888 }
0x1270   : > { %v2677_v39 = vmul.f32 %v4889_v37, %v4885_v28 }
0x1272   : > { %v2679_v27 = vpack.c.bf16 %v2677_v39, %v2677_v39 }
0x1273   : > { %v4891_v41 = vpop.eup %4890 }
0x1274   : > { %4542 = vmatmul.mubr.msk.bf16.vlgmr.msra.gmra.mxu0 %vm1158_vm6, %v2679_v27  ;;  %v2678_v43 = vmul.f32 %v4891_v41, %v4887_v32 }
0x1275   : > { %4552 = vmatpush3.bf16.xpose.msra.mxu0 %v2787_v42  ;;  %4553 = vmatprep.mubr.msk.bf16.mxu0 %vm5156_vm2, %v5155_v49 }
0x1276   : > { %v2680_v60 = vpack.c.bf16 %v2678_v43, %v2678_v43  ;;  %4563 = vmatprep.subr.bf16.mxu0 %v5155_v49 }
0x1278   : > { %4548 = vmatmul.mubr.msk.bf16.vlgmr.msra.gmra.mxu1 %vm1158_vm6, %v2680_v60 }
0x1279   : > { %4558 = vmatpush3.bf16.xpose.msra.mxu1 %v2837_v15  ;;  %4559 = vmatprep.mubr.msk.bf16.mxu1 %vm5156_vm2, %v5155_v49 }
0x127a   : > { %4569 = vmatprep.subr.bf16.mxu1 %v5155_v49 }
0x127c   : > { %4554 = vmatmul.mubr.msk.bf16.vlgmr.msra.gmra.mxu0 %vm1065_vm4, %v2780_v23 }
0x127d   : > { %4565 = vmatprep.mubr.msk.bf16.mxu0 %vm5156_vm2, %v5155_v49 }
0x1280   : > { %4560 = vmatmul.mubr.msk.bf16.vlgmr.msra.gmra.mxu1 %vm1065_vm4, %v2830_v26 }
0x1281   : > { %4571 = vmatprep.mubr.msk.bf16.mxu1 %vm5156_vm2, %v5155_v49 }
0x1334   : > { %v5908_v50 = vpop.f32.mrf.mxu0 }
0x1336   : > { %v4543_v10 = vpop.f32.mrf.mxu0 }
0x1338   : > { %v2727_v52 = vpop.f32.mrf.mxu0  ;;  %v5910_v20 = vpop.f32.mrf.mxu1 }
0x1339   : > { %v4765_v53 = vpack.i.bf16 %v5910_v20, %v5908_v50 }
0x133a   : > { %v4544_v54 = vpop.f32.mrf.mxu0  ;;  %v4549_v55 = vpop.f32.mrf.mxu1 }
0x133c   : > { %v2776_v56 = vpop.f32.mrf.mxu1  ;;  %v2823_v61 = vpop.f32.mrf.mxu0 }
0x133d   : > { %v2879_v62 = vsel %vm1158_vm6, %v2823_v61, -inf }
0x133e   : > { %2880 = vmax.xlane.f32.xlu1 %v2879_v62  ;;  %v4550_v63 = vpop.f32.mrf.mxu1  ;;  %v4555_v17 = vpop.f32.mrf.mxu0 }
0x1340   : > { %v2826_v0 = vpop.f32.mrf.mxu0  ;;  %v2873_v4 = vpop.f32.mrf.mxu1 }
0x1341   : > { %v2882_v6 = vsel %vm1158_vm6, %v2873_v4, -inf }
0x1342   : > { %v4556_v7 = vpop.f32.mrf.mxu0  ;;  %2883 = vmax.xlane.f32.xlu0 %v2882_v6  ;;  %v4561_v8 = vpop.f32.mrf.mxu1 }
0x1344   : > { %v2876_v11 = vpop.f32.mrf.mxu1 }
0x1346   : > { %v4562_v12 = vpop.f32.mrf.mxu1 }
0x134f   : > { %2903 = vrot.lane.b32.xlu1 %v5830_v57, %s5159_s12 }
0x1353   : > { %3001 = vrot.lane.b32.xlu1 %v5798_v40, %s5160_s14 }
0x1357   : > { %3051 = vrot.lane.b32.xlu1 %v5802_v44, %s5160_s14 }
0x135b   : > { %2999 = vrot.lane.b32.xlu1 %v5812_v47, %s5160_s14 }
0x13c7   : > { %v2881_v13 = vpop.xlane.xlu1 %2880 }
0x13c8   : > { %v2885_v18 = vsub.f32 %v2823_v61, %v2881_v13 }
0x13ca   : > { %v2887_v19 = vmul.f32 1.442695, %v2885_v18 }
0x13cb   : > { %v2904_v22 = vpop.permute.xlu1 %2903  ;;  %v2884_v24 = vpop.xlane.xlu0 %2883 }
0x13cc   : > { %4892 = vpow2.f32 %v2887_v19  ;;  %v2909_v28 = vsel %vm1186_vm7, %v2904_v22, 0  ;;  %v2886_v31 = vsub.f32 %v2873_v4, %v2884_v24 }
0x13cd   : > { %4564 = vmatpush3.bf16.msra.mxu0 %v2909_v28 }
0x13ce   : > { %v2889_v32 = vmul.f32 1.442695, %v2886_v31  ;;  %4575 = vmatprep.subr.bf16.mxu0 %v5155_v49 }
0x13cf   : > { %v3002_v38 = vpop.permute.xlu1 %3001 }
0x13d0   : > { %4894 = vpow2.f32 %v2889_v32  ;;  %v3007_v42 = vsel %vm1065_vm4, %v3002_v38, 0 }
0x13d3   : > { %v3052_v43 = vpop.permute.xlu1 %3051 }
0x13d4   : > { %v3057_v60 = vsel %vm1065_vm4, %v3052_v43, 0 }
0x13d7   : > { %v3000_v15 = vpop.permute.xlu1 %2999 }
0x13d9   : > { %v4893_v40 = vpop.eup %4892 }
0x13da   : > { %v2891_v44 = vsel %vm1158_vm6, %v4893_v40, 0.0 }
0x13db   : > { %2892 = vadd.xlane.f32.xlu0 %v2891_v44 }
0x13dd   : > { %v4895_v33 = vpop.eup %4894 }
0x13de   : > { %v2894_v47 = vsel %vm1158_vm6, %v4895_v33, 0.0 }
0x13df   : > { %2895 = vadd.xlane.f32.xlu0 %v2894_v47 }
0x13f5   : > { %2951 = vrot.lane.b32.xlu0 %v5832_v58, %s5159_s12 }
0x13f9   : > { %3049 = vrot.lane.b32.xlu0 %v5818_v16, %s5160_s14 }
0x1464   : > { %v2893_v34 = vpop.xlane.xlu0 %2892 }
0x1465   : > { %4896 = vrcp.f32 %v2893_v34 }
0x1468   : > { %v2896_v35 = vpop.xlane.xlu0 %2895 }
0x1469   : > { %4898 = vrcp.f32 %v2896_v35 }
0x146c   : > { %v2952_v21 = vpop.permute.xlu0 %2951 }
0x146d   : > { %v2957_v36 = vsel %vm1186_vm7, %v2952_v21, 0 }
0x146e   : > { %4570 = vmatpush3.bf16.msra.mxu1 %v2957_v36 }
0x146f   : > { %4581 = vmatprep.subr.bf16.mxu1 %v5155_v49 }
0x1470   : > { %v3050_v23 = vpop.permute.xlu0 %3049 }
0x1472   : > { %v4897_v37 = vpop.eup %4896 }
0x1473   : > { %v2899_v39 = vmul.f32 %v4897_v37, %v4893_v40 }
0x1475   : > { %v2901_v27 = vpack.c.bf16 %v2899_v39, %v2899_v39 }
0x1476   : > { %v4899_v41 = vpop.eup %4898 }
0x1477   : > { %4566 = vmatmul.mubr.msk.bf16.vlgmr.msra.gmra.mxu0 %vm1158_vm6, %v2901_v27  ;;  %v2900_v16 = vmul.f32 %v4899_v41, %v4895_v33  ;;  %v4808_v27 = vld [vmem:[%s5413_s13 + $0xf8] sm:$0xff]   ;;  %v4809_v41 = vld [vmem:[%s5413_s13 + $0xf0] sm:$0xff]  }
0x1478   : > { %4576 = vmatpush3.bf16.xpose.msra.mxu0 %v3007_v42  ;;  %4577 = vmatprep.mubr.msk.bf16.mxu0 %vm5156_vm2, %v5155_v49  ;;  %v4810_v42 = vld [vmem:[%s5413_s13 + $0xe8] sm:$0xff]  }
0x1479   : > { %v2902_v45 = vpack.c.bf16 %v2900_v16, %v2900_v16  ;;  %4587 = vmatprep.subr.bf16.mxu0 %v5155_v49  ;;  %v4811_v16 = vld [vmem:[%s5413_s13 + $0xe0] sm:$0xff]  }
0x147b   : > { %4572 = vmatmul.mubr.msk.bf16.vlgmr.msra.gmra.mxu1 %vm1158_vm6, %v2902_v45 }
0x147c   : > { %4582 = vmatpush3.bf16.xpose.msra.mxu1 %v3057_v60  ;;  %4583 = vmatprep.mubr.msk.bf16.mxu1 %vm5156_vm2, %v5155_v49 }
0x147d   : > { %4593 = vmatprep.subr.bf16.mxu1 %v5155_v49 }
0x147f   : > { %4578 = vmatmul.mubr.msk.bf16.vlgmr.msra.gmra.mxu0 %vm1065_vm4, %v3000_v15 }
0x1480   : > { %4589 = vmatprep.mubr.msk.bf16.mxu0 %vm5156_vm2, %v5155_v49 }
0x1483   : > { %4584 = vmatmul.mubr.msk.bf16.vlgmr.msra.gmra.mxu1 %vm1065_vm4, %v3050_v23 }
0x1484   : > { %4595 = vmatprep.mubr.msk.bf16.mxu1 %vm5156_vm2, %v5155_v49 }
0x1537   : > { %v2945_v26 = vpop.f32.mrf.mxu0 }
0x1539   : > { %v4567_v10 = vpop.f32.mrf.mxu0 }
0x153b   : > { %v2948_v52 = vpop.f32.mrf.mxu0  ;;  %v2993_v54 = vpop.f32.mrf.mxu1 }
0x153c   : > { %v4770_v18 = vpack.i.bf16 %v2993_v54, %v2945_v26 }
0x153d   : > { %v4568_v55 = vpop.f32.mrf.mxu0  ;;  %v4573_v56 = vpop.f32.mrf.mxu1 }
0x153f   : > { %v2996_v61 = vpop.f32.mrf.mxu1  ;;  %v3043_v62 = vpop.f32.mrf.mxu0 }
0x1540   : > { %v3099_v63 = vsel %vm1158_vm6, %v3043_v62, -inf }
0x1541   : > { %3100 = vmax.xlane.f32.xlu1 %v3099_v63  ;;  %v4574_v17 = vpop.f32.mrf.mxu1  ;;  %v4579_v0 = vpop.f32.mrf.mxu0 }
0x1543   : > { %v3046_v4 = vpop.f32.mrf.mxu0  ;;  %v3093_v6 = vpop.f32.mrf.mxu1 }
0x1544   : > { %v3102_v7 = vsel %vm1158_vm6, %v3093_v6, -inf }
0x1545   : > { %v4580_v8 = vpop.f32.mrf.mxu0  ;;  %3103 = vmax.xlane.f32.xlu0 %v3102_v7  ;;  %v4585_v11 = vpop.f32.mrf.mxu1 }
0x1547   : > { %v3096_v12 = vpop.f32.mrf.mxu1 }
0x1549   : > { %v4586_v13 = vpop.f32.mrf.mxu1 }
0x1552   : > { %3123 = vrot.lane.b32.xlu1 %v5830_v57, %s5160_s14 }
0x1556   : > { %4766 = vrot.lane.b32.xlu1 %v4765_v53, %s5161_s29 }
0x155a   : > { %4771 = vrot.lane.b32.xlu1 %v4770_v18, %s5162_s4 }
0x15ca   : > { %v3101_v19 = vpop.xlane.xlu1 %3100 }
0x15cb   : > { %v3105_v22 = vsub.f32 %v3043_v62, %v3101_v19  ;;  %v3262_v19 = vrot.slane %v5826_v59, %v5517_v2 }
0x15cd   : > { %v3107_v24 = vmul.f32 1.442695, %v3105_v22 }
0x15ce   : > { %v3124_v28 = vpop.permute.xlu1 %3123  ;;  %v3104_v31 = vpop.xlane.xlu0 %3103 }
0x15cf   : > { %4900 = vpow2.f32 %v3107_v24  ;;  %v3129_v32 = vsel %vm1186_vm7, %v3124_v28, 0  ;;  %v3106_v40 = vsub.f32 %v3093_v6, %v3104_v31 }
0x15d0   : > { %4588 = vmatpush3.bf16.msra.mxu0 %v3129_v32 }
0x15d1   : > { %v3109_v44 = vmul.f32 1.442695, %v3106_v40  ;;  %4599 = vmatprep.subr.bf16.mxu0 %v5155_v49 }
0x15d2   : > { %v4767_v55 = vpop.permute.xlu1 %4766 }
0x15d3   : > { %4902 = vpow2.f32 %v3109_v44  ;;  %v4769_v61 = vunpack.i.h.bf16 %v4767_v55  ;;  %v4768_v62 = vunpack.i.l.bf16 %v4767_v55  ;;  %v4833_v55 = vld [vmem:[%s5408_s23 + $0x18] sm:$0xff]  }
0x15d5   : > { %v3244_v0 = vsel %vm1065_vm4, %v5870_v3, %v4769_v61  ;;  %v3243_v4 = vsel %vm1065_vm4, %v5868_v48, %v4768_v62 }
0x15d6   : > { %v4772_v56 = vpop.permute.xlu1 %4771 }
0x15d7   : > { %v4774_v63 = vunpack.i.h.bf16 %v4772_v56  ;;  %v4773_v17 = vunpack.i.l.bf16 %v4772_v56 }
0x15d9   : > { %v3246_v8 = vsel %vm1968_vm8, %v3244_v0, %v4774_v63  ;;  %v3245_v11 = vsel %vm1968_vm8, %v3243_v4, %v4773_v17  ;;  %v3362_v4 = vrot.slane %v5826_v59, %v992_v51  ;;  %v4835_v51 = vld [vmem:[%s5408_s23 + $0x10] sm:$0xff]  }
0x15dc   : > { %v4901_v57 = vpop.eup %4900 }
0x15dd   : > { %v3111_v50 = vsel %vm1158_vm6, %v4901_v57, 0.0 }
0x15de   : > { %3112 = vadd.xlane.f32.xlu0 %v3111_v50 }
0x15e0   : > { %v4903_v20 = vpop.eup %4902 }
0x15e1   : > { %v3114_v53 = vsel %vm1158_vm6, %v4903_v20, 0.0 }
0x15e2   : > { %3115 = vadd.xlane.f32.xlu0 %v3114_v53 }
0x15f8   : > { %3171 = vrot.lane.b32.xlu0 %v5832_v58, %s5160_s14 }
0x1667   : > { %v3113_v33 = vpop.xlane.xlu0 %3112 }
0x1668   : > { %4904 = vrcp.f32 %v3113_v33 }
0x166b   : > { %v3116_v47 = vpop.xlane.xlu0 %3115 }
0x166c   : > { %4906 = vrcp.f32 %v3116_v47 }
0x166f   : > { %v3172_v34 = vpop.permute.xlu0 %3171 }
0x1670   : > { %v3177_v35 = vsel %vm1186_vm7, %v3172_v34, 0 }
0x1671   : > { %4594 = vmatpush3.bf16.msra.mxu1 %v3177_v35 }
0x1675   : > { %v4905_v21 = vpop.eup %4904 }
0x1676   : > { %v3119_v36 = vmul.f32 %v4905_v21, %v4901_v57 }
0x1678   : > { %v3121_v37 = vpack.c.bf16 %v3119_v36, %v3119_v36  ;;  %v4814_v36 = vld [vmem:[%s5389_s6 + $0x34] ss:$8 sps:$4 sm:$0xff]  }
0x1679   : > { %v4907_v38 = vpop.eup %4906  ;;  %3443 = vmatprep.subr.bf16.mxu1 %v4814_v36 }
0x167a   : > { %4590 = vmatmul.mubr.msk.bf16.vlgmr.msra.gmra.mxu0 %vm1158_vm6, %v3121_v37  ;;  %v3120_v39 = vmul.f32 %v4907_v38, %v4903_v20  ;;  %v4812_v37 = vld [vmem:[%s5389_s6 + $0x30] ss:$8 sps:$4 sm:$0xff]   ;;  %v4817_v38 = vld [vmem:[%s5389_s6 + $0x24] ss:$8 sps:$4 sm:$0xff]  }
0x167b   : > { %4607 = vmatprep.mubr.msk.bf16.mxu0 %vm5156_vm2, %v5155_v49  ;;  %4600 = vmatpush3.bf16.msra.mxu0 %v4808_v27  ;;  %v4818_v27 = vld [vmem:[%s5389_s6 + $0x10] ss:$8 sps:$4 sm:$0xff]  }
0x167c   : > { %v3122_v58 = vpack.c.bf16 %v3120_v39, %v3120_v39  ;;  %4601 = vmatprep.subr.bf16.mxu0 %v5155_v49  ;;  %v4815_v39 = vld [vmem:[%s5389_s6 + $0x20] ss:$8 sps:$4 sm:$0xff]  }
0x167e   : > { %4596 = vmatmul.mubr.msk.bf16.vlgmr.msra.gmra.mxu1 %vm1158_vm6, %v3122_v58  ;;  %v4820_v58 = vld [vmem:[%s5389_s6 + $0x14] ss:$8 sps:$4 sm:$0xff]  }
0x167f   : > { %4602 = vmatpush3.bf16.msra.mxu0 %v4809_v41  ;;  %3444 = vmatpush1.bf16.msra.mxu1 %v4812_v37  ;;  %v4823_v41 = vld [vmem:[%s5389_s6 + $0x4] ss:$8 sps:$4 sm:$0xff]  }
0x1680   : > { %4603 = vmatprep.subr.bf16.mxu0 %v5155_v49  ;;  %3445 = vmatprep.subr.bf16.mxu1 %v4817_v38 }
0x1683   : > { %4604 = vmatpush3.bf16.msra.mxu0 %v4810_v42  ;;  %3446 = vmatpush1.bf16.msra.mxu1 %v4815_v39  ;;  %v4821_v42 = vld [vmem:[%s5389_s6] ss:$8 sps:$4 sm:$0xff]  }
0x1684   : > { %4605 = vmatprep.subr.bf16.mxu0 %v5155_v49  ;;  %3447 = vmatprep.subr.bf16.mxu1 %v4820_v58 }
0x1687   : > { %4606 = vmatpush3.bf16.msra.mxu0 %v4811_v16  ;;  %3448 = vmatpush1.bf16.msra.mxu1 %v4818_v27  ;;  %v5164_v16 = vmov 0  }
0x1688   : > { %3467 = vmatprep.mubr.bf16.mxu1 %v5164_v16  ;;  %3449 = vmatprep.subr.bf16.mxu1 %v4823_v41 }
0x168b   : > { %3450 = vmatpush1.bf16.msra.mxu1 %v4821_v42 }
0x173a   : > { %v3165_v43 = vpop.f32.mrf.mxu0 }
0x173c   : > { %v4591_v45 = vpop.f32.mrf.mxu0 }
0x173d   : > { %v4825_v45 = vld [vmem:[%s5408_s23 + $0x38] sm:$0xff]  }
0x173e   : > { %v3168_v60 = vpop.f32.mrf.mxu0  ;;  %v3213_v15 = vpop.f32.mrf.mxu1 }
0x173f   : > { %v4775_v23 = vpack.i.bf16 %v3213_v15, %v3165_v43  ;;  %v4824_v43 = vld [vmem:[%s5408_s23 + $0x78] sm:$0xff]   ;;  %v4826_v60 = vld [vmem:[%s5408_s23 + $0x70] sm:$0xff]  }
0x1740   : > { %v4592_v26 = vpop.f32.mrf.mxu0  ;;  %v4597_v10 = vpop.f32.mrf.mxu1  ;;  %4296 = vmatprep.subr.bf16.mxu0 %v4824_v43  ;;  %v4827_v15 = vld [vmem:[%s5408_s23 + $0x30] sm:$0xff]  }
0x1741   : > { %4776 = vrot.lane.b32.xlu1 %v4775_v23, %s5163_s25  ;;  %v4828_v23 = vld [vmem:[%s5408_s23 + $0x68] sm:$0xff]   ;;  %v4830_v10 = vld [vmem:[%s5408_s23 + $0x60] sm:$0xff]  }
0x1742   : > { %v3216_v52 = vpop.f32.mrf.mxu1  ;;  %v4829_v26 = vld [vmem:[%s5408_s23 + $0x28] sm:$0xff]  }
0x1743   : > { %v4831_v52 = vld [vmem:[%s5408_s23 + $0x20] sm:$0xff]  }
0x1744   : > { %v4598_v54 = vpop.f32.mrf.mxu1 }
0x1745   : > { %v4832_v54 = vld [vmem:[%s5408_s23 + $0x58] sm:$0xff]  }
0x17b3   : > { %v4777_v49 = vpop.permute.xlu1 %4776 }
0x17b4   : > { %v4779_v6 = vunpack.i.h.bf16 %v4777_v49  ;;  %v4778_v7 = vunpack.i.l.bf16 %v4777_v49 }
0x17b6   : > { %v3248_v12 = vsel %vm1971_vm9, %v3246_v8, %v4779_v6  ;;  %v3247_v13 = vsel %vm1971_vm9, %v3245_v11, %v4778_v7  ;;  %v3368_v8 = vrot.slane %v5826_v59, %v1986_v25  ;;  %v4838_v25 = vld [vmem:[%s5408_s23 + $0x40] sm:$0xff]  }
0x17b7   : > { %v3258_v18 = vpack.c.bf16 %v3248_v12, %v3247_v13 }
0x17b9   : > { %4608 = vmatmul.mubr.msk.bf16.vlgmr.msra.gmra.mxu0 %vm858_vm3, %v3258_v18 }
0x17ba   : > { %4297 = vmatpush3.bf16.msra.mxu0 %v4825_v45 }
0x17bb   : > { %4298 = vmatprep.subr.bf16.mxu0 %v4826_v60 }
0x17be   : > { %4299 = vmatpush3.bf16.msra.mxu0 %v4827_v15 }
0x17bf   : > { %4300 = vmatprep.subr.bf16.mxu0 %v4828_v23 }
0x17c2   : > { %4301 = vmatpush3.bf16.msra.mxu0 %v4829_v26 }
0x17c3   : > { %4302 = vmatprep.subr.bf16.mxu0 %v4830_v10 }
0x17c6   : > { %4303 = vmatpush3.bf16.msra.mxu0 %v4831_v52 }
0x17c7   : > { %4304 = vmatprep.subr.bf16.mxu0 %v4832_v54 }
0x17ca   : > { %4305 = vmatpush3.bf16.msra.mxu0 %v4833_v55 }
0x1879   : > { %v3324_v3 = vpop.f32.mrf.mxu0 }
0x187a   : > { %v3325_v22 = vadd.f32 %v3324_v3, %v3262_v19 }
0x187b   : > { %v4609_v24 = vpop.f32.mrf.mxu0 }
0x187c   : > { %v3331_v48 = vadd.f32 %v3325_v22, %v5776_v29  ;;  %v4834_v22 = vld [vmem:[%s5408_s23 + $0x50] sm:$0xff]   ;;  %v4836_v24 = vld [vmem:[%s5408_s23 + $0x48] sm:$0xff]  }
0x187d   : > { %v3327_v28 = vpop.f32.mrf.mxu0  ;;  %4306 = vmatprep.subr.bf16.mxu0 %v4834_v22 }
0x187e   : > { %v3328_v31 = vadd.f32 %v3327_v28, %v3262_v19  ;;  %v3333_v32 = vsel %vm858_vm3, %v3331_v48, 0.0  ;;  %4307 = vmatpush3.bf16.msra.mxu0 %v4835_v51  ;;  %v4839_v28 = vld [vmem:[%s5408_s23] sm:$0xff]  }
0x187f   : > { %3334 = vadd.xlane.f32.xlu0 %v3333_v32  ;;  %v4610_v40 = vpop.f32.mrf.mxu0  ;;  %4308 = vmatprep.subr.bf16.mxu0 %v4836_v24 }
0x1880   : > { %v3332_v44 = vadd.f32 %v3328_v31, %v5778_v30  ;;  %v3379_v31 = vld [vmem:[%s5418_s21] sm:$0x3] }
0x1881   : > { %v3389_v40 = vrot.slane %v3379_v31, %v5517_v2  ;;  %v3519_v2 = vrot.slane %v5826_v59, %v2087_v9 }
0x1882   : > { %v3336_v57 = vsel %vm858_vm3, %v3332_v44, 0.0 }
0x1883   : > { %3337 = vadd.xlane.f32.xlu1 %v3336_v57 }
0x1908   : > { %v3335_v50 = vpop.xlane.xlu0 %3334 }
0x1909   : > { %v3339_v20 = vmul.f32 0.015625, %v3335_v50 }
0x190b   : > { %v3341_v53 = vsub.f32 %v3331_v48, %v3339_v20  ;;  %v4837_v48 = vld [vmem:[%s5408_s23 + $0x8] sm:$0xff]  }
0x190c   : > { %v3338_v33 = vpop.xlane.xlu1 %3337  ;;  %4309 = vmatpush3.bf16.msra.mxu0 %v4837_v48 }
0x190d   : > { %v3340_v29 = vmul.f32 0.015625, %v3338_v33  ;;  %v3343_v47 = vmul.f32 %v3341_v53, %v3341_v53  ;;  %4310 = vmatprep.subr.bf16.mxu0 %v4838_v25 }
0x190f   : > { %v3342_v34 = vsub.f32 %v3332_v44, %v3340_v29  ;;  %v3345_v35 = vsel %vm858_vm3, %v3343_v47, 0.0  ;;  %v3385_v44 = vrot.slane %v3379_v31, %v5526_v5 }
0x1910   : > { %3346 = vadd.xlane.f32.xlu0 %v3345_v35  ;;  %4311 = vmatpush3.bf16.msra.mxu0 %v4839_v28 }
0x1911   : > { %v3344_v30 = vmul.f32 %v3342_v34, %v3342_v34 }
0x1913   : > { %v3348_v21 = vsel %vm858_vm3, %v3344_v30, 0.0 }
0x1914   : > { %3349 = vadd.xlane.f32.xlu0 %v3348_v21 }
0x1999   : > { %v3347_v56 = vpop.xlane.xlu0 %3346 }
0x199a   : > { %v3351_v61 = vmul.f32 0.015625, %v3347_v56 }
0x199c   : > { %v3353_v62 = vadd.f32 1e-05, %v3351_v61 }
0x199d   : > { %v3350_v63 = vpop.xlane.xlu0 %3349 }
0x199e   : > { %4908 = vrsqrt.f32 %v3353_v62  ;;  %v3352_v17 = vmul.f32 0.015625, %v3350_v63 }
0x19a0   : > { %v3354_v49 = vadd.f32 1e-05, %v3352_v17 }
0x19a2   : > { %4910 = vrsqrt.f32 %v3354_v49 }
0x19ab   : > { %v4909_v0 = vpop.eup %4908 }
0x19ac   : > { %v3357_v6 = vmul.f32 %v4909_v0, %v3341_v53 }
0x19ae   : > { %v3363_v12 = vmul.f32 %v3362_v4, %v3357_v6 }
0x19af   : > { %v4911_v7 = vpop.eup %4910 }
0x19b0   : > { %v3358_v11 = vmul.f32 %v4911_v7, %v3342_v34  ;;  %v3369_v18 = vadd.f32 %v3368_v8, %v3363_v12  ;;  %v3688_v7 = vrot.slane %v5826_v59, %v2093_v14 }
0x19b2   : > { %v3364_v13 = vmul.f32 %v3362_v4, %v3358_v11  ;;  %v3694_v11 = vrot.slane %v5826_v59, %v2109_v46 }
0x19b4   : > { %v3370_v19 = vadd.f32 %v3368_v8, %v3364_v13 }
0x19b6   : > { %v3380_v3 = vpack.c.bf16 %v3370_v19, %v3369_v18 }
0x19b8   : > { %4158 = vmatmul.mubr.msk.bf16.vlgmr.msra.gmra.mxu1 %vm858_vm3, %v3380_v3 }
0x1a78   : > { %v3469_v32 = vpop.f32.mrf.mxu1 }
0x1a79   : > { %v3470_v33 = vadd.f32 %v3469_v32, %v3385_v44 }
0x1a7a   : > { %v3471_v57 = vpop.f32.mrf.mxu1 }
0x1a7b   : > { %v3472_v20 = vadd.f32 %v3471_v57, %v3389_v40  ;;  %v3478_v21 = vmax.f32 %v3470_v33, 0.0 }
0x1a7c   : > { %v3473_v50 = vpop.f32.mrf.mxu1 }
0x1a7d   : > { %v3474_v53 = vadd.f32 %v3473_v50, %v3385_v44  ;;  %v3479_v35 = vmax.f32 %v3472_v20, 0.0 }
0x1a7e   : > { %v3475_v29 = vpop.f32.mrf.mxu1 }
0x1a7f   : > { %v3476_v47 = vadd.f32 %v3475_v29, %v3389_v40  ;;  %v3480_v34 = vmax.f32 %v3474_v53, 0.0 }
0x1a81   : > { %v3481_v30 = vmax.f32 %v3476_v47, 0.0  ;;  %v3514_v37 = vpack.c.bf16 %v3480_v34, %v3478_v21 }
0x1a83   : > { %v3515_v36 = vpack.c.bf16 %v3481_v30, %v3479_v35 }
0x1a85   : > { %3648 = vmatprep.mubr.bf16.mxu0 %v3515_v36 }
0x1a86   : > { %3649 = vmatmul.mubr.bf16.vlgmr.msra.gmra.mxu0 %v3514_v37 }
0x1b46   : > { %v4312_v38 = vpop.f32.mrf.mxu0 }
0x1b48   : > { %v4313_v5 = vpop.f32.mrf.mxu0 }
0x1b49   : > { %v4314_v39 = vadd.f32 %v4313_v5, %v4312_v38 }
0x1b4a   : > { %v4315_v58 = vpop.f32.mrf.mxu0 }
0x1b4b   : > { %v3651_v27 = vadd.f32 %v4314_v39, %v3519_v2 }
0x1b4c   : > { %v4316_v41 = vpop.f32.mrf.mxu0 }
0x1b4d   : > { %v4317_v42 = vadd.f32 %v4316_v41, %v4315_v58  ;;  %v3657_v16 = vadd.f32 %v3651_v27, %v3369_v18 }
0x1b4f   : > { %v3654_v43 = vadd.f32 %v4317_v42, %v3519_v2  ;;  %v3659_v45 = vsel %vm858_vm3, %v3657_v16, 0.0 }
0x1b50   : > { %3660 = vadd.xlane.f32.xlu0 %v3659_v45 }
0x1b51   : > { %v3658_v60 = vadd.f32 %v3654_v43, %v3370_v19 }
0x1b53   : > { %v3662_v15 = vsel %vm858_vm3, %v3658_v60, 0.0 }
0x1b54   : > { %3663 = vadd.xlane.f32.xlu1 %v3662_v15 }
0x1bd9   : > { %v3661_v23 = vpop.xlane.xlu0 %3660 }
0x1bda   : > { %v3665_v26 = vmul.f32 0.015625, %v3661_v23 }
0x1bdc   : > { %v3667_v10 = vsub.f32 %v3657_v16, %v3665_v26 }
0x1bdd   : > { %v3664_v52 = vpop.xlane.xlu1 %3663 }
0x1bde   : > { %v3666_v9 = vmul.f32 0.015625, %v3664_v52  ;;  %v3669_v54 = vmul.f32 %v3667_v10, %v3667_v10 }
0x1be0   : > { %v3668_v55 = vsub.f32 %v3658_v60, %v3666_v9  ;;  %v3671_v56 = vsel %vm858_vm3, %v3669_v54, 0.0 }
0x1be1   : > { %3672 = vadd.xlane.f32.xlu0 %v3671_v56 }
0x1be2   : > { %v3670_v61 = vmul.f32 %v3668_v55, %v3668_v55 }
0x1be4   : > { %v3674_v62 = vsel %vm858_vm3, %v3670_v61, 0.0 }
0x1be5   : > { %3675 = vadd.xlane.f32.xlu1 %v3674_v62 }
0x1c6a   : > { %v3673_v63 = vpop.xlane.xlu0 %3672 }
0x1c6b   : > { %v3677_v17 = vmul.f32 0.015625, %v3673_v63 }
0x1c6d   : > { %v3679_v49 = vadd.f32 1e-05, %v3677_v17 }
0x1c6e   : > { %v3676_v0 = vpop.xlane.xlu1 %3675 }
0x1c6f   : > { %4912 = vrsqrt.f32 %v3679_v49  ;;  %v3678_v4 = vmul.f32 0.015625, %v3676_v0 }
0x1c71   : > { %v3680_v6 = vadd.f32 1e-05, %v3678_v4 }
0x1c73   : > { %4914 = vrsqrt.f32 %v3680_v6 }
0x1c7c   : > { %v4913_v8 = vpop.eup %4912 }
0x1c7d   : > { %v3683_v12 = vmul.f32 %v4913_v8, %v3667_v10 }
0x1c7f   : > { %v3689_v13 = vmul.f32 %v3688_v7, %v3683_v12 }
0x1c80   : > { %v4915_v18 = vpop.eup %4914 }
0x1c81   : > { %v3695_v19 = vadd.f32 %v3694_v11, %v3689_v13  ;;  %v3684_v3 = vmul.f32 %v4915_v18, %v3668_v55 }
0x1c83   : > { %3697 = vst.msk [vmem:[#allocation2] sm:$0xff] %vm858_vm3, %v3695_v19  ;;  %v3690_v22 = vmul.f32 %v3688_v7, %v3684_v3  ;;  %3702 = sbr.rel (%p4175_p2) target bundleno = 7521 (0x1d61), region = 92 }
0x1c85   : > { %v3696_v51 = vadd.f32 %v3694_v11, %v3690_v22 }
0x1c87   : > { %3698 = vst.msk [vmem:[#allocation2 + $0x8] sm:$0xff] %vm858_vm3, %v3696_v51 }
0x1c88   : > { %v4918_v14 = vld [vmem:[#allocation10 + $0x18] sm:$0xff]   ;;  %v5165_v24 = vmov 0.0   ;;  %v4919_v1 = vld [vmem:[#allocation10 + $0x10] sm:$0xff]   ;;  %vm5166_vm10 = vmmov 0   ;;  %v4920_v46 = vld [vmem:[#allocation10 + $0x8] sm:$0xff]   ;;  %v3703_v48 = vpack.c.bf16 %v3696_v51, %v3695_v19 }
0x1c89   : > { %4611 = vmatprep.subr.bf16.mxu0 %v5165_v24  ;;  %4619 = vmatprep.mubr.msk.bf16.mxu0 %vm5166_vm10, %v5165_v24  ;;  %v4921_v59 = vld [vmem:[#allocation10] sm:$0xff]   ;;  %v4176_v25 = vld [vmem:[%s6132_s16] ss:$0 sm:$0xff] }
0x1c8a   : > { %4612 = vmatpush3.bf16.msra.mxu0 %v4918_v14 }
0x1c8b   : > { %4613 = vmatprep.subr.bf16.mxu0 %v5165_v24 }
0x1c8e   : > { %4614 = vmatpush3.bf16.msra.mxu0 %v4919_v1 }
0x1c8f   : > { %4615 = vmatprep.subr.bf16.mxu0 %v5165_v24 }
0x1c92   : > { %4616 = vmatpush3.bf16.msra.mxu0 %v4920_v46 }
0x1c93   : > { %4617 = vmatprep.subr.bf16.mxu0 %v5165_v24 }
0x1c96   : > { %4618 = vmatpush3.bf16.msra.mxu0 %v4921_v59 }
0x1c99   : > { %4620 = vmatmul.mubr.msk.bf16.vlgmr.msra.gmra.mxu0 %vm858_vm3, %v3703_v48 }
0x1d59   : > { %v3780_v28 = vpop.f32.mrf.mxu0 }
0x1d5a   : > { %v3781_v31 = vadd.f32 %v4176_v25, %v3780_v28 }
0x1d5b   : > { %v4621_v32 = vpop.f32.mrf.mxu0 }
0x1d5c   : > { %3787 = vst [vmem:[#allocation12] sm:$0xff] %v3781_v31 }
0x1d5d   : > { %v3783_v40 = vpop.f32.mrf.mxu0 }
0x1d5e   : > { %v3784_v44 = vadd.f32 %v4176_v25, %v3783_v40 }
0x1d5f   : > { %v4622_v57 = vpop.f32.mrf.mxu0 }
0x1d60   : > { %3788 = vst [vmem:[#allocation12 + $0x8] sm:$0xff] %v3784_v44 }
0x1d61 PF: > { %p4662_p11 = scmp.eq.s32.totalorder %s5309_s15, 1  ;;  %s5167_s21 = smov [#allocation12]  }
0x1d62   : > { %s3798_s23 = sshll.u32 %s5167_s21, 4  ;;  %s3799_s23 = int_to_ptr.vmem [resolvable:$true] %s3798_s23 }
0x1d63   : > { %s5030_s13 = scalar_lea.vmem %s3799_s23, 256  ;;  %p5037_p1 = scmp.lt.s32.totalorder %s3799_s23, %s3799_s23 }
0x1d64   : > { %p5031_p9 = scmp.ne.s32.totalorder %s3799_s23, %s5030_s13  ;;  %p5038_p0 = scmp.lt.s32.totalorder %s5030_s13, %s5030_s13 }
0x1d66   : > { %p5032_p12 = pnand %p5031_p9, %p4662_p11  ;;  %p5039_p7 = por %p5038_p0, %p5037_p1 }
0x1d68   : > { %p5033_p13 = pneg %p5032_p12 }
0x1d6a   : > { %p5040_p10 = pnand %p5039_p7, %p5033_p13 }
0x1d6c   : > { %5043 = shalt.err (!%p5040_p10)
}
0x1d6d   : > { %s5168_s11 = smov 128   ;;  %s5169_s22 = smov 8  }
0x1d6e   : > { %s6133_s18 = sld [smem:[#allocation25_spill]]  ;;  %s5170_s12 = smov [#allocation13]  }
0x1d6f   : > { %s3814_s14 = sshll.u32 %s5170_s12, 4  ;;  %s3815_s14 = int_to_ptr.vmem [resolvable:$true] %s3814_s14 }
0x1d70   : > { %s5054_s4 = scalar_lea.vmem %s3815_s14, 32  ;;  %p5061_p4 = scmp.lt.s32.totalorder %s3815_s14, %s3815_s14 }
0x1d71   : > { %p5055_p6 = scmp.ne.s32.totalorder %s3815_s14, %s5054_s4  ;;  %p5062_p5 = scmp.lt.s32.totalorder %s5054_s4, %s5054_s4 }
0x1d73   : > { %p5056_p8 = pnand %p5055_p6, %p4662_p11  ;;  %p5063_p2 = por %p5062_p5, %p5061_p4 }
0x1d74   : > { %4636 = dma.vmem_to_hbm [thread:$0]  (%p4662_p11), %s3799_s23, 256, %s6133_s18, [#allocation6], %s5168_s11, %s5168_s11, %s5169_s22  }
0x1d75   : > { %p5057_p3 = pneg %p5056_p8 }
0x1d77   : > { %p5064_p9 = pnand %p5063_p2, %p5057_p3 }
0x1d79   : > { %5067 = shalt.err (!%p5064_p9)
}
0x1d7a   : > { %s5171_s25 = smov 1   ;;  %s6134_s6 = sld [smem:[#allocation26_spill]] }
0x1d80   : > { %4638 = dma.vmem_to_hbm [thread:$0]  (%p4662_p11), %s3815_s14, 32, %s6134_s6, [#allocation14], %s5161_s29, %s5161_s29, %s5171_s25  }
0x1d81   : > { %5115 = dma.done.wait (%p4662_p11), [#allocation6], 256  }
0x1d82   : > { %5117 = vsyncadd (%p4662_p11), [#allocation6], 4294967040 }
0x1d83   : > { %5119 = dma.done.wait (%p4662_p11), [#allocation14], 32  }
0x1d84   : > { %5121 = vsyncadd (%p4662_p11), [#allocation14], 4294967264 }
0x1d85 PF: > { %s31_s30 = sadd.s32 1, %s5144_s30   ;;  %s6135_s28 = sld [smem:[#allocation20_spill]] }
0x1d86   : > { %p28_p12 = scmp.ge.s32.totalorder %s31_s30, 4   ;;  %s6136_s29 = sld [smem:[#allocation21_spill]] }
0x1d87   : > { %s6137_s25 = smov %s5128_s26  ;;  %s6138_s26 = smov %s5132_s27 }
0x1d88   : > { %s6139_s27 = smov %s5286_s20  ;;  %30 = sbr.rel (!%p28_p12) target bundleno = 14 (0xe), region = 162 }
0x1d8d   :  { %3834 = vsyncpa [#allocation5], 1 }
0x1d8e   :  { %3836 = vsyncpa [#allocation5 + $0x1], 1 }
0x1d8f   :  { %3837 = vsyncpa [#allocation8], 1 }
0x1d90   :  { %3839 = vsyncpa [#allocation8 + $0x1], 1 }
0x1d91   :  { %3840 = vsyncpa [#allocation11], 1 }
0x1d92   :  { %3841 = vsyncpa [#allocation6], 1 }
0x1d93   :  { %3843 = vsyncpa [#allocation6 + $0x1], 1 }
0x1d94   :  { %3844 = vsyncpa [#allocation14], 1 }

</bundles_post_ra>
